<compile_context>
chip_gen: v7x
topology: tpu7x:2x2x1
jax: 0.10.0
libtpu: 0.0.40
codegen_flags: <defaults>
</compile_context>

<pallas_src>
import functools

import numpy as np
import jax
import jax.numpy as jnp
from jax.experimental import pallas as pl
from jax.experimental.pallas import tpu as pltpu


def _round_up(n, m):
    return ((n + m - 1) // m) * m


_COMPILER_PARAMS = pltpu.CompilerParams(
    dimension_semantics=("parallel",),          # batch-tile axis: megacore on v7x
    vmem_limit_bytes=32 * 1024 * 1024,
)


# ----------------------------------------------------------------------------
# Pallas kernels
# ----------------------------------------------------------------------------
def _conv_sigmoid_pool_kernel(x_ref, w_ref, b_ref, o_ref, *, wph):
    """Fused conv(5x5) + bias + Sigmoid + 2x2 avg-pool on a flat frame.

    Flat-frame convention: for every batch element the (padded) input grid is
    phase-decomposed by pool parity, x_ph[p=2*pi+pj][ci, i, j] =
    x_pad[ci, 2i+pi, 2j+pj], and (b, i, j) is flattened with pitch `wph` so a
    conv-tap shift becomes a constant lane offset `ah*wph + aw`.

    x_ref: (1, 4, 8, f_in)  bf16  phase slabs (channels zero-padded to 8).
    w_ref: (36, 4*Cout, 8)  bf16  conv weights embedded per (phase, shift) slab
                                  and per 2x2 pool tap (zeros where a tap does
                                  not hit the 5x5 kernel support).
    b_ref: (4*Cout, 1)      f32   bias, tiled over the 4 pool taps.
    o_ref: (Cout, f_out)    bf16  pooled activations, lane-dense flat frame.
    """
    cout, f_out = o_ref.shape
    acc = jnp.zeros((4 * cout, f_out), jnp.float32)
    s = 0
    for p in range(4):                          # pool-parity phase of the input
        xp = x_ref[0, p]                        # (8, f_in) bf16
        for ah in range(3):                     # conv-tap shift within a phase
            for aw in range(3):
                off = ah * wph + aw
                slab = xp[:, off:off + f_out]   # constant lane-offset slice
                acc = acc + jnp.dot(w_ref[s], slab,
                                    preferred_element_type=jnp.float32)
                s += 1
    z = jax.nn.sigmoid(acc + b_ref[...])        # f32 epilogue (v5e-friendly)
    pooled = 0.25 * (z[0:cout] + z[cout:2 * cout]
                     + z[2 * cout:3 * cout] + z[3 * cout:4 * cout])
    o_ref[...] = pooled.astype(o_ref.dtype)     # bf16 store, unmasked lanes


def _mlp_tail_kernel(x_ref, w5_ref, b5_ref, w6_ref, b6_ref, wo_ref, bo_ref,
                     o_ref):
    """Fused c5 (5x5 conv over the full 5x5 map == linear) -> f6 -> output.

    All matmuls run bf16 on the MXU with f32 accumulation; biases stay f32.
    """
    h = jnp.dot(x_ref[...], w5_ref[...],
                preferred_element_type=jnp.float32) + b5_ref[...]
    h = jnp.dot(h.astype(jnp.bfloat16), w6_ref[...],
                preferred_element_type=jnp.float32) + b6_ref[...]
    o_ref[...] = jnp.dot(h.astype(jnp.bfloat16), wo_ref[...],
                         preferred_element_type=jnp.float32) + bo_ref[...]


# ----------------------------------------------------------------------------
# Kernel wrappers
# ----------------------------------------------------------------------------
def conv_sigmoid_pool(xph, w_emb, b_emb, *, wph, f_out):
    """One pallas_call: conv + sigmoid + 2x2 avg-pool, gridded over batch tiles."""
    g = xph.shape[0]
    f_in = xph.shape[-1]
    cout = w_emb.shape[1] // 4
    return pl.pallas_call(
        functools.partial(_conv_sigmoid_pool_kernel, wph=wph),
        out_shape=jax.ShapeDtypeStruct((cout, g * f_out), jnp.bfloat16),
        grid=(g,),
        in_specs=[
            pl.BlockSpec((1, 4, 8, f_in), lambda i: (i, 0, 0, 0)),  # phase tile
            pl.BlockSpec(w_emb.shape, lambda i: (0, 0, 0)),         # resident
            pl.BlockSpec(b_emb.shape, lambda i: (0, 0)),            # resident
        ],
        out_specs=pl.BlockSpec((cout, f_out), lambda i: (0, i)),
        compiler_params=_COMPILER_PARAMS,
    )(xph, w_emb, b_emb)


def mlp_tail(feat, w5, b5, w6, b6, wo, bo, *, tile_b=256):
    """c5 + f6 + output as one fused pallas_call; N padded to 128 lanes."""
    B, K = feat.shape
    N = wo.shape[1]
    if B <= tile_b:
        bp = _round_up(B, 8)
        tb = bp
    else:
        bp = _round_up(B, tile_b)
        tb = tile_b
    if bp != B:
        feat = jnp.pad(feat, ((0, bp - B), (0, 0)))
    feat = feat.astype(jnp.bfloat16)

    return pl.pallas_call(
        _mlp_tail_kernel,
        out_shape=jax.ShapeDtypeStruct((bp, N), jnp.float32),
        grid=(bp // tb,),
        in_specs=[
            pl.BlockSpec((tb, K), lambda i: (i, 0)),
            pl.BlockSpec(w5.shape, lambda i: (0, 0)),
            pl.BlockSpec(b5.shape, lambda i: (0, 0)),
            pl.BlockSpec(w6.shape, lambda i: (0, 0)),
            pl.BlockSpec(b6.shape, lambda i: (0, 0)),
            pl.BlockSpec(wo.shape, lambda i: (0, 0)),
            pl.BlockSpec(bo.shape, lambda i: (0, 0)),
        ],
        out_specs=pl.BlockSpec((tb, N), lambda i: (i, 0)),
        compiler_params=_COMPILER_PARAMS,
    )(feat, w5, b5, w6, b6, wo, bo)


# ----------------------------------------------------------------------------
# Tiny XLA glue (raw-activation re-layout only, a few KB of traffic)
# ----------------------------------------------------------------------------
def _pick_tb(b):
    """Batch-tile size: >=2 grid steps when possible (v7x megacore), cap at 8."""
    if b >= 16:
        return 8
    return max(1, -(-b // 2))


def _prep_phases(x_bchw, tb, f_in):
    """Phase-decompose a (B, C, H, W) activation by 2x2-pool parity and flatten
    (local_batch, i, j) with pitch W/2 into a lane-dense flat frame per tile.

    Returns ((G, 4, 8, f_in) bf16, G) with channels zero-padded to 8.
    """
    B, C, H, W = x_bchw.shape
    hph, wph = H // 2, W // 2
    g = -(-B // tb)
    x = jnp.pad(x_bchw, ((0, g * tb - B), (0, 8 - C), (0, 0), (0, 0)))
    ph = jnp.stack([x[:, :, pi::2, pj::2] for pi in (0, 1) for pj in (0, 1)],
                   axis=1)                                  # (Bp, 4, 8, hph, wph)
    ph = ph.reshape(g, tb, 4, 8, hph * wph)
    ph = jnp.transpose(ph, (0, 2, 3, 1, 4)).reshape(g, 4, 8, tb * hph * wph)
    ph = jnp.pad(ph, ((0, 0), (0, 0), (0, 0), (0, f_in - tb * hph * wph)))
    return ph.astype(jnp.bfloat16), g


def _unflatten(y, g, tb, B, hph, wph):
    """(Cout, G*f_out) flat-frame kernel output -> (B, Cout, hph, wph)."""
    cout = y.shape[0]
    f_out = y.shape[1] // g
    y = y.reshape(cout, g, f_out)[:, :, :tb * hph * wph]
    y = y.reshape(cout, g * tb, hph, wph)[:, :B]
    return jnp.transpose(y, (1, 0, 2, 3))


# ----------------------------------------------------------------------------
# Parameter init and one-time re-layout
# ----------------------------------------------------------------------------
def _embed_conv_weight(w_oihw):
    """PyTorch conv weight (Cout, Cin, 5, 5) -> (36, 4*Cout, 8) bf16.

    Slab s = p*9 + ah*3 + aw  (p = 2*pi + pj input phase, (ah, aw) shift) with
    lane offset ah*wph + aw; row t*Cout + co is pool tap t = 2*di + dj.  Entry
    holds w[co, ci, u-di, v-dj] with u = 2*ah+pi, v = 2*aw+pj when that tap
    lies inside the 5x5 support, else 0.  Cin is zero-padded to 8.
    """
    cout, cin = int(w_oihw.shape[0]), int(w_oihw.shape[1])
    kh_idx = np.zeros((4, 36), np.int32)
    kw_idx = np.zeros((4, 36), np.int32)
    valid = np.zeros((4, 36), np.bool_)
    for t in range(4):
        di, dj = t // 2, t % 2
        for s in range(36):
            p, rem = divmod(s, 9)
            ah, aw = divmod(rem, 3)
            pi, pj = p // 2, p % 2
            kh, kw = 2 * ah + pi - di, 2 * aw + pj - dj
            ok = (0 <= kh < 5) and (0 <= kw < 5)
            valid[t, s] = ok
            kh_idx[t, s] = kh if ok else 0
            kw_idx[t, s] = kw if ok else 0
    g = w_oihw[:, :, kh_idx, kw_idx]                       # (cout, cin, 4, 36)
    g = jnp.where(jnp.asarray(valid)[None, None], g, 0.0)
    g = jnp.transpose(g, (3, 2, 0, 1)).reshape(36, 4 * cout, cin)
    g = jnp.pad(g, ((0, 0), (0, 0), (0, 8 - cin)))
    return g.astype(jnp.bfloat16)


def _pad2d(a, rows, cols):
    return jnp.pad(a, ((0, rows - a.shape[0]), (0, cols - a.shape[1])))


def prepare_params(params):
    """One-time re-layout of PyTorch-style params into kernel-ready form."""
    lane = 128
    w5 = params["c5_w"].reshape(120, 16 * 5 * 5).T          # (400, 120), (ci,kh,kw)
    w6 = params["f6_w"].T                                   # (120, 84)
    wo = params["out_w"].T                                   # (84, 10)
    return {
        # conv layers: embedded bf16 MXU weights, f32 biases tiled over pool taps.
        "c1_w": _embed_conv_weight(params["c1_w"]),          # (36, 24, 8)
        "c1_b": jnp.tile(params["c1_b"], 4).reshape(24, 1).astype(jnp.float32),
        "c3_w": _embed_conv_weight(params["c3_w"]),          # (36, 64, 8)
        "c3_b": jnp.tile(params["c3_b"], 4).reshape(64, 1).astype(jnp.float32),
        # FC tail: bf16 weights, f32 biases, N padded to 128 lanes with zeros.
        "c5_w": _pad2d(w5, 400, lane).astype(jnp.bfloat16),
        "c5_b": _pad2d(params["c5_b"].reshape(1, -1), 1, lane).astype(jnp.float32),
        "f6_w": _pad2d(w6, lane, lane).astype(jnp.bfloat16),
        "f6_b": _pad2d(params["f6_b"].reshape(1, -1), 1, lane).astype(jnp.float32),
        "out_w": _pad2d(wo, lane, lane).astype(jnp.bfloat16),
        "out_b": _pad2d(params["out_b"].reshape(1, -1), 1, lane).astype(jnp.float32),
    }


def init_params(key):
    """Deterministic PyTorch-style uniform(-1/sqrt(fan_in), 1/sqrt(fan_in))."""
    def uniform(k, shape, fan_in):
        bound = 1.0 / float(fan_in) ** 0.5
        return jax.random.uniform(k, shape, jnp.float32, -bound, bound)

    ks = jax.random.split(key, 10)
    return {
        "c1_w": uniform(ks[0], (6, 1, 5, 5), 1 * 5 * 5),
        "c1_b": uniform(ks[1], (6,), 1 * 5 * 5),
        "c3_w": uniform(ks[2], (16, 6, 5, 5), 6 * 5 * 5),
        "c3_b": uniform(ks[3], (16,), 6 * 5 * 5),
        "c5_w": uniform(ks[4], (120, 16, 5, 5), 16 * 5 * 5),
        "c5_b": uniform(ks[5], (120,), 16 * 5 * 5),
        "f6_w": uniform(ks[6], (84, 120), 120),
        "f6_b": uniform(ks[7], (84,), 120),
        "out_w": uniform(ks[8], (10, 84), 84),
        "out_b": uniform(ks[9], (10,), 84),
    }


# ----------------------------------------------------------------------------
# Forward pass (3 fused Pallas kernels, no XLA im2col)
# ----------------------------------------------------------------------------
def lenet5_forward(pp, x_nchw):
    x = x_nchw.astype(jnp.float32)
    B = x.shape[0]
    tb = _pick_tb(B)

    # c1 (1->6, k=5, pad=2) + Sigmoid + s2 AvgPool   -> (B, 6, 14, 14)
    xpad = jnp.pad(x, ((0, 0), (0, 0), (2, 2), (2, 2)))          # (B,1,32,32)
    f_out1 = _round_up(tb * 16 * 16, 128)
    f_in1 = _round_up(f_out1 + 2 * 16 + 2, 128)
    ph1, g1 = _prep_phases(xpad, tb, f_in1)
    y1 = conv_sigmoid_pool(ph1, pp["c1_w"], pp["c1_b"], wph=16, f_out=f_out1)
    a1 = _unflatten(y1, g1, tb, B, 16, 16)[:, :, :14, :14]       # bf16

    # c3 (6->16, k=5) + Sigmoid + s4 AvgPool         -> (B, 16, 5, 5)
    f_out2 = _round_up(tb * 7 * 7, 128)
    f_in2 = _round_up(f_out2 + 2 * 7 + 2, 128)
    ph2, g2 = _prep_phases(a1, tb, f_in2)
    y2 = conv_sigmoid_pool(ph2, pp["c3_w"], pp["c3_b"], wph=7, f_out=f_out2)
    a2 = _unflatten(y2, g2, tb, B, 7, 7)[:, :, :5, :5]           # bf16

    # c5 (16->120 over the full 5x5) + flatten + f6 + output, fused bf16 tail.
    feat = a2.reshape(B, 16 * 5 * 5)           # (ci, kh, kw) order matches c5_w
    logits = mlp_tail(feat, pp["c5_w"], pp["c5_b"], pp["f6_w"], pp["f6_b"],
                      pp["out_w"], pp["out_b"])
    return logits[:B, :10]


# ----------------------------------------------------------------------------
# Pure-JAX reference (correctness check)
# ----------------------------------------------------------------------------
def lenet5_reference(params, x_nchw):
    hi = jax.lax.Precision.HIGHEST

    def conv(x, w, b, padding):
        y = jax.lax.conv_general_dilated(
            x, w, (1, 1), [(padding, padding)] * 2,
            dimension_numbers=("NCHW", "OIHW", "NCHW"), precision=hi)
        return y + b.reshape(1, -1, 1, 1)

    def pool(x):
        s = jax.lax.reduce_window(x, 0.0, jax.lax.add, (1, 1, 2, 2),
                                  (1, 1, 2, 2), "VALID")
        return s / 4.0

    y = jax.nn.sigmoid(conv(x_nchw, params["c1_w"], params["c1_b"], 2))
    y = pool(y)
    y = jax.nn.sigmoid(conv(y, params["c3_w"], params["c3_b"], 0))
    y = pool(y)
    y = conv(y, params["c5_w"], params["c5_b"], 0)
    y = y.reshape(y.shape[0], -1)
    y = jnp.dot(y, params["f6_w"].T, precision=hi) + params["f6_b"]
    y = jnp.dot(y, params["out_w"].T, precision=hi) + params["out_b"]
    return y


if __name__ == "__main__":
    key = jax.random.PRNGKey(0)
    pkey, xkey = jax.random.split(key)
    params = init_params(pkey)
    # Architecture requires 28x28 single-channel inputs (c5 reduces 5x5 -> 1x1).
    x = jax.random.normal(xkey, (2, 1, 28, 28), jnp.float32)

    prepared = prepare_params(params)          # one-time weight re-layout
    fwd = jax.jit(lenet5_forward)
    out = jax.block_until_ready(fwd(prepared, x))
    assert out.shape == (2, 10) and out.dtype == jnp.float32

    ref = lenet5_reference(params, x)
    max_err = float(jnp.max(jnp.abs(out - ref)))
    # Whole pipeline (convs + FC tail) now runs bf16 on the MXU with f32
    # accumulation; 2e-2 covers the bf16 rounding vs the HIGHEST-f32 reference.
    assert jnp.allclose(out, ref, atol=2e-2, rtol=2e-2), (
        f"mismatch vs reference (max abs err {max_err})")

    print("KERNEL_OK")
</pallas_src>

<mosaic_0001>
module attributes {stable_mosaic.version = 11 : i64} {
  func.func @_conv_sigmoid_pool_kernel(%arg0: i32, %arg1: memref<1x4x8x384xbf16, #tpu.memory_space<vmem>>, %arg2: memref<36x24x8xbf16, #tpu.memory_space<vmem>>, %arg3: memref<24x1xf32, #tpu.memory_space<vmem>>, %arg4: memref<6x256xbf16, #tpu.memory_space<vmem>>) attributes {dimension_semantics = [#tpu.dimension_semantics<parallel>], iteration_bounds = array<i64: 2>, scalar_prefetch = 0 : i64, scratch_operands = 0 : i64, tpu.core_type = #tpu.core_type<tc>, window_params = [{transform_indices = @transform_0, window_bounds = array<i64: 1, 4, 8, 384>}, {pipeline_mode = #tpu.pipeline_mode<synchronous>, transform_indices = @transform_1, window_bounds = array<i64: 36, 24, 8>}, {pipeline_mode = #tpu.pipeline_mode<synchronous>, transform_indices = @transform_2, window_bounds = array<i64: 24, 1>}, {transform_indices = @transform_3, window_bounds = array<i64: 6, 256>}]} {
    %cst = arith.constant 0.000000e+00 : f32
    %0 = vector.broadcast %cst : f32 to vector<24x256xf32>
    %c0 = arith.constant 0 : index
    %c0_0 = arith.constant 0 : index
    %c0_1 = arith.constant 0 : index
    %c0_2 = arith.constant 0 : index
    %1 = vector.load %arg1[%c0, %c0_0, %c0_1, %c0_2] : memref<1x4x8x384xbf16, #tpu.memory_space<vmem>>, vector<1x1x8x384xbf16>
    %2 = vector.shape_cast %1 : vector<1x1x8x384xbf16> to vector<8x384xbf16>
    %3 = vector.extract_strided_slice %2 {offsets = [0, 0], sizes = [8, 256], strides = [1, 1]} : vector<8x384xbf16> to vector<8x256xbf16>
    %c0_3 = arith.constant 0 : index
    %c0_4 = arith.constant 0 : index
    %c0_5 = arith.constant 0 : index
    %4 = vector.load %arg2[%c0_3, %c0_4, %c0_5] : memref<36x24x8xbf16, #tpu.memory_space<vmem>>, vector<1x24x8xbf16>
    %5 = vector.shape_cast %4 : vector<1x24x8xbf16> to vector<24x8xbf16>
    %cst_6 = arith.constant dense<0.000000e+00> : vector<24x256xf32>
    %6 = tpu.matmul %5, %3, %cst_6 {dimension_numbers = #tpu.dot_dimension_numbers<[1], [0], [0], [1], [0, 0, 1, 1], [], []>} : vector<24x8xbf16>, vector<8x256xbf16>, vector<24x256xf32> -> vector<24x256xf32>
    %7 = arith.addf %0, %6 : vector<24x256xf32>
    %8 = vector.extract_strided_slice %2 {offsets = [0, 1], sizes = [8, 256], strides = [1, 1]} : vector<8x384xbf16> to vector<8x256xbf16>
    %c1 = arith.constant 1 : index
    %c0_7 = arith.constant 0 : index
    %c0_8 = arith.constant 0 : index
    %9 = vector.load %arg2[%c1, %c0_7, %c0_8] : memref<36x24x8xbf16, #tpu.memory_space<vmem>>, vector<1x24x8xbf16>
    %10 = vector.shape_cast %9 : vector<1x24x8xbf16> to vector<24x8xbf16>
    %cst_9 = arith.constant dense<0.000000e+00> : vector<24x256xf32>
    %11 = tpu.matmul %10, %8, %cst_9 {dimension_numbers = #tpu.dot_dimension_numbers<[1], [0], [0], [1], [0, 0, 1, 1], [], []>} : vector<24x8xbf16>, vector<8x256xbf16>, vector<24x256xf32> -> vector<24x256xf32>
    %12 = arith.addf %7, %11 : vector<24x256xf32>
    %13 = vector.extract_strided_slice %2 {offsets = [0, 2], sizes = [8, 256], strides = [1, 1]} : vector<8x384xbf16> to vector<8x256xbf16>
    %c2 = arith.constant 2 : index
    %c0_10 = arith.constant 0 : index
    %c0_11 = arith.constant 0 : index
    %14 = vector.load %arg2[%c2, %c0_10, %c0_11] : memref<36x24x8xbf16, #tpu.memory_space<vmem>>, vector<1x24x8xbf16>
    %15 = vector.shape_cast %14 : vector<1x24x8xbf16> to vector<24x8xbf16>
    %cst_12 = arith.constant dense<0.000000e+00> : vector<24x256xf32>
    %16 = tpu.matmul %15, %13, %cst_12 {dimension_numbers = #tpu.dot_dimension_numbers<[1], [0], [0], [1], [0, 0, 1, 1], [], []>} : vector<24x8xbf16>, vector<8x256xbf16>, vector<24x256xf32> -> vector<24x256xf32>
    %17 = arith.addf %12, %16 : vector<24x256xf32>
    %18 = vector.extract_strided_slice %2 {offsets = [0, 16], sizes = [8, 256], strides = [1, 1]} : vector<8x384xbf16> to vector<8x256xbf16>
    %c3 = arith.constant 3 : index
    %c0_13 = arith.constant 0 : index
    %c0_14 = arith.constant 0 : index
    %19 = vector.load %arg2[%c3, %c0_13, %c0_14] : memref<36x24x8xbf16, #tpu.memory_space<vmem>>, vector<1x24x8xbf16>
    %20 = vector.shape_cast %19 : vector<1x24x8xbf16> to vector<24x8xbf16>
    %cst_15 = arith.constant dense<0.000000e+00> : vector<24x256xf32>
    %21 = tpu.matmul %20, %18, %cst_15 {dimension_numbers = #tpu.dot_dimension_numbers<[1], [0], [0], [1], [0, 0, 1, 1], [], []>} : vector<24x8xbf16>, vector<8x256xbf16>, vector<24x256xf32> -> vector<24x256xf32>
    %22 = arith.addf %17, %21 : vector<24x256xf32>
    %23 = vector.extract_strided_slice %2 {offsets = [0, 17], sizes = [8, 256], strides = [1, 1]} : vector<8x384xbf16> to vector<8x256xbf16>
    %c4 = arith.constant 4 : index
    %c0_16 = arith.constant 0 : index
    %c0_17 = arith.constant 0 : index
    %24 = vector.load %arg2[%c4, %c0_16, %c0_17] : memref<36x24x8xbf16, #tpu.memory_space<vmem>>, vector<1x24x8xbf16>
    %25 = vector.shape_cast %24 : vector<1x24x8xbf16> to vector<24x8xbf16>
    %cst_18 = arith.constant dense<0.000000e+00> : vector<24x256xf32>
    %26 = tpu.matmul %25, %23, %cst_18 {dimension_numbers = #tpu.dot_dimension_numbers<[1], [0], [0], [1], [0, 0, 1, 1], [], []>} : vector<24x8xbf16>, vector<8x256xbf16>, vector<24x256xf32> -> vector<24x256xf32>
    %27 = arith.addf %22, %26 : vector<24x256xf32>
    %28 = vector.extract_strided_slice %2 {offsets = [0, 18], sizes = [8, 256], strides = [1, 1]} : vector<8x384xbf16> to vector<8x256xbf16>
    %c5 = arith.constant 5 : index
    %c0_19 = arith.constant 0 : index
    %c0_20 = arith.constant 0 : index
    %29 = vector.load %arg2[%c5, %c0_19, %c0_20] : memref<36x24x8xbf16, #tpu.memory_space<vmem>>, vector<1x24x8xbf16>
    %30 = vector.shape_cast %29 : vector<1x24x8xbf16> to vector<24x8xbf16>
    %cst_21 = arith.constant dense<0.000000e+00> : vector<24x256xf32>
    %31 = tpu.matmul %30, %28, %cst_21 {dimension_numbers = #tpu.dot_dimension_numbers<[1], [0], [0], [1], [0, 0, 1, 1], [], []>} : vector<24x8xbf16>, vector<8x256xbf16>, vector<24x256xf32> -> vector<24x256xf32>
    %32 = arith.addf %27, %31 : vector<24x256xf32>
    %33 = vector.extract_strided_slice %2 {offsets = [0, 32], sizes = [8, 256], strides = [1, 1]} : vector<8x384xbf16> to vector<8x256xbf16>
    %c6 = arith.constant 6 : index
    %c0_22 = arith.constant 0 : index
    %c0_23 = arith.constant 0 : index
    %34 = vector.load %arg2[%c6, %c0_22, %c0_23] : memref<36x24x8xbf16, #tpu.memory_space<vmem>>, vector<1x24x8xbf16>
    %35 = vector.shape_cast %34 : vector<1x24x8xbf16> to vector<24x8xbf16>
    %cst_24 = arith.constant dense<0.000000e+00> : vector<24x256xf32>
    %36 = tpu.matmul %35, %33, %cst_24 {dimension_numbers = #tpu.dot_dimension_numbers<[1], [0], [0], [1], [0, 0, 1, 1], [], []>} : vector<24x8xbf16>, vector<8x256xbf16>, vector<24x256xf32> -> vector<24x256xf32>
    %37 = arith.addf %32, %36 : vector<24x256xf32>
    %38 = vector.extract_strided_slice %2 {offsets = [0, 33], sizes = [8, 256], strides = [1, 1]} : vector<8x384xbf16> to vector<8x256xbf16>
    %c7 = arith.constant 7 : index
    %c0_25 = arith.constant 0 : index
    %c0_26 = arith.constant 0 : index
    %39 = vector.load %arg2[%c7, %c0_25, %c0_26] : memref<36x24x8xbf16, #tpu.memory_space<vmem>>, vector<1x24x8xbf16>
    %40 = vector.shape_cast %39 : vector<1x24x8xbf16> to vector<24x8xbf16>
    %cst_27 = arith.constant dense<0.000000e+00> : vector<24x256xf32>
    %41 = tpu.matmul %40, %38, %cst_27 {dimension_numbers = #tpu.dot_dimension_numbers<[1], [0], [0], [1], [0, 0, 1, 1], [], []>} : vector<24x8xbf16>, vector<8x256xbf16>, vector<24x256xf32> -> vector<24x256xf32>
    %42 = arith.addf %37, %41 : vector<24x256xf32>
    %43 = vector.extract_strided_slice %2 {offsets = [0, 34], sizes = [8, 256], strides = [1, 1]} : vector<8x384xbf16> to vector<8x256xbf16>
    %c8 = arith.constant 8 : index
    %c0_28 = arith.constant 0 : index
    %c0_29 = arith.constant 0 : index
    %44 = vector.load %arg2[%c8, %c0_28, %c0_29] : memref<36x24x8xbf16, #tpu.memory_space<vmem>>, vector<1x24x8xbf16>
    %45 = vector.shape_cast %44 : vector<1x24x8xbf16> to vector<24x8xbf16>
    %cst_30 = arith.constant dense<0.000000e+00> : vector<24x256xf32>
    %46 = tpu.matmul %45, %43, %cst_30 {dimension_numbers = #tpu.dot_dimension_numbers<[1], [0], [0], [1], [0, 0, 1, 1], [], []>} : vector<24x8xbf16>, vector<8x256xbf16>, vector<24x256xf32> -> vector<24x256xf32>
    %47 = arith.addf %42, %46 : vector<24x256xf32>
    %c0_31 = arith.constant 0 : index
    %c1_32 = arith.constant 1 : index
    %c0_33 = arith.constant 0 : index
    %c0_34 = arith.constant 0 : index
    %48 = vector.load %arg1[%c0_31, %c1_32, %c0_33, %c0_34] : memref<1x4x8x384xbf16, #tpu.memory_space<vmem>>, vector<1x1x8x384xbf16>
    %49 = vector.shape_cast %48 : vector<1x1x8x384xbf16> to vector<8x384xbf16>
    %50 = vector.extract_strided_slice %49 {offsets = [0, 0], sizes = [8, 256], strides = [1, 1]} : vector<8x384xbf16> to vector<8x256xbf16>
    %c9 = arith.constant 9 : index
    %c0_35 = arith.constant 0 : index
    %c0_36 = arith.constant 0 : index
    %51 = vector.load %arg2[%c9, %c0_35, %c0_36] : memref<36x24x8xbf16, #tpu.memory_space<vmem>>, vector<1x24x8xbf16>
    %52 = vector.shape_cast %51 : vector<1x24x8xbf16> to vector<24x8xbf16>
    %cst_37 = arith.constant dense<0.000000e+00> : vector<24x256xf32>
    %53 = tpu.matmul %52, %50, %cst_37 {dimension_numbers = #tpu.dot_dimension_numbers<[1], [0], [0], [1], [0, 0, 1, 1], [], []>} : vector<24x8xbf16>, vector<8x256xbf16>, vector<24x256xf32> -> vector<24x256xf32>
    %54 = arith.addf %47, %53 : vector<24x256xf32>
    %55 = vector.extract_strided_slice %49 {offsets = [0, 1], sizes = [8, 256], strides = [1, 1]} : vector<8x384xbf16> to vector<8x256xbf16>
    %c10 = arith.constant 10 : index
    %c0_38 = arith.constant 0 : index
    %c0_39 = arith.constant 0 : index
    %56 = vector.load %arg2[%c10, %c0_38, %c0_39] : memref<36x24x8xbf16, #tpu.memory_space<vmem>>, vector<1x24x8xbf16>
    %57 = vector.shape_cast %56 : vector<1x24x8xbf16> to vector<24x8xbf16>
    %cst_40 = arith.constant dense<0.000000e+00> : vector<24x256xf32>
    %58 = tpu.matmul %57, %55, %cst_40 {dimension_numbers = #tpu.dot_dimension_numbers<[1], [0], [0], [1], [0, 0, 1, 1], [], []>} : vector<24x8xbf16>, vector<8x256xbf16>, vector<24x256xf32> -> vector<24x256xf32>
    %59 = arith.addf %54, %58 : vector<24x256xf32>
    %60 = vector.extract_strided_slice %49 {offsets = [0, 2], sizes = [8, 256], strides = [1, 1]} : vector<8x384xbf16> to vector<8x256xbf16>
    %c11 = arith.constant 11 : index
    %c0_41 = arith.constant 0 : index
    %c0_42 = arith.constant 0 : index
    %61 = vector.load %arg2[%c11, %c0_41, %c0_42] : memref<36x24x8xbf16, #tpu.memory_space<vmem>>, vector<1x24x8xbf16>
    %62 = vector.shape_cast %61 : vector<1x24x8xbf16> to vector<24x8xbf16>
    %cst_43 = arith.constant dense<0.000000e+00> : vector<24x256xf32>
    %63 = tpu.matmul %62, %60, %cst_43 {dimension_numbers = #tpu.dot_dimension_numbers<[1], [0], [0], [1], [0, 0, 1, 1], [], []>} : vector<24x8xbf16>, vector<8x256xbf16>, vector<24x256xf32> -> vector<24x256xf32>
    %64 = arith.addf %59, %63 : vector<24x256xf32>
    %65 = vector.extract_strided_slice %49 {offsets = [0, 16], sizes = [8, 256], strides = [1, 1]} : vector<8x384xbf16> to vector<8x256xbf16>
    %c12 = arith.constant 12 : index
    %c0_44 = arith.constant 0 : index
    %c0_45 = arith.constant 0 : index
    %66 = vector.load %arg2[%c12, %c0_44, %c0_45] : memref<36x24x8xbf16, #tpu.memory_space<vmem>>, vector<1x24x8xbf16>
    %67 = vector.shape_cast %66 : vector<1x24x8xbf16> to vector<24x8xbf16>
    %cst_46 = arith.constant dense<0.000000e+00> : vector<24x256xf32>
    %68 = tpu.matmul %67, %65, %cst_46 {dimension_numbers = #tpu.dot_dimension_numbers<[1], [0], [0], [1], [0, 0, 1, 1], [], []>} : vector<24x8xbf16>, vector<8x256xbf16>, vector<24x256xf32> -> vector<24x256xf32>
    %69 = arith.addf %64, %68 : vector<24x256xf32>
    %70 = vector.extract_strided_slice %49 {offsets = [0, 17], sizes = [8, 256], strides = [1, 1]} : vector<8x384xbf16> to vector<8x256xbf16>
    %c13 = arith.constant 13 : index
    %c0_47 = arith.constant 0 : index
    %c0_48 = arith.constant 0 : index
    %71 = vector.load %arg2[%c13, %c0_47, %c0_48] : memref<36x24x8xbf16, #tpu.memory_space<vmem>>, vector<1x24x8xbf16>
    %72 = vector.shape_cast %71 : vector<1x24x8xbf16> to vector<24x8xbf16>
    %cst_49 = arith.constant dense<0.000000e+00> : vector<24x256xf32>
    %73 = tpu.matmul %72, %70, %cst_49 {dimension_numbers = #tpu.dot_dimension_numbers<[1], [0], [0], [1], [0, 0, 1, 1], [], []>} : vector<24x8xbf16>, vector<8x256xbf16>, vector<24x256xf32> -> vector<24x256xf32>
    %74 = arith.addf %69, %73 : vector<24x256xf32>
    %75 = vector.extract_strided_slice %49 {offsets = [0, 18], sizes = [8, 256], strides = [1, 1]} : vector<8x384xbf16> to vector<8x256xbf16>
    %c14 = arith.constant 14 : index
    %c0_50 = arith.constant 0 : index
    %c0_51 = arith.constant 0 : index
    %76 = vector.load %arg2[%c14, %c0_50, %c0_51] : memref<36x24x8xbf16, #tpu.memory_space<vmem>>, vector<1x24x8xbf16>
    %77 = vector.shape_cast %76 : vector<1x24x8xbf16> to vector<24x8xbf16>
    %cst_52 = arith.constant dense<0.000000e+00> : vector<24x256xf32>
    %78 = tpu.matmul %77, %75, %cst_52 {dimension_numbers = #tpu.dot_dimension_numbers<[1], [0], [0], [1], [0, 0, 1, 1], [], []>} : vector<24x8xbf16>, vector<8x256xbf16>, vector<24x256xf32> -> vector<24x256xf32>
    %79 = arith.addf %74, %78 : vector<24x256xf32>
    %80 = vector.extract_strided_slice %49 {offsets = [0, 32], sizes = [8, 256], strides = [1, 1]} : vector<8x384xbf16> to vector<8x256xbf16>
    %c15 = arith.constant 15 : index
    %c0_53 = arith.constant 0 : index
    %c0_54 = arith.constant 0 : index
    %81 = vector.load %arg2[%c15, %c0_53, %c0_54] : memref<36x24x8xbf16, #tpu.memory_space<vmem>>, vector<1x24x8xbf16>
    %82 = vector.shape_cast %81 : vector<1x24x8xbf16> to vector<24x8xbf16>
    %cst_55 = arith.constant dense<0.000000e+00> : vector<24x256xf32>
    %83 = tpu.matmul %82, %80, %cst_55 {dimension_numbers = #tpu.dot_dimension_numbers<[1], [0], [0], [1], [0, 0, 1, 1], [], []>} : vector<24x8xbf16>, vector<8x256xbf16>, vector<24x256xf32> -> vector<24x256xf32>
    %84 = arith.addf %79, %83 : vector<24x256xf32>
    %85 = vector.extract_strided_slice %49 {offsets = [0, 33], sizes = [8, 256], strides = [1, 1]} : vector<8x384xbf16> to vector<8x256xbf16>
    %c16 = arith.constant 16 : index
    %c0_56 = arith.constant 0 : index
    %c0_57 = arith.constant 0 : index
    %86 = vector.load %arg2[%c16, %c0_56, %c0_57] : memref<36x24x8xbf16, #tpu.memory_space<vmem>>, vector<1x24x8xbf16>
    %87 = vector.shape_cast %86 : vector<1x24x8xbf16> to vector<24x8xbf16>
    %cst_58 = arith.constant dense<0.000000e+00> : vector<24x256xf32>
    %88 = tpu.matmul %87, %85, %cst_58 {dimension_numbers = #tpu.dot_dimension_numbers<[1], [0], [0], [1], [0, 0, 1, 1], [], []>} : vector<24x8xbf16>, vector<8x256xbf16>, vector<24x256xf32> -> vector<24x256xf32>
    %89 = arith.addf %84, %88 : vector<24x256xf32>
    %90 = vector.extract_strided_slice %49 {offsets = [0, 34], sizes = [8, 256], strides = [1, 1]} : vector<8x384xbf16> to vector<8x256xbf16>
    %c17 = arith.constant 17 : index
    %c0_59 = arith.constant 0 : index
    %c0_60 = arith.constant 0 : index
    %91 = vector.load %arg2[%c17, %c0_59, %c0_60] : memref<36x24x8xbf16, #tpu.memory_space<vmem>>, vector<1x24x8xbf16>
    %92 = vector.shape_cast %91 : vector<1x24x8xbf16> to vector<24x8xbf16>
    %cst_61 = arith.constant dense<0.000000e+00> : vector<24x256xf32>
    %93 = tpu.matmul %92, %90, %cst_61 {dimension_numbers = #tpu.dot_dimension_numbers<[1], [0], [0], [1], [0, 0, 1, 1], [], []>} : vector<24x8xbf16>, vector<8x256xbf16>, vector<24x256xf32> -> vector<24x256xf32>
    %94 = arith.addf %89, %93 : vector<24x256xf32>
    %c0_62 = arith.constant 0 : index
    %c2_63 = arith.constant 2 : index
    %c0_64 = arith.constant 0 : index
    %c0_65 = arith.constant 0 : index
    %95 = vector.load %arg1[%c0_62, %c2_63, %c0_64, %c0_65] : memref<1x4x8x384xbf16, #tpu.memory_space<vmem>>, vector<1x1x8x384xbf16>
    %96 = vector.shape_cast %95 : vector<1x1x8x384xbf16> to vector<8x384xbf16>
    %97 = vector.extract_strided_slice %96 {offsets = [0, 0], sizes = [8, 256], strides = [1, 1]} : vector<8x384xbf16> to vector<8x256xbf16>
    %c18 = arith.constant 18 : index
    %c0_66 = arith.constant 0 : index
    %c0_67 = arith.constant 0 : index
    %98 = vector.load %arg2[%c18, %c0_66, %c0_67] : memref<36x24x8xbf16, #tpu.memory_space<vmem>>, vector<1x24x8xbf16>
    %99 = vector.shape_cast %98 : vector<1x24x8xbf16> to vector<24x8xbf16>
    %cst_68 = arith.constant dense<0.000000e+00> : vector<24x256xf32>
    %100 = tpu.matmul %99, %97, %cst_68 {dimension_numbers = #tpu.dot_dimension_numbers<[1], [0], [0], [1], [0, 0, 1, 1], [], []>} : vector<24x8xbf16>, vector<8x256xbf16>, vector<24x256xf32> -> vector<24x256xf32>
    %101 = arith.addf %94, %100 : vector<24x256xf32>
    %102 = vector.extract_strided_slice %96 {offsets = [0, 1], sizes = [8, 256], strides = [1, 1]} : vector<8x384xbf16> to vector<8x256xbf16>
    %c19 = arith.constant 19 : index
    %c0_69 = arith.constant 0 : index
    %c0_70 = arith.constant 0 : index
    %103 = vector.load %arg2[%c19, %c0_69, %c0_70] : memref<36x24x8xbf16, #tpu.memory_space<vmem>>, vector<1x24x8xbf16>
    %104 = vector.shape_cast %103 : vector<1x24x8xbf16> to vector<24x8xbf16>
    %cst_71 = arith.constant dense<0.000000e+00> : vector<24x256xf32>
    %105 = tpu.matmul %104, %102, %cst_71 {dimension_numbers = #tpu.dot_dimension_numbers<[1], [0], [0], [1], [0, 0, 1, 1], [], []>} : vector<24x8xbf16>, vector<8x256xbf16>, vector<24x256xf32> -> vector<24x256xf32>
    %106 = arith.addf %101, %105 : vector<24x256xf32>
    %107 = vector.extract_strided_slice %96 {offsets = [0, 2], sizes = [8, 256], strides = [1, 1]} : vector<8x384xbf16> to vector<8x256xbf16>
    %c20 = arith.constant 20 : index
    %c0_72 = arith.constant 0 : index
    %c0_73 = arith.constant 0 : index
    %108 = vector.load %arg2[%c20, %c0_72, %c0_73] : memref<36x24x8xbf16, #tpu.memory_space<vmem>>, vector<1x24x8xbf16>
    %109 = vector.shape_cast %108 : vector<1x24x8xbf16> to vector<24x8xbf16>
    %cst_74 = arith.constant dense<0.000000e+00> : vector<24x256xf32>
    %110 = tpu.matmul %109, %107, %cst_74 {dimension_numbers = #tpu.dot_dimension_numbers<[1], [0], [0], [1], [0, 0, 1, 1], [], []>} : vector<24x8xbf16>, vector<8x256xbf16>, vector<24x256xf32> -> vector<24x256xf32>
    %111 = arith.addf %106, %110 : vector<24x256xf32>
    %112 = vector.extract_strided_slice %96 {offsets = [0, 16], sizes = [8, 256], strides = [1, 1]} : vector<8x384xbf16> to vector<8x256xbf16>
    %c21 = arith.constant 21 : index
    %c0_75 = arith.constant 0 : index
    %c0_76 = arith.constant 0 : index
    %113 = vector.load %arg2[%c21, %c0_75, %c0_76] : memref<36x24x8xbf16, #tpu.memory_space<vmem>>, vector<1x24x8xbf16>
    %114 = vector.shape_cast %113 : vector<1x24x8xbf16> to vector<24x8xbf16>
    %cst_77 = arith.constant dense<0.000000e+00> : vector<24x256xf32>
    %115 = tpu.matmul %114, %112, %cst_77 {dimension_numbers = #tpu.dot_dimension_numbers<[1], [0], [0], [1], [0, 0, 1, 1], [], []>} : vector<24x8xbf16>, vector<8x256xbf16>, vector<24x256xf32> -> vector<24x256xf32>
    %116 = arith.addf %111, %115 : vector<24x256xf32>
    %117 = vector.extract_strided_slice %96 {offsets = [0, 17], sizes = [8, 256], strides = [1, 1]} : vector<8x384xbf16> to vector<8x256xbf16>
    %c22 = arith.constant 22 : index
    %c0_78 = arith.constant 0 : index
    %c0_79 = arith.constant 0 : index
    %118 = vector.load %arg2[%c22, %c0_78, %c0_79] : memref<36x24x8xbf16, #tpu.memory_space<vmem>>, vector<1x24x8xbf16>
    %119 = vector.shape_cast %118 : vector<1x24x8xbf16> to vector<24x8xbf16>
    %cst_80 = arith.constant dense<0.000000e+00> : vector<24x256xf32>
    %120 = tpu.matmul %119, %117, %cst_80 {dimension_numbers = #tpu.dot_dimension_numbers<[1], [0], [0], [1], [0, 0, 1, 1], [], []>} : vector<24x8xbf16>, vector<8x256xbf16>, vector<24x256xf32> -> vector<24x256xf32>
    %121 = arith.addf %116, %120 : vector<24x256xf32>
    %122 = vector.extract_strided_slice %96 {offsets = [0, 18], sizes = [8, 256], strides = [1, 1]} : vector<8x384xbf16> to vector<8x256xbf16>
    %c23 = arith.constant 23 : index
    %c0_81 = arith.constant 0 : index
    %c0_82 = arith.constant 0 : index
    %123 = vector.load %arg2[%c23, %c0_81, %c0_82] : memref<36x24x8xbf16, #tpu.memory_space<vmem>>, vector<1x24x8xbf16>
    %124 = vector.shape_cast %123 : vector<1x24x8xbf16> to vector<24x8xbf16>
    %cst_83 = arith.constant dense<0.000000e+00> : vector<24x256xf32>
    %125 = tpu.matmul %124, %122, %cst_83 {dimension_numbers = #tpu.dot_dimension_numbers<[1], [0], [0], [1], [0, 0, 1, 1], [], []>} : vector<24x8xbf16>, vector<8x256xbf16>, vector<24x256xf32> -> vector<24x256xf32>
    %126 = arith.addf %121, %125 : vector<24x256xf32>
    %127 = vector.extract_strided_slice %96 {offsets = [0, 32], sizes = [8, 256], strides = [1, 1]} : vector<8x384xbf16> to vector<8x256xbf16>
    %c24 = arith.constant 24 : index
    %c0_84 = arith.constant 0 : index
    %c0_85 = arith.constant 0 : index
    %128 = vector.load %arg2[%c24, %c0_84, %c0_85] : memref<36x24x8xbf16, #tpu.memory_space<vmem>>, vector<1x24x8xbf16>
    %129 = vector.shape_cast %128 : vector<1x24x8xbf16> to vector<24x8xbf16>
    %cst_86 = arith.constant dense<0.000000e+00> : vector<24x256xf32>
    %130 = tpu.matmul %129, %127, %cst_86 {dimension_numbers = #tpu.dot_dimension_numbers<[1], [0], [0], [1], [0, 0, 1, 1], [], []>} : vector<24x8xbf16>, vector<8x256xbf16>, vector<24x256xf32> -> vector<24x256xf32>
    %131 = arith.addf %126, %130 : vector<24x256xf32>
    %132 = vector.extract_strided_slice %96 {offsets = [0, 33], sizes = [8, 256], strides = [1, 1]} : vector<8x384xbf16> to vector<8x256xbf16>
    %c25 = arith.constant 25 : index
    %c0_87 = arith.constant 0 : index
    %c0_88 = arith.constant 0 : index
    %133 = vector.load %arg2[%c25, %c0_87, %c0_88] : memref<36x24x8xbf16, #tpu.memory_space<vmem>>, vector<1x24x8xbf16>
    %134 = vector.shape_cast %133 : vector<1x24x8xbf16> to vector<24x8xbf16>
    %cst_89 = arith.constant dense<0.000000e+00> : vector<24x256xf32>
    %135 = tpu.matmul %134, %132, %cst_89 {dimension_numbers = #tpu.dot_dimension_numbers<[1], [0], [0], [1], [0, 0, 1, 1], [], []>} : vector<24x8xbf16>, vector<8x256xbf16>, vector<24x256xf32> -> vector<24x256xf32>
    %136 = arith.addf %131, %135 : vector<24x256xf32>
    %137 = vector.extract_strided_slice %96 {offsets = [0, 34], sizes = [8, 256], strides = [1, 1]} : vector<8x384xbf16> to vector<8x256xbf16>
    %c26 = arith.constant 26 : index
    %c0_90 = arith.constant 0 : index
    %c0_91 = arith.constant 0 : index
    %138 = vector.load %arg2[%c26, %c0_90, %c0_91] : memref<36x24x8xbf16, #tpu.memory_space<vmem>>, vector<1x24x8xbf16>
    %139 = vector.shape_cast %138 : vector<1x24x8xbf16> to vector<24x8xbf16>
    %cst_92 = arith.constant dense<0.000000e+00> : vector<24x256xf32>
    %140 = tpu.matmul %139, %137, %cst_92 {dimension_numbers = #tpu.dot_dimension_numbers<[1], [0], [0], [1], [0, 0, 1, 1], [], []>} : vector<24x8xbf16>, vector<8x256xbf16>, vector<24x256xf32> -> vector<24x256xf32>
    %141 = arith.addf %136, %140 : vector<24x256xf32>
    %c0_93 = arith.constant 0 : index
    %c3_94 = arith.constant 3 : index
    %c0_95 = arith.constant 0 : index
    %c0_96 = arith.constant 0 : index
    %142 = vector.load %arg1[%c0_93, %c3_94, %c0_95, %c0_96] : memref<1x4x8x384xbf16, #tpu.memory_space<vmem>>, vector<1x1x8x384xbf16>
    %143 = vector.shape_cast %142 : vector<1x1x8x384xbf16> to vector<8x384xbf16>
    %144 = vector.extract_strided_slice %143 {offsets = [0, 0], sizes = [8, 256], strides = [1, 1]} : vector<8x384xbf16> to vector<8x256xbf16>
    %c27 = arith.constant 27 : index
    %c0_97 = arith.constant 0 : index
    %c0_98 = arith.constant 0 : index
    %145 = vector.load %arg2[%c27, %c0_97, %c0_98] : memref<36x24x8xbf16, #tpu.memory_space<vmem>>, vector<1x24x8xbf16>
    %146 = vector.shape_cast %145 : vector<1x24x8xbf16> to vector<24x8xbf16>
    %cst_99 = arith.constant dense<0.000000e+00> : vector<24x256xf32>
    %147 = tpu.matmul %146, %144, %cst_99 {dimension_numbers = #tpu.dot_dimension_numbers<[1], [0], [0], [1], [0, 0, 1, 1], [], []>} : vector<24x8xbf16>, vector<8x256xbf16>, vector<24x256xf32> -> vector<24x256xf32>
    %148 = arith.addf %141, %147 : vector<24x256xf32>
    %149 = vector.extract_strided_slice %143 {offsets = [0, 1], sizes = [8, 256], strides = [1, 1]} : vector<8x384xbf16> to vector<8x256xbf16>
    %c28 = arith.constant 28 : index
    %c0_100 = arith.constant 0 : index
    %c0_101 = arith.constant 0 : index
    %150 = vector.load %arg2[%c28, %c0_100, %c0_101] : memref<36x24x8xbf16, #tpu.memory_space<vmem>>, vector<1x24x8xbf16>
    %151 = vector.shape_cast %150 : vector<1x24x8xbf16> to vector<24x8xbf16>
    %cst_102 = arith.constant dense<0.000000e+00> : vector<24x256xf32>
    %152 = tpu.matmul %151, %149, %cst_102 {dimension_numbers = #tpu.dot_dimension_numbers<[1], [0], [0], [1], [0, 0, 1, 1], [], []>} : vector<24x8xbf16>, vector<8x256xbf16>, vector<24x256xf32> -> vector<24x256xf32>
    %153 = arith.addf %148, %152 : vector<24x256xf32>
    %154 = vector.extract_strided_slice %143 {offsets = [0, 2], sizes = [8, 256], strides = [1, 1]} : vector<8x384xbf16> to vector<8x256xbf16>
    %c29 = arith.constant 29 : index
    %c0_103 = arith.constant 0 : index
    %c0_104 = arith.constant 0 : index
    %155 = vector.load %arg2[%c29, %c0_103, %c0_104] : memref<36x24x8xbf16, #tpu.memory_space<vmem>>, vector<1x24x8xbf16>
    %156 = vector.shape_cast %155 : vector<1x24x8xbf16> to vector<24x8xbf16>
    %cst_105 = arith.constant dense<0.000000e+00> : vector<24x256xf32>
    %157 = tpu.matmul %156, %154, %cst_105 {dimension_numbers = #tpu.dot_dimension_numbers<[1], [0], [0], [1], [0, 0, 1, 1], [], []>} : vector<24x8xbf16>, vector<8x256xbf16>, vector<24x256xf32> -> vector<24x256xf32>
    %158 = arith.addf %153, %157 : vector<24x256xf32>
    %159 = vector.extract_strided_slice %143 {offsets = [0, 16], sizes = [8, 256], strides = [1, 1]} : vector<8x384xbf16> to vector<8x256xbf16>
    %c30 = arith.constant 30 : index
    %c0_106 = arith.constant 0 : index
    %c0_107 = arith.constant 0 : index
    %160 = vector.load %arg2[%c30, %c0_106, %c0_107] : memref<36x24x8xbf16, #tpu.memory_space<vmem>>, vector<1x24x8xbf16>
    %161 = vector.shape_cast %160 : vector<1x24x8xbf16> to vector<24x8xbf16>
    %cst_108 = arith.constant dense<0.000000e+00> : vector<24x256xf32>
    %162 = tpu.matmul %161, %159, %cst_108 {dimension_numbers = #tpu.dot_dimension_numbers<[1], [0], [0], [1], [0, 0, 1, 1], [], []>} : vector<24x8xbf16>, vector<8x256xbf16>, vector<24x256xf32> -> vector<24x256xf32>
    %163 = arith.addf %158, %162 : vector<24x256xf32>
    %164 = vector.extract_strided_slice %143 {offsets = [0, 17], sizes = [8, 256], strides = [1, 1]} : vector<8x384xbf16> to vector<8x256xbf16>
    %c31 = arith.constant 31 : index
    %c0_109 = arith.constant 0 : index
    %c0_110 = arith.constant 0 : index
    %165 = vector.load %arg2[%c31, %c0_109, %c0_110] : memref<36x24x8xbf16, #tpu.memory_space<vmem>>, vector<1x24x8xbf16>
    %166 = vector.shape_cast %165 : vector<1x24x8xbf16> to vector<24x8xbf16>
    %cst_111 = arith.constant dense<0.000000e+00> : vector<24x256xf32>
    %167 = tpu.matmul %166, %164, %cst_111 {dimension_numbers = #tpu.dot_dimension_numbers<[1], [0], [0], [1], [0, 0, 1, 1], [], []>} : vector<24x8xbf16>, vector<8x256xbf16>, vector<24x256xf32> -> vector<24x256xf32>
    %168 = arith.addf %163, %167 : vector<24x256xf32>
    %169 = vector.extract_strided_slice %143 {offsets = [0, 18], sizes = [8, 256], strides = [1, 1]} : vector<8x384xbf16> to vector<8x256xbf16>
    %c32 = arith.constant 32 : index
    %c0_112 = arith.constant 0 : index
    %c0_113 = arith.constant 0 : index
    %170 = vector.load %arg2[%c32, %c0_112, %c0_113] : memref<36x24x8xbf16, #tpu.memory_space<vmem>>, vector<1x24x8xbf16>
    %171 = vector.shape_cast %170 : vector<1x24x8xbf16> to vector<24x8xbf16>
    %cst_114 = arith.constant dense<0.000000e+00> : vector<24x256xf32>
    %172 = tpu.matmul %171, %169, %cst_114 {dimension_numbers = #tpu.dot_dimension_numbers<[1], [0], [0], [1], [0, 0, 1, 1], [], []>} : vector<24x8xbf16>, vector<8x256xbf16>, vector<24x256xf32> -> vector<24x256xf32>
    %173 = arith.addf %168, %172 : vector<24x256xf32>
    %174 = vector.extract_strided_slice %143 {offsets = [0, 32], sizes = [8, 256], strides = [1, 1]} : vector<8x384xbf16> to vector<8x256xbf16>
    %c33 = arith.constant 33 : index
    %c0_115 = arith.constant 0 : index
    %c0_116 = arith.constant 0 : index
    %175 = vector.load %arg2[%c33, %c0_115, %c0_116] : memref<36x24x8xbf16, #tpu.memory_space<vmem>>, vector<1x24x8xbf16>
    %176 = vector.shape_cast %175 : vector<1x24x8xbf16> to vector<24x8xbf16>
    %cst_117 = arith.constant dense<0.000000e+00> : vector<24x256xf32>
    %177 = tpu.matmul %176, %174, %cst_117 {dimension_numbers = #tpu.dot_dimension_numbers<[1], [0], [0], [1], [0, 0, 1, 1], [], []>} : vector<24x8xbf16>, vector<8x256xbf16>, vector<24x256xf32> -> vector<24x256xf32>
    %178 = arith.addf %173, %177 : vector<24x256xf32>
    %179 = vector.extract_strided_slice %143 {offsets = [0, 33], sizes = [8, 256], strides = [1, 1]} : vector<8x384xbf16> to vector<8x256xbf16>
    %c34 = arith.constant 34 : index
    %c0_118 = arith.constant 0 : index
    %c0_119 = arith.constant 0 : index
    %180 = vector.load %arg2[%c34, %c0_118, %c0_119] : memref<36x24x8xbf16, #tpu.memory_space<vmem>>, vector<1x24x8xbf16>
    %181 = vector.shape_cast %180 : vector<1x24x8xbf16> to vector<24x8xbf16>
    %cst_120 = arith.constant dense<0.000000e+00> : vector<24x256xf32>
    %182 = tpu.matmul %181, %179, %cst_120 {dimension_numbers = #tpu.dot_dimension_numbers<[1], [0], [0], [1], [0, 0, 1, 1], [], []>} : vector<24x8xbf16>, vector<8x256xbf16>, vector<24x256xf32> -> vector<24x256xf32>
    %183 = arith.addf %178, %182 : vector<24x256xf32>
    %184 = vector.extract_strided_slice %143 {offsets = [0, 34], sizes = [8, 256], strides = [1, 1]} : vector<8x384xbf16> to vector<8x256xbf16>
    %c35 = arith.constant 35 : index
    %c0_121 = arith.constant 0 : index
    %c0_122 = arith.constant 0 : index
    %185 = vector.load %arg2[%c35, %c0_121, %c0_122] : memref<36x24x8xbf16, #tpu.memory_space<vmem>>, vector<1x24x8xbf16>
    %186 = vector.shape_cast %185 : vector<1x24x8xbf16> to vector<24x8xbf16>
    %cst_123 = arith.constant dense<0.000000e+00> : vector<24x256xf32>
    %187 = tpu.matmul %186, %184, %cst_123 {dimension_numbers = #tpu.dot_dimension_numbers<[1], [0], [0], [1], [0, 0, 1, 1], [], []>} : vector<24x8xbf16>, vector<8x256xbf16>, vector<24x256xf32> -> vector<24x256xf32>
    %188 = arith.addf %183, %187 : vector<24x256xf32>
    %c0_124 = arith.constant 0 : index
    %c0_125 = arith.constant 0 : index
    %189 = vector.load %arg3[%c0_124, %c0_125] : memref<24x1xf32, #tpu.memory_space<vmem>>, vector<24x1xf32>
    %190 = vector.broadcast %189 : vector<24x1xf32> to vector<24x256xf32>
    %191 = arith.addf %188, %190 : vector<24x256xf32>
    %192 = arith.negf %191 : vector<24x256xf32>
    %193 = math.exp %192 : vector<24x256xf32>
    %cst_126 = arith.constant 1.000000e+00 : f32
    %194 = vector.broadcast %cst_126 : f32 to vector<24x256xf32>
    %195 = arith.addf %194, %193 : vector<24x256xf32>
    %196 = arith.divf %194, %195 : vector<24x256xf32>
    %197 = vector.extract_strided_slice %196 {offsets = [0, 0], sizes = [6, 256], strides = [1, 1]} : vector<24x256xf32> to vector<6x256xf32>
    %198 = vector.extract_strided_slice %196 {offsets = [6, 0], sizes = [6, 256], strides = [1, 1]} : vector<24x256xf32> to vector<6x256xf32>
    %199 = arith.addf %197, %198 : vector<6x256xf32>
    %200 = vector.extract_strided_slice %196 {offsets = [12, 0], sizes = [6, 256], strides = [1, 1]} : vector<24x256xf32> to vector<6x256xf32>
    %201 = arith.addf %199, %200 : vector<6x256xf32>
    %202 = vector.extract_strided_slice %196 {offsets = [18, 0], sizes = [6, 256], strides = [1, 1]} : vector<24x256xf32> to vector<6x256xf32>
    %203 = arith.addf %201, %202 : vector<6x256xf32>
    %cst_127 = arith.constant 2.500000e-01 : f32
    %204 = vector.broadcast %cst_127 : f32 to vector<6x256xf32>
    %205 = arith.mulf %204, %203 : vector<6x256xf32>
    %206 = arith.truncf %205 : vector<6x256xf32> to vector<6x256xbf16>
    %c0_128 = arith.constant 0 : index
    %c0_129 = arith.constant 0 : index
    %207 = vector.load %arg4[%c0_128, %c0_129] : memref<6x256xbf16, #tpu.memory_space<vmem>>, vector<6x256xbf16>
    tpu.vector_store %arg4[%c0_128, %c0_129], %206 {strides = array<i32>} : memref<6x256xbf16, #tpu.memory_space<vmem>>, vector<6x256xbf16>,
    return
  }
  func.func @transform_0(%arg0: i32) -> (i32, i32, i32, i32) {
    %c0_i32 = arith.constant 0 : i32
    %c0_i32_0 = arith.constant 0 : i32
    %c0_i32_1 = arith.constant 0 : i32
    %c0_i32_2 = arith.constant 0 : i32
    return %arg0, %c0_i32, %c0_i32_0, %c0_i32_1 : i32, i32, i32, i32
  }
  func.func @transform_1(%arg0: i32) -> (i32, i32, i32) {
    %c0_i32 = arith.constant 0 : i32
    %c0_i32_0 = arith.constant 0 : i32
    %c0_i32_1 = arith.constant 0 : i32
    %c0_i32_2 = arith.constant 0 : i32
    return %c0_i32, %c0_i32_0, %c0_i32_1 : i32, i32, i32
  }
  func.func @transform_2(%arg0: i32) -> (i32, i32) {
    %c0_i32 = arith.constant 0 : i32
    %c0_i32_0 = arith.constant 0 : i32
    %c0_i32_1 = arith.constant 0 : i32
    return %c0_i32, %c0_i32_0 : i32, i32
  }
  func.func @transform_3(%arg0: i32) -> (i32, i32) {
    %c0_i32 = arith.constant 0 : i32
    %c0_i32_0 = arith.constant 0 : i32
    return %c0_i32, %arg0 : i32, i32
  }
}

module attributes {stable_mosaic.version = 11 : i64} {
  func.func @_conv_sigmoid_pool_kernel(%arg0: i32, %arg1: memref<1x4x8x256xbf16, #tpu.memory_space<vmem>>, %arg2: memref<36x64x8xbf16, #tpu.memory_space<vmem>>, %arg3: memref<64x1xf32, #tpu.memory_space<vmem>>, %arg4: memref<16x128xbf16, #tpu.memory_space<vmem>>) attributes {dimension_semantics = [#tpu.dimension_semantics<parallel>], iteration_bounds = array<i64: 2>, scalar_prefetch = 0 : i64, scratch_operands = 0 : i64, tpu.core_type = #tpu.core_type<tc>, window_params = [{transform_indices = @transform_0, window_bounds = array<i64: 1, 4, 8, 256>}, {pipeline_mode = #tpu.pipeline_mode<synchronous>, transform_indices = @transform_1, window_bounds = array<i64: 36, 64, 8>}, {pipeline_mode = #tpu.pipeline_mode<synchronous>, transform_indices = @transform_2, window_bounds = array<i64: 64, 1>}, {transform_indices = @transform_3, window_bounds = array<i64: 16, 128>}]} {
    %cst = arith.constant 0.000000e+00 : f32
    %0 = vector.broadcast %cst : f32 to vector<64x128xf32>
    %c0 = arith.constant 0 : index
    %c0_0 = arith.constant 0 : index
    %c0_1 = arith.constant 0 : index
    %c0_2 = arith.constant 0 : index
    %1 = vector.load %arg1[%c0, %c0_0, %c0_1, %c0_2] : memref<1x4x8x256xbf16, #tpu.memory_space<vmem>>, vector<1x1x8x256xbf16>
    %2 = vector.shape_cast %1 : vector<1x1x8x256xbf16> to vector<8x256xbf16>
    %3 = vector.extract_strided_slice %2 {offsets = [0, 0], sizes = [8, 128], strides = [1, 1]} : vector<8x256xbf16> to vector<8x128xbf16>
    %c0_3 = arith.constant 0 : index
    %c0_4 = arith.constant 0 : index
    %c0_5 = arith.constant 0 : index
    %4 = vector.load %arg2[%c0_3, %c0_4, %c0_5] : memref<36x64x8xbf16, #tpu.memory_space<vmem>>, vector<1x64x8xbf16>
    %5 = vector.shape_cast %4 : vector<1x64x8xbf16> to vector<64x8xbf16>
    %cst_6 = arith.constant dense<0.000000e+00> : vector<64x128xf32>
    %6 = tpu.matmul %5, %3, %cst_6 {dimension_numbers = #tpu.dot_dimension_numbers<[1], [0], [0], [1], [0, 0, 1, 1], [], []>} : vector<64x8xbf16>, vector<8x128xbf16>, vector<64x128xf32> -> vector<64x128xf32>
    %7 = arith.addf %0, %6 : vector<64x128xf32>
    %8 = vector.extract_strided_slice %2 {offsets = [0, 1], sizes = [8, 128], strides = [1, 1]} : vector<8x256xbf16> to vector<8x128xbf16>
    %c1 = arith.constant 1 : index
    %c0_7 = arith.constant 0 : index
    %c0_8 = arith.constant 0 : index
    %9 = vector.load %arg2[%c1, %c0_7, %c0_8] : memref<36x64x8xbf16, #tpu.memory_space<vmem>>, vector<1x64x8xbf16>
    %10 = vector.shape_cast %9 : vector<1x64x8xbf16> to vector<64x8xbf16>
    %cst_9 = arith.constant dense<0.000000e+00> : vector<64x128xf32>
    %11 = tpu.matmul %10, %8, %cst_9 {dimension_numbers = #tpu.dot_dimension_numbers<[1], [0], [0], [1], [0, 0, 1, 1], [], []>} : vector<64x8xbf16>, vector<8x128xbf16>, vector<64x128xf32> -> vector<64x128xf32>
    %12 = arith.addf %7, %11 : vector<64x128xf32>
    %13 = vector.extract_strided_slice %2 {offsets = [0, 2], sizes = [8, 128], strides = [1, 1]} : vector<8x256xbf16> to vector<8x128xbf16>
    %c2 = arith.constant 2 : index
    %c0_10 = arith.constant 0 : index
    %c0_11 = arith.constant 0 : index
    %14 = vector.load %arg2[%c2, %c0_10, %c0_11] : memref<36x64x8xbf16, #tpu.memory_space<vmem>>, vector<1x64x8xbf16>
    %15 = vector.shape_cast %14 : vector<1x64x8xbf16> to vector<64x8xbf16>
    %cst_12 = arith.constant dense<0.000000e+00> : vector<64x128xf32>
    %16 = tpu.matmul %15, %13, %cst_12 {dimension_numbers = #tpu.dot_dimension_numbers<[1], [0], [0], [1], [0, 0, 1, 1], [], []>} : vector<64x8xbf16>, vector<8x128xbf16>, vector<64x128xf32> -> vector<64x128xf32>
    %17 = arith.addf %12, %16 : vector<64x128xf32>
    %18 = vector.extract_strided_slice %2 {offsets = [0, 7], sizes = [8, 128], strides = [1, 1]} : vector<8x256xbf16> to vector<8x128xbf16>
    %c3 = arith.constant 3 : index
    %c0_13 = arith.constant 0 : index
    %c0_14 = arith.constant 0 : index
    %19 = vector.load %arg2[%c3, %c0_13, %c0_14] : memref<36x64x8xbf16, #tpu.memory_space<vmem>>, vector<1x64x8xbf16>
    %20 = vector.shape_cast %19 : vector<1x64x8xbf16> to vector<64x8xbf16>
    %cst_15 = arith.constant dense<0.000000e+00> : vector<64x128xf32>
    %21 = tpu.matmul %20, %18, %cst_15 {dimension_numbers = #tpu.dot_dimension_numbers<[1], [0], [0], [1], [0, 0, 1, 1], [], []>} : vector<64x8xbf16>, vector<8x128xbf16>, vector<64x128xf32> -> vector<64x128xf32>
    %22 = arith.addf %17, %21 : vector<64x128xf32>
    %23 = vector.extract_strided_slice %2 {offsets = [0, 8], sizes = [8, 128], strides = [1, 1]} : vector<8x256xbf16> to vector<8x128xbf16>
    %c4 = arith.constant 4 : index
    %c0_16 = arith.constant 0 : index
    %c0_17 = arith.constant 0 : index
    %24 = vector.load %arg2[%c4, %c0_16, %c0_17] : memref<36x64x8xbf16, #tpu.memory_space<vmem>>, vector<1x64x8xbf16>
    %25 = vector.shape_cast %24 : vector<1x64x8xbf16> to vector<64x8xbf16>
    %cst_18 = arith.constant dense<0.000000e+00> : vector<64x128xf32>
    %26 = tpu.matmul %25, %23, %cst_18 {dimension_numbers = #tpu.dot_dimension_numbers<[1], [0], [0], [1], [0, 0, 1, 1], [], []>} : vector<64x8xbf16>, vector<8x128xbf16>, vector<64x128xf32> -> vector<64x128xf32>
    %27 = arith.addf %22, %26 : vector<64x128xf32>
    %28 = vector.extract_strided_slice %2 {offsets = [0, 9], sizes = [8, 128], strides = [1, 1]} : vector<8x256xbf16> to vector<8x128xbf16>
    %c5 = arith.constant 5 : index
    %c0_19 = arith.constant 0 : index
    %c0_20 = arith.constant 0 : index
    %29 = vector.load %arg2[%c5, %c0_19, %c0_20] : memref<36x64x8xbf16, #tpu.memory_space<vmem>>, vector<1x64x8xbf16>
    %30 = vector.shape_cast %29 : vector<1x64x8xbf16> to vector<64x8xbf16>
    %cst_21 = arith.constant dense<0.000000e+00> : vector<64x128xf32>
    %31 = tpu.matmul %30, %28, %cst_21 {dimension_numbers = #tpu.dot_dimension_numbers<[1], [0], [0], [1], [0, 0, 1, 1], [], []>} : vector<64x8xbf16>, vector<8x128xbf16>, vector<64x128xf32> -> vector<64x128xf32>
    %32 = arith.addf %27, %31 : vector<64x128xf32>
    %33 = vector.extract_strided_slice %2 {offsets = [0, 14], sizes = [8, 128], strides = [1, 1]} : vector<8x256xbf16> to vector<8x128xbf16>
    %c6 = arith.constant 6 : index
    %c0_22 = arith.constant 0 : index
    %c0_23 = arith.constant 0 : index
    %34 = vector.load %arg2[%c6, %c0_22, %c0_23] : memref<36x64x8xbf16, #tpu.memory_space<vmem>>, vector<1x64x8xbf16>
    %35 = vector.shape_cast %34 : vector<1x64x8xbf16> to vector<64x8xbf16>
    %cst_24 = arith.constant dense<0.000000e+00> : vector<64x128xf32>
    %36 = tpu.matmul %35, %33, %cst_24 {dimension_numbers = #tpu.dot_dimension_numbers<[1], [0], [0], [1], [0, 0, 1, 1], [], []>} : vector<64x8xbf16>, vector<8x128xbf16>, vector<64x128xf32> -> vector<64x128xf32>
    %37 = arith.addf %32, %36 : vector<64x128xf32>
    %38 = vector.extract_strided_slice %2 {offsets = [0, 15], sizes = [8, 128], strides = [1, 1]} : vector<8x256xbf16> to vector<8x128xbf16>
    %c7 = arith.constant 7 : index
    %c0_25 = arith.constant 0 : index
    %c0_26 = arith.constant 0 : index
    %39 = vector.load %arg2[%c7, %c0_25, %c0_26] : memref<36x64x8xbf16, #tpu.memory_space<vmem>>, vector<1x64x8xbf16>
    %40 = vector.shape_cast %39 : vector<1x64x8xbf16> to vector<64x8xbf16>
    %cst_27 = arith.constant dense<0.000000e+00> : vector<64x128xf32>
    %41 = tpu.matmul %40, %38, %cst_27 {dimension_numbers = #tpu.dot_dimension_numbers<[1], [0], [0], [1], [0, 0, 1, 1], [], []>} : vector<64x8xbf16>, vector<8x128xbf16>, vector<64x128xf32> -> vector<64x128xf32>
    %42 = arith.addf %37, %41 : vector<64x128xf32>
    %43 = vector.extract_strided_slice %2 {offsets = [0, 16], sizes = [8, 128], strides = [1, 1]} : vector<8x256xbf16> to vector<8x128xbf16>
    %c8 = arith.constant 8 : index
    %c0_28 = arith.constant 0 : index
    %c0_29 = arith.constant 0 : index
    %44 = vector.load %arg2[%c8, %c0_28, %c0_29] : memref<36x64x8xbf16, #tpu.memory_space<vmem>>, vector<1x64x8xbf16>
    %45 = vector.shape_cast %44 : vector<1x64x8xbf16> to vector<64x8xbf16>
    %cst_30 = arith.constant dense<0.000000e+00> : vector<64x128xf32>
    %46 = tpu.matmul %45, %43, %cst_30 {dimension_numbers = #tpu.dot_dimension_numbers<[1], [0], [0], [1], [0, 0, 1, 1], [], []>} : vector<64x8xbf16>, vector<8x128xbf16>, vector<64x128xf32> -> vector<64x128xf32>
    %47 = arith.addf %42, %46 : vector<64x128xf32>
    %c0_31 = arith.constant 0 : index
    %c1_32 = arith.constant 1 : index
    %c0_33 = arith.constant 0 : index
    %c0_34 = arith.constant 0 : index
    %48 = vector.load %arg1[%c0_31, %c1_32, %c0_33, %c0_34] : memref<1x4x8x256xbf16, #tpu.memory_space<vmem>>, vector<1x1x8x256xbf16>
    %49 = vector.shape_cast %48 : vector<1x1x8x256xbf16> to vector<8x256xbf16>
    %50 = vector.extract_strided_slice %49 {offsets = [0, 0], sizes = [8, 128], strides = [1, 1]} : vector<8x256xbf16> to vector<8x128xbf16>
    %c9 = arith.constant 9 : index
    %c0_35 = arith.constant 0 : index
    %c0_36 = arith.constant 0 : index
    %51 = vector.load %arg2[%c9, %c0_35, %c0_36] : memref<36x64x8xbf16, #tpu.memory_space<vmem>>, vector<1x64x8xbf16>
    %52 = vector.shape_cast %51 : vector<1x64x8xbf16> to vector<64x8xbf16>
    %cst_37 = arith.constant dense<0.000000e+00> : vector<64x128xf32>
    %53 = tpu.matmul %52, %50, %cst_37 {dimension_numbers = #tpu.dot_dimension_numbers<[1], [0], [0], [1], [0, 0, 1, 1], [], []>} : vector<64x8xbf16>, vector<8x128xbf16>, vector<64x128xf32> -> vector<64x128xf32>
    %54 = arith.addf %47, %53 : vector<64x128xf32>
    %55 = vector.extract_strided_slice %49 {offsets = [0, 1], sizes = [8, 128], strides = [1, 1]} : vector<8x256xbf16> to vector<8x128xbf16>
    %c10 = arith.constant 10 : index
    %c0_38 = arith.constant 0 : index
    %c0_39 = arith.constant 0 : index
    %56 = vector.load %arg2[%c10, %c0_38, %c0_39] : memref<36x64x8xbf16, #tpu.memory_space<vmem>>, vector<1x64x8xbf16>
    %57 = vector.shape_cast %56 : vector<1x64x8xbf16> to vector<64x8xbf16>
    %cst_40 = arith.constant dense<0.000000e+00> : vector<64x128xf32>
    %58 = tpu.matmul %57, %55, %cst_40 {dimension_numbers = #tpu.dot_dimension_numbers<[1], [0], [0], [1], [0, 0, 1, 1], [], []>} : vector<64x8xbf16>, vector<8x128xbf16>, vector<64x128xf32> -> vector<64x128xf32>
    %59 = arith.addf %54, %58 : vector<64x128xf32>
    %60 = vector.extract_strided_slice %49 {offsets = [0, 2], sizes = [8, 128], strides = [1, 1]} : vector<8x256xbf16> to vector<8x128xbf16>
    %c11 = arith.constant 11 : index
    %c0_41 = arith.constant 0 : index
    %c0_42 = arith.constant 0 : index
    %61 = vector.load %arg2[%c11, %c0_41, %c0_42] : memref<36x64x8xbf16, #tpu.memory_space<vmem>>, vector<1x64x8xbf16>
    %62 = vector.shape_cast %61 : vector<1x64x8xbf16> to vector<64x8xbf16>
    %cst_43 = arith.constant dense<0.000000e+00> : vector<64x128xf32>
    %63 = tpu.matmul %62, %60, %cst_43 {dimension_numbers = #tpu.dot_dimension_numbers<[1], [0], [0], [1], [0, 0, 1, 1], [], []>} : vector<64x8xbf16>, vector<8x128xbf16>, vector<64x128xf32> -> vector<64x128xf32>
    %64 = arith.addf %59, %63 : vector<64x128xf32>
    %65 = vector.extract_strided_slice %49 {offsets = [0, 7], sizes = [8, 128], strides = [1, 1]} : vector<8x256xbf16> to vector<8x128xbf16>
    %c12 = arith.constant 12 : index
    %c0_44 = arith.constant 0 : index
    %c0_45 = arith.constant 0 : index
    %66 = vector.load %arg2[%c12, %c0_44, %c0_45] : memref<36x64x8xbf16, #tpu.memory_space<vmem>>, vector<1x64x8xbf16>
    %67 = vector.shape_cast %66 : vector<1x64x8xbf16> to vector<64x8xbf16>
    %cst_46 = arith.constant dense<0.000000e+00> : vector<64x128xf32>
    %68 = tpu.matmul %67, %65, %cst_46 {dimension_numbers = #tpu.dot_dimension_numbers<[1], [0], [0], [1], [0, 0, 1, 1], [], []>} : vector<64x8xbf16>, vector<8x128xbf16>, vector<64x128xf32> -> vector<64x128xf32>
    %69 = arith.addf %64, %68 : vector<64x128xf32>
    %70 = vector.extract_strided_slice %49 {offsets = [0, 8], sizes = [8, 128], strides = [1, 1]} : vector<8x256xbf16> to vector<8x128xbf16>
    %c13 = arith.constant 13 : index
    %c0_47 = arith.constant 0 : index
    %c0_48 = arith.constant 0 : index
    %71 = vector.load %arg2[%c13, %c0_47, %c0_48] : memref<36x64x8xbf16, #tpu.memory_space<vmem>>, vector<1x64x8xbf16>
    %72 = vector.shape_cast %71 : vector<1x64x8xbf16> to vector<64x8xbf16>
    %cst_49 = arith.constant dense<0.000000e+00> : vector<64x128xf32>
    %73 = tpu.matmul %72, %70, %cst_49 {dimension_numbers = #tpu.dot_dimension_numbers<[1], [0], [0], [1], [0, 0, 1, 1], [], []>} : vector<64x8xbf16>, vector<8x128xbf16>, vector<64x128xf32> -> vector<64x128xf32>
    %74 = arith.addf %69, %73 : vector<64x128xf32>
    %75 = vector.extract_strided_slice %49 {offsets = [0, 9], sizes = [8, 128], strides = [1, 1]} : vector<8x256xbf16> to vector<8x128xbf16>
    %c14 = arith.constant 14 : index
    %c0_50 = arith.constant 0 : index
    %c0_51 = arith.constant 0 : index
    %76 = vector.load %arg2[%c14, %c0_50, %c0_51] : memref<36x64x8xbf16, #tpu.memory_space<vmem>>, vector<1x64x8xbf16>
    %77 = vector.shape_cast %76 : vector<1x64x8xbf16> to vector<64x8xbf16>
    %cst_52 = arith.constant dense<0.000000e+00> : vector<64x128xf32>
    %78 = tpu.matmul %77, %75, %cst_52 {dimension_numbers = #tpu.dot_dimension_numbers<[1], [0], [0], [1], [0, 0, 1, 1], [], []>} : vector<64x8xbf16>, vector<8x128xbf16>, vector<64x128xf32> -> vector<64x128xf32>
    %79 = arith.addf %74, %78 : vector<64x128xf32>
    %80 = vector.extract_strided_slice %49 {offsets = [0, 14], sizes = [8, 128], strides = [1, 1]} : vector<8x256xbf16> to vector<8x128xbf16>
    %c15 = arith.constant 15 : index
    %c0_53 = arith.constant 0 : index
    %c0_54 = arith.constant 0 : index
    %81 = vector.load %arg2[%c15, %c0_53, %c0_54] : memref<36x64x8xbf16, #tpu.memory_space<vmem>>, vector<1x64x8xbf16>
    %82 = vector.shape_cast %81 : vector<1x64x8xbf16> to vector<64x8xbf16>
    %cst_55 = arith.constant dense<0.000000e+00> : vector<64x128xf32>
    %83 = tpu.matmul %82, %80, %cst_55 {dimension_numbers = #tpu.dot_dimension_numbers<[1], [0], [0], [1], [0, 0, 1, 1], [], []>} : vector<64x8xbf16>, vector<8x128xbf16>, vector<64x128xf32> -> vector<64x128xf32>
    %84 = arith.addf %79, %83 : vector<64x128xf32>
    %85 = vector.extract_strided_slice %49 {offsets = [0, 15], sizes = [8, 128], strides = [1, 1]} : vector<8x256xbf16> to vector<8x128xbf16>
    %c16 = arith.constant 16 : index
    %c0_56 = arith.constant 0 : index
    %c0_57 = arith.constant 0 : index
    %86 = vector.load %arg2[%c16, %c0_56, %c0_57] : memref<36x64x8xbf16, #tpu.memory_space<vmem>>, vector<1x64x8xbf16>
    %87 = vector.shape_cast %86 : vector<1x64x8xbf16> to vector<64x8xbf16>
    %cst_58 = arith.constant dense<0.000000e+00> : vector<64x128xf32>
    %88 = tpu.matmul %87, %85, %cst_58 {dimension_numbers = #tpu.dot_dimension_numbers<[1], [0], [0], [1], [0, 0, 1, 1], [], []>} : vector<64x8xbf16>, vector<8x128xbf16>, vector<64x128xf32> -> vector<64x128xf32>
    %89 = arith.addf %84, %88 : vector<64x128xf32>
    %90 = vector.extract_strided_slice %49 {offsets = [0, 16], sizes = [8, 128], strides = [1, 1]} : vector<8x256xbf16> to vector<8x128xbf16>
    %c17 = arith.constant 17 : index
    %c0_59 = arith.constant 0 : index
    %c0_60 = arith.constant 0 : index
    %91 = vector.load %arg2[%c17, %c0_59, %c0_60] : memref<36x64x8xbf16, #tpu.memory_space<vmem>>, vector<1x64x8xbf16>
    %92 = vector.shape_cast %91 : vector<1x64x8xbf16> to vector<64x8xbf16>
    %cst_61 = arith.constant dense<0.000000e+00> : vector<64x128xf32>
    %93 = tpu.matmul %92, %90, %cst_61 {dimension_numbers = #tpu.dot_dimension_numbers<[1], [0], [0], [1], [0, 0, 1, 1], [], []>} : vector<64x8xbf16>, vector<8x128xbf16>, vector<64x128xf32> -> vector<64x128xf32>
    %94 = arith.addf %89, %93 : vector<64x128xf32>
    %c0_62 = arith.constant 0 : index
    %c2_63 = arith.constant 2 : index
    %c0_64 = arith.constant 0 : index
    %c0_65 = arith.constant 0 : index
    %95 = vector.load %arg1[%c0_62, %c2_63, %c0_64, %c0_65] : memref<1x4x8x256xbf16, #tpu.memory_space<vmem>>, vector<1x1x8x256xbf16>
    %96 = vector.shape_cast %95 : vector<1x1x8x256xbf16> to vector<8x256xbf16>
    %97 = vector.extract_strided_slice %96 {offsets = [0, 0], sizes = [8, 128], strides = [1, 1]} : vector<8x256xbf16> to vector<8x128xbf16>
    %c18 = arith.constant 18 : index
    %c0_66 = arith.constant 0 : index
    %c0_67 = arith.constant 0 : index
    %98 = vector.load %arg2[%c18, %c0_66, %c0_67] : memref<36x64x8xbf16, #tpu.memory_space<vmem>>, vector<1x64x8xbf16>
    %99 = vector.shape_cast %98 : vector<1x64x8xbf16> to vector<64x8xbf16>
    %cst_68 = arith.constant dense<0.000000e+00> : vector<64x128xf32>
    %100 = tpu.matmul %99, %97, %cst_68 {dimension_numbers = #tpu.dot_dimension_numbers<[1], [0], [0], [1], [0, 0, 1, 1], [], []>} : vector<64x8xbf16>, vector<8x128xbf16>, vector<64x128xf32> -> vector<64x128xf32>
    %101 = arith.addf %94, %100 : vector<64x128xf32>
    %102 = vector.extract_strided_slice %96 {offsets = [0, 1], sizes = [8, 128], strides = [1, 1]} : vector<8x256xbf16> to vector<8x128xbf16>
    %c19 = arith.constant 19 : index
    %c0_69 = arith.constant 0 : index
    %c0_70 = arith.constant 0 : index
    %103 = vector.load %arg2[%c19, %c0_69, %c0_70] : memref<36x64x8xbf16, #tpu.memory_space<vmem>>, vector<1x64x8xbf16>
    %104 = vector.shape_cast %103 : vector<1x64x8xbf16> to vector<64x8xbf16>
    %cst_71 = arith.constant dense<0.000000e+00> : vector<64x128xf32>
    %105 = tpu.matmul %104, %102, %cst_71 {dimension_numbers = #tpu.dot_dimension_numbers<[1], [0], [0], [1], [0, 0, 1, 1], [], []>} : vector<64x8xbf16>, vector<8x128xbf16>, vector<64x128xf32> -> vector<64x128xf32>
    %106 = arith.addf %101, %105 : vector<64x128xf32>
    %107 = vector.extract_strided_slice %96 {offsets = [0, 2], sizes = [8, 128], strides = [1, 1]} : vector<8x256xbf16> to vector<8x128xbf16>
    %c20 = arith.constant 20 : index
    %c0_72 = arith.constant 0 : index
    %c0_73 = arith.constant 0 : index
    %108 = vector.load %arg2[%c20, %c0_72, %c0_73] : memref<36x64x8xbf16, #tpu.memory_space<vmem>>, vector<1x64x8xbf16>
    %109 = vector.shape_cast %108 : vector<1x64x8xbf16> to vector<64x8xbf16>
    %cst_74 = arith.constant dense<0.000000e+00> : vector<64x128xf32>
    %110 = tpu.matmul %109, %107, %cst_74 {dimension_numbers = #tpu.dot_dimension_numbers<[1], [0], [0], [1], [0, 0, 1, 1], [], []>} : vector<64x8xbf16>, vector<8x128xbf16>, vector<64x128xf32> -> vector<64x128xf32>
    %111 = arith.addf %106, %110 : vector<64x128xf32>
    %112 = vector.extract_strided_slice %96 {offsets = [0, 7], sizes = [8, 128], strides = [1, 1]} : vector<8x256xbf16> to vector<8x128xbf16>
    %c21 = arith.constant 21 : index
    %c0_75 = arith.constant 0 : index
    %c0_76 = arith.constant 0 : index
    %113 = vector.load %arg2[%c21, %c0_75, %c0_76] : memref<36x64x8xbf16, #tpu.memory_space<vmem>>, vector<1x64x8xbf16>
    %114 = vector.shape_cast %113 : vector<1x64x8xbf16> to vector<64x8xbf16>
    %cst_77 = arith.constant dense<0.000000e+00> : vector<64x128xf32>
    %115 = tpu.matmul %114, %112, %cst_77 {dimension_numbers = #tpu.dot_dimension_numbers<[1], [0], [0], [1], [0, 0, 1, 1], [], []>} : vector<64x8xbf16>, vector<8x128xbf16>, vector<64x128xf32> -> vector<64x128xf32>
    %116 = arith.addf %111, %115 : vector<64x128xf32>
    %117 = vector.extract_strided_slice %96 {offsets = [0, 8], sizes = [8, 128], strides = [1, 1]} : vector<8x256xbf16> to vector<8x128xbf16>
    %c22 = arith.constant 22 : index
    %c0_78 = arith.constant 0 : index
    %c0_79 = arith.constant 0 : index
    %118 = vector.load %arg2[%c22, %c0_78, %c0_79] : memref<36x64x8xbf16, #tpu.memory_space<vmem>>, vector<1x64x8xbf16>
    %119 = vector.shape_cast %118 : vector<1x64x8xbf16> to vector<64x8xbf16>
    %cst_80 = arith.constant dense<0.000000e+00> : vector<64x128xf32>
    %120 = tpu.matmul %119, %117, %cst_80 {dimension_numbers = #tpu.dot_dimension_numbers<[1], [0], [0], [1], [0, 0, 1, 1], [], []>} : vector<64x8xbf16>, vector<8x128xbf16>, vector<64x128xf32> -> vector<64x128xf32>
    %121 = arith.addf %116, %120 : vector<64x128xf32>
    %122 = vector.extract_strided_slice %96 {offsets = [0, 9], sizes = [8, 128], strides = [1, 1]} : vector<8x256xbf16> to vector<8x128xbf16>
    %c23 = arith.constant 23 : index
    %c0_81 = arith.constant 0 : index
    %c0_82 = arith.constant 0 : index
    %123 = vector.load %arg2[%c23, %c0_81, %c0_82] : memref<36x64x8xbf16, #tpu.memory_space<vmem>>, vector<1x64x8xbf16>
    %124 = vector.shape_cast %123 : vector<1x64x8xbf16> to vector<64x8xbf16>
    %cst_83 = arith.constant dense<0.000000e+00> : vector<64x128xf32>
    %125 = tpu.matmul %124, %122, %cst_83 {dimension_numbers = #tpu.dot_dimension_numbers<[1], [0], [0], [1], [0, 0, 1, 1], [], []>} : vector<64x8xbf16>, vector<8x128xbf16>, vector<64x128xf32> -> vector<64x128xf32>
    %126 = arith.addf %121, %125 : vector<64x128xf32>
    %127 = vector.extract_strided_slice %96 {offsets = [0, 14], sizes = [8, 128], strides = [1, 1]} : vector<8x256xbf16> to vector<8x128xbf16>
    %c24 = arith.constant 24 : index
    %c0_84 = arith.constant 0 : index
    %c0_85 = arith.constant 0 : index
    %128 = vector.load %arg2[%c24, %c0_84, %c0_85] : memref<36x64x8xbf16, #tpu.memory_space<vmem>>, vector<1x64x8xbf16>
    %129 = vector.shape_cast %128 : vector<1x64x8xbf16> to vector<64x8xbf16>
    %cst_86 = arith.constant dense<0.000000e+00> : vector<64x128xf32>
    %130 = tpu.matmul %129, %127, %cst_86 {dimension_numbers = #tpu.dot_dimension_numbers<[1], [0], [0], [1], [0, 0, 1, 1], [], []>} : vector<64x8xbf16>, vector<8x128xbf16>, vector<64x128xf32> -> vector<64x128xf32>
    %131 = arith.addf %126, %130 : vector<64x128xf32>
    %132 = vector.extract_strided_slice %96 {offsets = [0, 15], sizes = [8, 128], strides = [1, 1]} : vector<8x256xbf16> to vector<8x128xbf16>
    %c25 = arith.constant 25 : index
    %c0_87 = arith.constant 0 : index
    %c0_88 = arith.constant 0 : index
    %133 = vector.load %arg2[%c25, %c0_87, %c0_88] : memref<36x64x8xbf16, #tpu.memory_space<vmem>>, vector<1x64x8xbf16>
    %134 = vector.shape_cast %133 : vector<1x64x8xbf16> to vector<64x8xbf16>
    %cst_89 = arith.constant dense<0.000000e+00> : vector<64x128xf32>
    %135 = tpu.matmul %134, %132, %cst_89 {dimension_numbers = #tpu.dot_dimension_numbers<[1], [0], [0], [1], [0, 0, 1, 1], [], []>} : vector<64x8xbf16>, vector<8x128xbf16>, vector<64x128xf32> -> vector<64x128xf32>
    %136 = arith.addf %131, %135 : vector<64x128xf32>
    %137 = vector.extract_strided_slice %96 {offsets = [0, 16], sizes = [8, 128], strides = [1, 1]} : vector<8x256xbf16> to vector<8x128xbf16>
    %c26 = arith.constant 26 : index
    %c0_90 = arith.constant 0 : index
    %c0_91 = arith.constant 0 : index
    %138 = vector.load %arg2[%c26, %c0_90, %c0_91] : memref<36x64x8xbf16, #tpu.memory_space<vmem>>, vector<1x64x8xbf16>
    %139 = vector.shape_cast %138 : vector<1x64x8xbf16> to vector<64x8xbf16>
    %cst_92 = arith.constant dense<0.000000e+00> : vector<64x128xf32>
    %140 = tpu.matmul %139, %137, %cst_92 {dimension_numbers = #tpu.dot_dimension_numbers<[1], [0], [0], [1], [0, 0, 1, 1], [], []>} : vector<64x8xbf16>, vector<8x128xbf16>, vector<64x128xf32> -> vector<64x128xf32>
    %141 = arith.addf %136, %140 : vector<64x128xf32>
    %c0_93 = arith.constant 0 : index
    %c3_94 = arith.constant 3 : index
    %c0_95 = arith.constant 0 : index
    %c0_96 = arith.constant 0 : index
    %142 = vector.load %arg1[%c0_93, %c3_94, %c0_95, %c0_96] : memref<1x4x8x256xbf16, #tpu.memory_space<vmem>>, vector<1x1x8x256xbf16>
    %143 = vector.shape_cast %142 : vector<1x1x8x256xbf16> to vector<8x256xbf16>
    %144 = vector.extract_strided_slice %143 {offsets = [0, 0], sizes = [8, 128], strides = [1, 1]} : vector<8x256xbf16> to vector<8x128xbf16>
    %c27 = arith.constant 27 : index
    %c0_97 = arith.constant 0 : index
    %c0_98 = arith.constant 0 : index
    %145 = vector.load %arg2[%c27, %c0_97, %c0_98] : memref<36x64x8xbf16, #tpu.memory_space<vmem>>, vector<1x64x8xbf16>
    %146 = vector.shape_cast %145 : vector<1x64x8xbf16> to vector<64x8xbf16>
    %cst_99 = arith.constant dense<0.000000e+00> : vector<64x128xf32>
    %147 = tpu.matmul %146, %144, %cst_99 {dimension_numbers = #tpu.dot_dimension_numbers<[1], [0], [0], [1], [0, 0, 1, 1], [], []>} : vector<64x8xbf16>, vector<8x128xbf16>, vector<64x128xf32> -> vector<64x128xf32>
    %148 = arith.addf %141, %147 : vector<64x128xf32>
    %149 = vector.extract_strided_slice %143 {offsets = [0, 1], sizes = [8, 128], strides = [1, 1]} : vector<8x256xbf16> to vector<8x128xbf16>
    %c28 = arith.constant 28 : index
    %c0_100 = arith.constant 0 : index
    %c0_101 = arith.constant 0 : index
    %150 = vector.load %arg2[%c28, %c0_100, %c0_101] : memref<36x64x8xbf16, #tpu.memory_space<vmem>>, vector<1x64x8xbf16>
    %151 = vector.shape_cast %150 : vector<1x64x8xbf16> to vector<64x8xbf16>
    %cst_102 = arith.constant dense<0.000000e+00> : vector<64x128xf32>
    %152 = tpu.matmul %151, %149, %cst_102 {dimension_numbers = #tpu.dot_dimension_numbers<[1], [0], [0], [1], [0, 0, 1, 1], [], []>} : vector<64x8xbf16>, vector<8x128xbf16>, vector<64x128xf32> -> vector<64x128xf32>
    %153 = arith.addf %148, %152 : vector<64x128xf32>
    %154 = vector.extract_strided_slice %143 {offsets = [0, 2], sizes = [8, 128], strides = [1, 1]} : vector<8x256xbf16> to vector<8x128xbf16>
    %c29 = arith.constant 29 : index
    %c0_103 = arith.constant 0 : index
    %c0_104 = arith.constant 0 : index
    %155 = vector.load %arg2[%c29, %c0_103, %c0_104] : memref<36x64x8xbf16, #tpu.memory_space<vmem>>, vector<1x64x8xbf16>
    %156 = vector.shape_cast %155 : vector<1x64x8xbf16> to vector<64x8xbf16>
    %cst_105 = arith.constant dense<0.000000e+00> : vector<64x128xf32>
    %157 = tpu.matmul %156, %154, %cst_105 {dimension_numbers = #tpu.dot_dimension_numbers<[1], [0], [0], [1], [0, 0, 1, 1], [], []>} : vector<64x8xbf16>, vector<8x128xbf16>, vector<64x128xf32> -> vector<64x128xf32>
    %158 = arith.addf %153, %157 : vector<64x128xf32>
    %159 = vector.extract_strided_slice %143 {offsets = [0, 7], sizes = [8, 128], strides = [1, 1]} : vector<8x256xbf16> to vector<8x128xbf16>
    %c30 = arith.constant 30 : index
    %c0_106 = arith.constant 0 : index
    %c0_107 = arith.constant 0 : index
    %160 = vector.load %arg2[%c30, %c0_106, %c0_107] : memref<36x64x8xbf16, #tpu.memory_space<vmem>>, vector<1x64x8xbf16>
    %161 = vector.shape_cast %160 : vector<1x64x8xbf16> to vector<64x8xbf16>
    %cst_108 = arith.constant dense<0.000000e+00> : vector<64x128xf32>
    %162 = tpu.matmul %161, %159, %cst_108 {dimension_numbers = #tpu.dot_dimension_numbers<[1], [0], [0], [1], [0, 0, 1, 1], [], []>} : vector<64x8xbf16>, vector<8x128xbf16>, vector<64x128xf32> -> vector<64x128xf32>
    %163 = arith.addf %158, %162 : vector<64x128xf32>
    %164 = vector.extract_strided_slice %143 {offsets = [0, 8], sizes = [8, 128], strides = [1, 1]} : vector<8x256xbf16> to vector<8x128xbf16>
    %c31 = arith.constant 31 : index
    %c0_109 = arith.constant 0 : index
    %c0_110 = arith.constant 0 : index
    %165 = vector.load %arg2[%c31, %c0_109, %c0_110] : memref<36x64x8xbf16, #tpu.memory_space<vmem>>, vector<1x64x8xbf16>
    %166 = vector.shape_cast %165 : vector<1x64x8xbf16> to vector<64x8xbf16>
    %cst_111 = arith.constant dense<0.000000e+00> : vector<64x128xf32>
    %167 = tpu.matmul %166, %164, %cst_111 {dimension_numbers = #tpu.dot_dimension_numbers<[1], [0], [0], [1], [0, 0, 1, 1], [], []>} : vector<64x8xbf16>, vector<8x128xbf16>, vector<64x128xf32> -> vector<64x128xf32>
    %168 = arith.addf %163, %167 : vector<64x128xf32>
    %169 = vector.extract_strided_slice %143 {offsets = [0, 9], sizes = [8, 128], strides = [1, 1]} : vector<8x256xbf16> to vector<8x128xbf16>
    %c32 = arith.constant 32 : index
    %c0_112 = arith.constant 0 : index
    %c0_113 = arith.constant 0 : index
    %170 = vector.load %arg2[%c32, %c0_112, %c0_113] : memref<36x64x8xbf16, #tpu.memory_space<vmem>>, vector<1x64x8xbf16>
    %171 = vector.shape_cast %170 : vector<1x64x8xbf16> to vector<64x8xbf16>
    %cst_114 = arith.constant dense<0.000000e+00> : vector<64x128xf32>
    %172 = tpu.matmul %171, %169, %cst_114 {dimension_numbers = #tpu.dot_dimension_numbers<[1], [0], [0], [1], [0, 0, 1, 1], [], []>} : vector<64x8xbf16>, vector<8x128xbf16>, vector<64x128xf32> -> vector<64x128xf32>
    %173 = arith.addf %168, %172 : vector<64x128xf32>
    %174 = vector.extract_strided_slice %143 {offsets = [0, 14], sizes = [8, 128], strides = [1, 1]} : vector<8x256xbf16> to vector<8x128xbf16>
    %c33 = arith.constant 33 : index
    %c0_115 = arith.constant 0 : index
    %c0_116 = arith.constant 0 : index
    %175 = vector.load %arg2[%c33, %c0_115, %c0_116] : memref<36x64x8xbf16, #tpu.memory_space<vmem>>, vector<1x64x8xbf16>
    %176 = vector.shape_cast %175 : vector<1x64x8xbf16> to vector<64x8xbf16>
    %cst_117 = arith.constant dense<0.000000e+00> : vector<64x128xf32>
    %177 = tpu.matmul %176, %174, %cst_117 {dimension_numbers = #tpu.dot_dimension_numbers<[1], [0], [0], [1], [0, 0, 1, 1], [], []>} : vector<64x8xbf16>, vector<8x128xbf16>, vector<64x128xf32> -> vector<64x128xf32>
    %178 = arith.addf %173, %177 : vector<64x128xf32>
    %179 = vector.extract_strided_slice %143 {offsets = [0, 15], sizes = [8, 128], strides = [1, 1]} : vector<8x256xbf16> to vector<8x128xbf16>
    %c34 = arith.constant 34 : index
    %c0_118 = arith.constant 0 : index
    %c0_119 = arith.constant 0 : index
    %180 = vector.load %arg2[%c34, %c0_118, %c0_119] : memref<36x64x8xbf16, #tpu.memory_space<vmem>>, vector<1x64x8xbf16>
    %181 = vector.shape_cast %180 : vector<1x64x8xbf16> to vector<64x8xbf16>
    %cst_120 = arith.constant dense<0.000000e+00> : vector<64x128xf32>
    %182 = tpu.matmul %181, %179, %cst_120 {dimension_numbers = #tpu.dot_dimension_numbers<[1], [0], [0], [1], [0, 0, 1, 1], [], []>} : vector<64x8xbf16>, vector<8x128xbf16>, vector<64x128xf32> -> vector<64x128xf32>
    %183 = arith.addf %178, %182 : vector<64x128xf32>
    %184 = vector.extract_strided_slice %143 {offsets = [0, 16], sizes = [8, 128], strides = [1, 1]} : vector<8x256xbf16> to vector<8x128xbf16>
    %c35 = arith.constant 35 : index
    %c0_121 = arith.constant 0 : index
    %c0_122 = arith.constant 0 : index
    %185 = vector.load %arg2[%c35, %c0_121, %c0_122] : memref<36x64x8xbf16, #tpu.memory_space<vmem>>, vector<1x64x8xbf16>
    %186 = vector.shape_cast %185 : vector<1x64x8xbf16> to vector<64x8xbf16>
    %cst_123 = arith.constant dense<0.000000e+00> : vector<64x128xf32>
    %187 = tpu.matmul %186, %184, %cst_123 {dimension_numbers = #tpu.dot_dimension_numbers<[1], [0], [0], [1], [0, 0, 1, 1], [], []>} : vector<64x8xbf16>, vector<8x128xbf16>, vector<64x128xf32> -> vector<64x128xf32>
    %188 = arith.addf %183, %187 : vector<64x128xf32>
    %c0_124 = arith.constant 0 : index
    %c0_125 = arith.constant 0 : index
    %189 = vector.load %arg3[%c0_124, %c0_125] : memref<64x1xf32, #tpu.memory_space<vmem>>, vector<64x1xf32>
    %190 = vector.broadcast %189 : vector<64x1xf32> to vector<64x128xf32>
    %191 = arith.addf %188, %190 : vector<64x128xf32>
    %192 = arith.negf %191 : vector<64x128xf32>
    %193 = math.exp %192 : vector<64x128xf32>
    %cst_126 = arith.constant 1.000000e+00 : f32
    %194 = vector.broadcast %cst_126 : f32 to vector<64x128xf32>
    %195 = arith.addf %194, %193 : vector<64x128xf32>
    %196 = arith.divf %194, %195 : vector<64x128xf32>
    %197 = vector.extract_strided_slice %196 {offsets = [0, 0], sizes = [16, 128], strides = [1, 1]} : vector<64x128xf32> to vector<16x128xf32>
    %198 = vector.extract_strided_slice %196 {offsets = [16, 0], sizes = [16, 128], strides = [1, 1]} : vector<64x128xf32> to vector<16x128xf32>
    %199 = arith.addf %197, %198 : vector<16x128xf32>
    %200 = vector.extract_strided_slice %196 {offsets = [32, 0], sizes = [16, 128], strides = [1, 1]} : vector<64x128xf32> to vector<16x128xf32>
    %201 = arith.addf %199, %200 : vector<16x128xf32>
    %202 = vector.extract_strided_slice %196 {offsets = [48, 0], sizes = [16, 128], strides = [1, 1]} : vector<64x128xf32> to vector<16x128xf32>
    %203 = arith.addf %201, %202 : vector<16x128xf32>
    %cst_127 = arith.constant 2.500000e-01 : f32
    %204 = vector.broadcast %cst_127 : f32 to vector<16x128xf32>
    %205 = arith.mulf %204, %203 : vector<16x128xf32>
    %206 = arith.truncf %205 : vector<16x128xf32> to vector<16x128xbf16>
    %c0_128 = arith.constant 0 : index
    %c0_129 = arith.constant 0 : index
    %207 = vector.load %arg4[%c0_128, %c0_129] : memref<16x128xbf16, #tpu.memory_space<vmem>>, vector<16x128xbf16>
    tpu.vector_store %arg4[%c0_128, %c0_129], %206 {strides = array<i32>} : memref<16x128xbf16, #tpu.memory_space<vmem>>, vector<16x128xbf16>,
    return
  }
  func.func @transform_0(%arg0: i32) -> (i32, i32, i32, i32) {
    %c0_i32 = arith.constant 0 : i32
    %c0_i32_0 = arith.constant 0 : i32
    %c0_i32_1 = arith.constant 0 : i32
    %c0_i32_2 = arith.constant 0 : i32
    return %arg0, %c0_i32, %c0_i32_0, %c0_i32_1 : i32, i32, i32, i32
  }
  func.func @transform_1(%arg0: i32) -> (i32, i32, i32) {
    %c0_i32 = arith.constant 0 : i32
    %c0_i32_0 = arith.constant 0 : i32
    %c0_i32_1 = arith.constant 0 : i32
    %c0_i32_2 = arith.constant 0 : i32
    return %c0_i32, %c0_i32_0, %c0_i32_1 : i32, i32, i32
  }
  func.func @transform_2(%arg0: i32) -> (i32, i32) {
    %c0_i32 = arith.constant 0 : i32
    %c0_i32_0 = arith.constant 0 : i32
    %c0_i32_1 = arith.constant 0 : i32
    return %c0_i32, %c0_i32_0 : i32, i32
  }
  func.func @transform_3(%arg0: i32) -> (i32, i32) {
    %c0_i32 = arith.constant 0 : i32
    %c0_i32_0 = arith.constant 0 : i32
    return %c0_i32, %arg0 : i32, i32
  }
}

module attributes {stable_mosaic.version = 11 : i64} {
  func.func @_mlp_tail_kernel(%arg0: i32, %arg1: memref<8x400xbf16, #tpu.memory_space<vmem>>, %arg2: memref<400x128xbf16, #tpu.memory_space<vmem>>, %arg3: memref<1x128xf32, #tpu.memory_space<vmem>>, %arg4: memref<128x128xbf16, #tpu.memory_space<vmem>>, %arg5: memref<1x128xf32, #tpu.memory_space<vmem>>, %arg6: memref<128x128xbf16, #tpu.memory_space<vmem>>, %arg7: memref<1x128xf32, #tpu.memory_space<vmem>>, %arg8: memref<8x128xf32, #tpu.memory_space<vmem>>) attributes {dimension_semantics = [#tpu.dimension_semantics<parallel>], iteration_bounds = array<i64: 1>, scalar_prefetch = 0 : i64, scratch_operands = 0 : i64, tpu.core_type = #tpu.core_type<tc>, window_params = [{transform_indices = @transform_0, window_bounds = array<i64: 8, 400>}, {pipeline_mode = #tpu.pipeline_mode<synchronous>, transform_indices = @transform_1, window_bounds = array<i64: 400, 128>}, {pipeline_mode = #tpu.pipeline_mode<synchronous>, transform_indices = @transform_2, window_bounds = array<i64: 1, 128>}, {pipeline_mode = #tpu.pipeline_mode<synchronous>, transform_indices = @transform_3, window_bounds = array<i64: 128, 128>}, {pipeline_mode = #tpu.pipeline_mode<synchronous>, transform_indices = @transform_4, window_bounds = array<i64: 1, 128>}, {pipeline_mode = #tpu.pipeline_mode<synchronous>, transform_indices = @transform_5, window_bounds = array<i64: 128, 128>}, {pipeline_mode = #tpu.pipeline_mode<synchronous>, transform_indices = @transform_6, window_bounds = array<i64: 1, 128>}, {transform_indices = @transform_7, window_bounds = array<i64: 8, 128>}]} {
    %c0 = arith.constant 0 : index
    %c0_0 = arith.constant 0 : index
    %0 = vector.load %arg1[%c0, %c0_0] : memref<8x400xbf16, #tpu.memory_space<vmem>>, vector<8x400xbf16>
    %c0_1 = arith.constant 0 : index
    %c0_2 = arith.constant 0 : index
    %1 = vector.load %arg2[%c0_1, %c0_2] : memref<400x128xbf16, #tpu.memory_space<vmem>>, vector<400x128xbf16>
    %cst = arith.constant dense<0.000000e+00> : vector<8x128xf32>
    %2 = tpu.matmul %0, %1, %cst {dimension_numbers = #tpu.dot_dimension_numbers<[1], [0], [0], [1], [0, 0, 1, 1], [], []>} : vector<8x400xbf16>, vector<400x128xbf16>, vector<8x128xf32> -> vector<8x128xf32>
    %c0_3 = arith.constant 0 : index
    %c0_4 = arith.constant 0 : index
    %3 = vector.load %arg3[%c0_3, %c0_4] : memref<1x128xf32, #tpu.memory_space<vmem>>, vector<1x128xf32>
    %4 = vector.broadcast %3 : vector<1x128xf32> to vector<8x128xf32>
    %5 = arith.addf %2, %4 : vector<8x128xf32>
    %6 = arith.truncf %5 : vector<8x128xf32> to vector<8x128xbf16>
    %c0_5 = arith.constant 0 : index
    %c0_6 = arith.constant 0 : index
    %7 = vector.load %arg4[%c0_5, %c0_6] : memref<128x128xbf16, #tpu.memory_space<vmem>>, vector<128x128xbf16>
    %cst_7 = arith.constant dense<0.000000e+00> : vector<8x128xf32>
    %8 = tpu.matmul %6, %7, %cst_7 {dimension_numbers = #tpu.dot_dimension_numbers<[1], [0], [0], [1], [0, 0, 1, 1], [], []>} : vector<8x128xbf16>, vector<128x128xbf16>, vector<8x128xf32> -> vector<8x128xf32>
    %c0_8 = arith.constant 0 : index
    %c0_9 = arith.constant 0 : index
    %9 = vector.load %arg5[%c0_8, %c0_9] : memref<1x128xf32, #tpu.memory_space<vmem>>, vector<1x128xf32>
    %10 = vector.broadcast %9 : vector<1x128xf32> to vector<8x128xf32>
    %11 = arith.addf %8, %10 : vector<8x128xf32>
    %12 = arith.truncf %11 : vector<8x128xf32> to vector<8x128xbf16>
    %c0_10 = arith.constant 0 : index
    %c0_11 = arith.constant 0 : index
    %13 = vector.load %arg6[%c0_10, %c0_11] : memref<128x128xbf16, #tpu.memory_space<vmem>>, vector<128x128xbf16>
    %cst_12 = arith.constant dense<0.000000e+00> : vector<8x128xf32>
    %14 = tpu.matmul %12, %13, %cst_12 {dimension_numbers = #tpu.dot_dimension_numbers<[1], [0], [0], [1], [0, 0, 1, 1], [], []>} : vector<8x128xbf16>, vector<128x128xbf16>, vector<8x128xf32> -> vector<8x128xf32>
    %c0_13 = arith.constant 0 : index
    %c0_14 = arith.constant 0 : index
    %15 = vector.load %arg7[%c0_13, %c0_14] : memref<1x128xf32, #tpu.memory_space<vmem>>, vector<1x128xf32>
    %16 = vector.broadcast %15 : vector<1x128xf32> to vector<8x128xf32>
    %17 = arith.addf %14, %16 : vector<8x128xf32>
    %c0_15 = arith.constant 0 : index
    %c0_16 = arith.constant 0 : index
    %18 = vector.load %arg8[%c0_15, %c0_16] : memref<8x128xf32, #tpu.memory_space<vmem>>, vector<8x128xf32>
    tpu.vector_store %arg8[%c0_15, %c0_16], %17 {strides = array<i32>} : memref<8x128xf32, #tpu.memory_space<vmem>>, vector<8x128xf32>,
    return
  }
  func.func @transform_0(%arg0: i32) -> (i32, i32) {
    %c0_i32 = arith.constant 0 : i32
    %c0_i32_0 = arith.constant 0 : i32
    return %arg0, %c0_i32 : i32, i32
  }
  func.func @transform_1(%arg0: i32) -> (i32, i32) {
    %c0_i32 = arith.constant 0 : i32
    %c0_i32_0 = arith.constant 0 : i32
    %c0_i32_1 = arith.constant 0 : i32
    return %c0_i32, %c0_i32_0 : i32, i32
  }
  func.func @transform_2(%arg0: i32) -> (i32, i32) {
    %c0_i32 = arith.constant 0 : i32
    %c0_i32_0 = arith.constant 0 : i32
    %c0_i32_1 = arith.constant 0 : i32
    return %c0_i32, %c0_i32_0 : i32, i32
  }
  func.func @transform_3(%arg0: i32) -> (i32, i32) {
    %c0_i32 = arith.constant 0 : i32
    %c0_i32_0 = arith.constant 0 : i32
    %c0_i32_1 = arith.constant 0 : i32
    return %c0_i32, %c0_i32_0 : i32, i32
  }
  func.func @transform_4(%arg0: i32) -> (i32, i32) {
    %c0_i32 = arith.constant 0 : i32
    %c0_i32_0 = arith.constant 0 : i32
    %c0_i32_1 = arith.constant 0 : i32
    return %c0_i32, %c0_i32_0 : i32, i32
  }
  func.func @transform_5(%arg0: i32) -> (i32, i32) {
    %c0_i32 = arith.constant 0 : i32
    %c0_i32_0 = arith.constant 0 : i32
    %c0_i32_1 = arith.constant 0 : i32
    return %c0_i32, %c0_i32_0 : i32, i32
  }
  func.func @transform_6(%arg0: i32) -> (i32, i32) {
    %c0_i32 = arith.constant 0 : i32
    %c0_i32_0 = arith.constant 0 : i32
    %c0_i32_1 = arith.constant 0 : i32
    return %c0_i32, %c0_i32_0 : i32, i32
  }
  func.func @transform_7(%arg0: i32) -> (i32, i32) {
    %c0_i32 = arith.constant 0 : i32
    %c0_i32_0 = arith.constant 0 : i32
    return %arg0, %c0_i32 : i32, i32
  }
}

</mosaic_0001>

<bundles_post_ra>
// kernel: lenet5_forward.3
= control target key start
LH: loop header
LB: loop body
LE: loop exit
PB: predicated region body
PF: predicated region fallthrough
CT: control target
= control target key end

     0   :  { %s4171_s12 = smov 0   ;;  %s5149_s0 = inlined_call_operand.vmem [shape: bf16[2,4,8,384], index: 0, kind: input, shape index: {}]   ;;  %s5150_s1 = inlined_call_operand.vmem [shape: bf16[36,24,8], index: 1, kind: input, shape index: {}]   ;;  %s5151_s2 = inlined_call_operand.vmem [shape: f32[24,1], index: 2, kind: input, shape index: {}]   ;;  %s5152_s3 = inlined_call_operand.vmem [shape: bf16[6,512], index: 3, kind: output, shape index: {}]  }
   0x1 LB: > { %s4177_s13 = sadd.s32 4294967295, %s4140_s12   ;;  %p3549_p0 = scmp.ge.s32.totalorder %s4140_s12, 1  ;;  %s4140_s12 = sphi %s4171_s12, %s13_s12  }
   0x2   : > { %p137_p1 = scmp.lt.s32.totalorder %s4140_s12, 3 }
   0x4   : > { %p138_p2 = pnand %p3549_p0, %p137_p1 }
   0x5   : > { %p161_p3 = scmp.lt.s32.totalorder (!%p138_p2), %s4177_s13, 1  ;;  %v4142_v0 = vmov (!%p138_p2), 0   ;;  %vm214_vm0 = vcmask (!%p138_p2), 1043456   ;;  %s4143_s19 = smov (!%p138_p2), 127   ;;  %v4032_v9 = vld [vmem:[%s5150_s1 + $0xd8] sm:$0xff] (!%p138_p2)   ;;  %vm207_vm1 = vcmask (!%p138_p2), 64512  }
   0x6   : > { %141 = sbr.rel (%p138_p2) target bundleno = 716 (0x2cc), region = 32  ;;  %253 = vmatprep.mubr.bf16.mxu1 (!%p138_p2), %v4142_v0  ;;  %1841 = vmatprep.mubr.bf16.mxu0 (!%p138_p2), %v4142_v0  ;;  %s4144_s22 = smov (!%p138_p2), 126   ;;  %v4037_v10 = vld [vmem:[%s5150_s1 + $0xe0] ss:$0 sps:$4 sm:$0xff] (!%p138_p2)   ;;  %vm204_vm2 = vcmask (!%p138_p2), 1039360   ;;  %vm361_vm3 = vcmask (!%p138_p2), 1031168  }
   0x7   : > { %4024 = vset.pattern.permute.xlu0 (!%p138_p2), %v4142_v0  ;;  %4025 = vset.pattern.permute.xlu1 (!%p138_p2), %v4142_v0  ;;  %s4145_s25 = smov (!%p138_p2), 112   ;;  %s4146_s26 = smov (!%p138_p2), 111   ;;  %v4035_v27 = vld [vmem:[%s5150_s1 + $0xc] sm:$0xff] (!%p138_p2)   ;;  %v4038_v34 = vld [vmem:[%s5150_s1 + $0x14] ss:$0 sps:$4 sm:$0xff] (!%p138_p2)   ;;  %vm451_vm4 = vcmask (!%p138_p2), 916480  }
   0x8   : > { %s4147_s27 = smov (!%p138_p2), 110   ;;  %s4148_s28 = smov (!%p138_p2), 96   ;;  %v4039_v43 = vld [vmem:[%s5150_s1] sm:$0xff] (!%p138_p2)   ;;  %v4041_v51 = vld [vmem:[%s5150_s1 + $0x8] ss:$0 sps:$4 sm:$0xff] (!%p138_p2)   ;;  %vm541_vm5 = vcmask (!%p138_p2), 908288  }
   0x9   : > { %s4149_s29 = smov (!%p138_p2), 95   ;;  %s4150_s30 = smov (!%p138_p2), 94   ;;  %v4040_v44 = vld [vmem:[%s5150_s1 + $0xe4] sm:$0xff] (!%p138_p2)   ;;  %v4042_v52 = vld [vmem:[%s5150_s1 + $0xec] ss:$0 sps:$4 sm:$0xff] (!%p138_p2)   ;;  %v4043_v61 = vld [vmem:[%s5150_s1 + $0x18] sm:$0xff] (!%p138_p2)  }
   0xa   : > { %v4044_v62 = vld [vmem:[%s5150_s1 + $0xf0] sm:$0xff] (!%p138_p2)   ;;  %vm631_vm6 = vcmask (!%p138_p2), 900096   ;;  %vm721_vm7 = vcmask (!%p138_p2), 785408   ;;  %vm811_vm8 = vcmask (!%p138_p2), 777216   ;;  %vm901_vm9 = vcmask (!%p138_p2), 769024   ;;  %s3551_s4 = sshll.u32 (!%p138_p2), %s4177_s13, 1 }
   0xb   : > { %vm3449_vm10 = vcmask (!%p138_p2), 1041408   ;;  %p167_p4 = scmp.lt.s32.totalorder (!%p138_p2), %s3551_s4, 3 }
   0xd   : > { %s162_s14 = scalar_select %p161_p3, %s4177_s13, 1 }
   0xe   : > { %s5154_s4 = smov (!%p167_p4, %s3551_s4), 3 }
   0xf   : > { %s4006_s15 = smul.u32 48, %s162_s14  ;;  %s3552_s5 = sshll.u32 %s5154_s4, 2 }
  0x11   : > { %s4188_s18 = scalar_lea.vmem %s5149_s0, %s4006_s15 }
  0x12   : > { %v4193_v1 = vld [vmem:[%s4188_s18 + $0x8] ss:$0 sps:$4 sm:$0xff]   ;;  %v173_v2 = vld [vmem:[%s4188_s18] sm:$0xff]  ;;  %v3702_v4 = vld [vmem:[%s4188_s18 + $0x18] sm:$0xff] }
  0x13   : > { %v4196_v3 = vcombine.low %v173_v2, %v173_v2  ;;  %202 = vrot.lane.b32.xlu1 %v4193_v1, %s4143_s19  ;;  %v4201_v5 = vcombine.low %v3702_v4, %v3702_v4  ;;  %v4203_v6 = vcombine.high %v3702_v4, %v3702_v4  ;;  %v4207_v7 = vcombine.high %v173_v2, %v173_v2  ;;  %v4030_v11 = vld [vmem:[%s4188_s18 + $0x20] ss:$0 sps:$4 sm:$0xff]   ;;  %v3625_v12 = vld [vmem:[%s4188_s18 + $0xc] sm:$0xff]  ;;  %v4308_v14 = vld [vmem:[%s4188_s18 + $0x14] ss:$0 sps:$4 sm:$0xff]  }
  0x14   : > { %v4301_v13 = vcombine.low %v3625_v12, %v3625_v12  ;;  %v4311_v15 = vcombine.high %v3625_v12, %v3625_v12  ;;  %v3779_v16 = vld [vmem:[%s4188_s18 + $0x24] sm:$0xff]  ;;  %v4338_v18 = vld [vmem:[%s4188_s18 + $0x2c] ss:$0 sps:$4 sm:$0xff]  }
  0x15   : > { %198 = vrot.lane.b32.xlu0 %v4196_v3, %s4143_s19  ;;  %3711 = vmatprep.subr.msk.bf16.mxu0 %vm214_vm0, %v4203_v6  ;;  %v1804_v8 = vsel %vm214_vm0, %v4201_v5, 0  ;;  %v4331_v17 = vcombine.low %v3779_v16, %v3779_v16  ;;  %v4342_v19 = vcombine.high %v3779_v16, %v3779_v16  ;;  %v287_v30 = vsel %vm214_vm0, %v4196_v3, 0 }
  0x16   : > { %1810 = vmatpush1.bf16.msra.mxu0 %v1804_v8  ;;  %v4048_v8 = vld [vmem:[%s5150_s1 + $0x20] ss:$0 sps:$4 sm:$0xff]  }
  0x17   : > { %355 = vrot.lane.b32.xlu1 %v4196_v3, %s4144_s22 }
  0x19   : > { %200 = vrot.lane.b32.xlu0 %v4207_v7, %s4143_s19  ;;  %3712 = vmatmul.mubr.msk.bf16.vlgmr.msra.gmra.mrb[0].mxu0 %vm207_vm1, %v4032_v9  ;;  %v4049_v9 = vld [vmem:[%s5150_s1 + $0xf8] ss:$0 sps:$4 sm:$0xff]  }
  0x1a   : > { %1851 = vmatprep.mubr.bf16.mxu0 %v4142_v0 }
  0x1b   : > { %359 = vrot.lane.b32.xlu1 %v4193_v1, %s4144_s22 }
  0x1d   : > { %357 = vrot.lane.b32.xlu0 %v4207_v7, %s4144_s22 }
  0x1f   : > { %447 = vrot.lane.b32.xlu1 %v4207_v7, %s4145_s25 }
  0x21   : > { %445 = vrot.lane.b32.xlu0 %v4196_v3, %s4145_s25  ;;  %3713 = vmatmul.mubr.msk.bf16.gmra.mrb[4].mxu0 %vm207_vm1, %v4037_v10 }
  0x22   : > { %1933 = vmatprep.mubr.bf16.mxu0 %v4142_v0 }
  0x23   : > { %1881 = vrot.lane.b32.xlu1 %v4201_v5, %s4143_s19 }
  0x25   : > { %449 = vrot.lane.b32.xlu0 %v4193_v1, %s4145_s25 }
  0x27   : > { %1885 = vrot.lane.b32.xlu1 %v4030_v11, %s4143_s19 }
  0x29   : > { %1883 = vrot.lane.b32.xlu0 %v4203_v6, %s4143_s19 }
  0x2b   : > { %537 = vrot.lane.b32.xlu1 %v4207_v7, %s4146_s26 }
  0x2d   : > { %535 = vrot.lane.b32.xlu0 %v4196_v3, %s4146_s26 }
  0x2f   : > { %1970 = vrot.lane.b32.xlu1 %v4201_v5, %s4144_s22 }
  0x31   : > { %539 = vrot.lane.b32.xlu0 %v4193_v1, %s4146_s26 }
  0x33   : > { %1974 = vrot.lane.b32.xlu1 %v4030_v11, %s4144_s22 }
  0x35   : > { %1972 = vrot.lane.b32.xlu0 %v4203_v6, %s4144_s22 }
  0x37   : > { %627 = vrot.lane.b32.xlu1 %v4207_v7, %s4147_s27 }
  0x39   : > { %625 = vrot.lane.b32.xlu0 %v4196_v3, %s4147_s27 }
  0x3b   : > { %2059 = vrot.lane.b32.xlu1 %v4201_v5, %s4145_s25 }
  0x3d   : > { %629 = vrot.lane.b32.xlu0 %v4193_v1, %s4147_s27 }
  0x3f   : > { %2063 = vrot.lane.b32.xlu1 %v4030_v11, %s4145_s25 }
  0x41   : > { %2061 = vrot.lane.b32.xlu0 %v4203_v6, %s4145_s25 }
  0x43   : > { %717 = vrot.lane.b32.xlu1 %v4207_v7, %s4148_s28 }
  0x45   : > { %715 = vrot.lane.b32.xlu0 %v4196_v3, %s4148_s28 }
  0x47   : > { %2148 = vrot.lane.b32.xlu1 %v4201_v5, %s4146_s26 }
  0x49   : > { %719 = vrot.lane.b32.xlu0 %v4193_v1, %s4148_s28 }
  0x4b   : > { %2152 = vrot.lane.b32.xlu1 %v4030_v11, %s4146_s26 }
  0x4d   : > { %2150 = vrot.lane.b32.xlu0 %v4203_v6, %s4146_s26 }
  0x4f   : > { %807 = vrot.lane.b32.xlu1 %v4207_v7, %s4149_s29 }
  0x51   : > { %805 = vrot.lane.b32.xlu0 %v4196_v3, %s4149_s29 }
  0x53   : > { %2237 = vrot.lane.b32.xlu1 %v4201_v5, %s4147_s27 }
  0x55   : > { %809 = vrot.lane.b32.xlu0 %v4193_v1, %s4149_s29 }
  0x57   : > { %2241 = vrot.lane.b32.xlu1 %v4030_v11, %s4147_s27 }
  0x59   : > { %2239 = vrot.lane.b32.xlu0 %v4203_v6, %s4147_s27 }
  0x5b   : > { %897 = vrot.lane.b32.xlu1 %v4207_v7, %s4150_s30 }
  0x5d   : > { %895 = vrot.lane.b32.xlu0 %v4196_v3, %s4150_s30 }
  0x5f   : > { %2326 = vrot.lane.b32.xlu1 %v4201_v5, %s4148_s28 }
  0x61   : > { %899 = vrot.lane.b32.xlu0 %v4193_v1, %s4150_s30 }
  0x63   : > { %2330 = vrot.lane.b32.xlu1 %v4030_v11, %s4148_s28 }
  0x65   : > { %2328 = vrot.lane.b32.xlu0 %v4203_v6, %s4148_s28 }
  0x67   : > { %2417 = vrot.lane.b32.xlu1 %v4203_v6, %s4149_s29 }
  0x69   : > { %2415 = vrot.lane.b32.xlu0 %v4201_v5, %s4149_s29 }
  0x6b   : > { %1077 = vrot.lane.b32.xlu1 %v4301_v13, %s4143_s19 }
  0x6d   : > { %2419 = vrot.lane.b32.xlu0 %v4030_v11, %s4149_s29 }
  0x6f   : > { %1081 = vrot.lane.b32.xlu1 %v4308_v14, %s4143_s19 }
  0x71   : > { %1079 = vrot.lane.b32.xlu0 %v4311_v15, %s4143_s19 }
  0x73   : > { %2506 = vrot.lane.b32.xlu1 %v4203_v6, %s4150_s30 }
  0x75   : > { %2504 = vrot.lane.b32.xlu0 %v4201_v5, %s4150_s30 }
  0x77   : > { %1166 = vrot.lane.b32.xlu1 %v4301_v13, %s4144_s22 }
  0x79   : > { %2508 = vrot.lane.b32.xlu0 %v4030_v11, %s4150_s30 }
  0x7b   : > { %1170 = vrot.lane.b32.xlu1 %v4308_v14, %s4144_s22 }
  0x7d   : > { %1168 = vrot.lane.b32.xlu0 %v4311_v15, %s4144_s22 }
  0x7f   : > { %1257 = vrot.lane.b32.xlu1 %v4311_v15, %s4145_s25 }
  0x81   : > { %1255 = vrot.lane.b32.xlu0 %v4301_v13, %s4145_s25 }
  0x83   : > { %2685 = vrot.lane.b32.xlu1 %v4331_v17, %s4143_s19 }
  0x85   : > { %1259 = vrot.lane.b32.xlu0 %v4308_v14, %s4145_s25  ;;  %v203_v20 = vpop.permute.xlu1 %202 }
  0x87   : > { %v199_v21 = vpop.permute.xlu0 %198  ;;  %2689 = vrot.lane.b32.xlu1 %v4338_v18, %s4143_s19 }
  0x89   : > { %2687 = vrot.lane.b32.xlu0 %v4342_v19, %s4143_s19  ;;  %v356_v22 = vpop.permute.xlu1 %355 }
  0x8b   : > { %v201_v23 = vpop.permute.xlu0 %200  ;;  %1346 = vrot.lane.b32.xlu1 %v4311_v15, %s4146_s26 }
  0x8c   : > { %v206_v24 = vsel %vm204_vm2, %v201_v23, %v203_v20  ;;  %v205_v25 = vsel %vm204_vm2, %v199_v21, %v201_v23  ;;  %v4051_v23 = vld [vmem:[%s5150_s1 + $0xfc] sm:$0xff]  }
  0x8d   : > { %3561 = vmatprep.subr.msk.bf16.mxu1 %vm214_vm0, %v206_v24  ;;  %v216_v26 = vsel %vm214_vm0, %v205_v25, 0  ;;  %1344 = vrot.lane.b32.xlu0 %v4301_v13, %s4146_s26  ;;  %v360_v28 = vpop.permute.xlu1 %359 }
  0x8e   : > { %222 = vmatpush1.bf16.msra.mxu1 %v216_v26 }
  0x8f   : > { %v358_v29 = vpop.permute.xlu0 %357  ;;  %3566 = vmatprep.subr.msk.bf16.mxu1 %vm214_vm0, %v4207_v7  ;;  %2774 = vrot.lane.b32.xlu1 %v4331_v17, %s4144_s22 }
  0x90   : > { %v363_v31 = vsel %vm361_vm3, %v358_v29, %v360_v28  ;;  %v362_v39 = vsel %vm361_vm3, %v356_v22, %v358_v29  ;;  %v4050_v22 = vld [vmem:[%s5150_s1 + $0x24] sm:$0xff]  }
  0x91   : > { %3562 = vmatmul.mubr.msk.bf16.vlgmr.msra.gmra.mrb[0].mxu1 %vm207_vm1, %v4035_v27  ;;  %1348 = vrot.lane.b32.xlu0 %v4308_v14, %s4146_s26  ;;  %v448_v32 = vpop.permute.xlu1 %447  ;;  %v371_v46 = vsel %vm214_vm0, %v362_v39, 0 }
  0x92   : > { %293 = vmatpush1.bf16.msra.mxu1 %v287_v30  ;;  %263 = vmatprep.mubr.bf16.mxu1 %v4142_v0 }
  0x93   : > { %v446_v33 = vpop.permute.xlu0 %445  ;;  %3574 = vmatprep.subr.msk.bf16.mxu1 %vm214_vm0, %v363_v31  ;;  %2778 = vrot.lane.b32.xlu1 %v4338_v18, %s4144_s22 }
  0x94   : > { %v452_v60 = vsel %vm451_vm4, %v446_v33, %v448_v32  ;;  %v4052_v33 = vld [vmem:[%s5150_s1 + $0x2c] ss:$0 sps:$4 sm:$0xff]  }
  0x95   : > { %2776 = vrot.lane.b32.xlu0 %v4342_v19, %s4144_s22  ;;  %v1882_v35 = vpop.permute.xlu1 %1881  ;;  %v461_v1 = vsel %vm214_vm0, %v452_v60, 0 }
  0x97   : > { %v450_v36 = vpop.permute.xlu0 %449  ;;  %1435 = vrot.lane.b32.xlu1 %v4311_v15, %s4147_s27 }
  0x98   : > { %v453_v48 = vsel %vm451_vm4, %v448_v32, %v450_v36 }
  0x99   : > { %3563 = vmatmul.mubr.msk.bf16.gmra.mrb[4].mxu1 %vm207_vm1, %v4038_v34  ;;  %1433 = vrot.lane.b32.xlu0 %v4301_v13, %s4147_s27  ;;  %v1886_v37 = vpop.permute.xlu1 %1885  ;;  %v4053_v34 = vld [vmem:[%s5150_s1 + $0x104] ss:$0 sps:$4 sm:$0xff]  }
  0x9a   : > { %324 = vmatprep.mubr.bf16.mxu1 %v4142_v0 }
  0x9b   : > { %v1884_v38 = vpop.permute.xlu0 %1883  ;;  %2863 = vrot.lane.b32.xlu1 %v4331_v17, %s4145_s25 }
  0x9c   : > { %v1887_v40 = vsel %vm204_vm2, %v1882_v35, %v1884_v38  ;;  %v1888_v41 = vsel %vm204_vm2, %v1884_v38, %v1886_v37 }
  0x9d   : > { %v1896_v42 = vsel %vm214_vm0, %v1887_v40, 0  ;;  %3720 = vmatprep.subr.msk.bf16.mxu0 %vm214_vm0, %v1888_v41  ;;  %1437 = vrot.lane.b32.xlu0 %v4308_v14, %s4147_s27  ;;  %v4399_v45 = vpop.permute.xlu1 %537  ;;  %v4054_v40 = vld [vmem:[%s5150_s1 + $0x30] sm:$0xff]   ;;  %v4055_v41 = vld [vmem:[%s5150_s1 + $0x108] sm:$0xff]  }
  0x9e   : > { %1902 = vmatpush1.bf16.msra.mxu0 %v1896_v42 }
  0x9f   : > { %v4402_v47 = vpop.permute.xlu0 %535  ;;  %2867 = vrot.lane.b32.xlu1 %v4338_v18, %s4145_s25 }
  0xa0   : > { %v542_v21 = vsel %vm541_vm5, %v4402_v47, %v4399_v45 }
  0xa1   : > { %3567 = vmatmul.mubr.msk.bf16.vlgmr.msra.gmra.mrb[0].mxu1 %vm207_vm1, %v4039_v43  ;;  %3721 = vmatmul.mubr.msk.bf16.vlgmr.msra.gmra.mrb[0].mxu0 %vm207_vm1, %v4040_v44  ;;  %v1971_v49 = vpop.permute.xlu1 %1970  ;;  %v551_v25 = vsel %vm214_vm0, %v542_v21, 0 }
  0xa2   : > { %377 = vmatpush1.bf16.msra.mxu1 %v371_v46  ;;  %334 = vmatprep.mubr.bf16.mxu1 %v4142_v0 }
  0xa3   : > { %v540_v50 = vpop.permute.xlu0 %539  ;;  %1943 = vmatprep.mubr.bf16.mxu0 %v4142_v0  ;;  %3582 = vmatprep.subr.msk.bf16.mxu1 %vm214_vm0, %v453_v48 }
  0xa4   : > { %2865 = vrot.lane.b32.xlu0 %v4342_v19, %s4145_s25  ;;  %1524 = vrot.lane.b32.xlu1 %v4311_v15, %s4148_s28  ;;  %v543_v3 = vsel %vm541_vm5, %v4399_v45, %v540_v50  ;;  %v4056_v50 = vld [vmem:[%s5150_s1 + $0x38] ss:$0 sps:$4 sm:$0xff]  }
  0xa5   : > { %v1975_v53 = vpop.permute.xlu1 %1974 }
  0xa7   : > { %v1973_v54 = vpop.permute.xlu0 %1972 }
  0xa8   : > { %v1976_v55 = vsel %vm361_vm3, %v1971_v49, %v1973_v54  ;;  %v1977_v56 = vsel %vm361_vm3, %v1973_v54, %v1975_v53  ;;  %1522 = vrot.lane.b32.xlu0 %v4301_v13, %s4148_s28  ;;  %2952 = vrot.lane.b32.xlu1 %v4331_v17, %s4146_s26 }
  0xa9   : > { %3568 = vmatmul.mubr.msk.bf16.gmra.mrb[8].mxu1 %vm207_vm1, %v4041_v51  ;;  %3722 = vmatmul.mubr.msk.bf16.gmra.mrb[8].mxu0 %vm207_vm1, %v4042_v52  ;;  %v1985_v57 = vsel %vm214_vm0, %v1976_v55, 0  ;;  %v4433_v58 = vpop.permute.xlu1 %627  ;;  %v4057_v51 = vld [vmem:[%s5150_s1 + $0x110] ss:$0 sps:$4 sm:$0xff]  }
  0xaa   : > { %3728 = vmatprep.subr.msk.bf16.mxu0 %vm214_vm0, %v1977_v56  ;;  %408 = vmatprep.mubr.bf16.mxu1 %v4142_v0  ;;  %v4058_v56 = vld [vmem:[%s5150_s1 + $0x3c] sm:$0xff]  }
  0xab   : > { %1991 = vmatpush1.bf16.msra.mxu0 %v1985_v57  ;;  %2022 = vmatprep.mubr.bf16.mxu0 %v4142_v0  ;;  %v4436_v59 = vpop.permute.xlu0 %625  ;;  %v4059_v57 = vld [vmem:[%s5150_s1 + $0x114] sm:$0xff]  }
  0xac   : > { %1526 = vrot.lane.b32.xlu0 %v4308_v14, %s4148_s28  ;;  %2956 = vrot.lane.b32.xlu1 %v4338_v18, %s4146_s26  ;;  %v632_v38 = vsel %vm631_vm6, %v4436_v59, %v4433_v58 }
  0xad   : > { %v2060_v63 = vpop.permute.xlu1 %2059  ;;  %v641_v44 = vsel %vm214_vm0, %v632_v38, 0 }
  0xaf   : > { %v630_v2 = vpop.permute.xlu0 %629 }
  0xb0   : > { %2954 = vrot.lane.b32.xlu0 %v4342_v19, %s4146_s26  ;;  %1613 = vrot.lane.b32.xlu1 %v4311_v15, %s4149_s29  ;;  %v633_v27 = vsel %vm631_vm6, %v4433_v58, %v630_v2 }
  0xb1   : > { %3575 = vmatmul.mubr.msk.bf16.vlgmr.msra.gmra.mrb[0].mxu1 %vm207_vm1, %v4043_v61  ;;  %3729 = vmatmul.mubr.msk.bf16.vlgmr.msra.gmra.mrb[0].mxu0 %vm207_vm1, %v4044_v62  ;;  %v2064_v4 = vpop.permute.xlu1 %2063 }
  0xb2   : > { %467 = vmatpush1.bf16.msra.mxu1 %v461_v1  ;;  %418 = vmatprep.mubr.bf16.mxu1 %v4142_v0 }
  0xb3   : > { %2032 = vmatprep.mubr.bf16.mxu0 %v4142_v0  ;;  %v2062_v5 = vpop.permute.xlu0 %2061  ;;  %3590 = vmatprep.subr.msk.bf16.mxu1 %vm214_vm0, %v543_v3 }
  0xb4   : > { %v2065_v6 = vsel %vm451_vm4, %v2060_v63, %v2062_v5  ;;  %v2066_v7 = vsel %vm451_vm4, %v2062_v5, %v2064_v4  ;;  %1611 = vrot.lane.b32.xlu0 %v4301_v13, %s4149_s29  ;;  %3041 = vrot.lane.b32.xlu1 %v4331_v17, %s4147_s27  ;;  %v4060_v4 = vld [vmem:[%s5150_s1 + $0x44] ss:$0 sps:$4 sm:$0xff]   ;;  %v4061_v5 = vld [vmem:[%s5150_s1 + $0x11c] ss:$0 sps:$4 sm:$0xff]  }
  0xb5   : > { %v2074_v10 = vsel %vm214_vm0, %v2065_v6, 0  ;;  %3736 = vmatprep.subr.msk.bf16.mxu0 %vm214_vm0, %v2066_v7  ;;  %v4475_v11 = vpop.permute.xlu1 %717 }
  0xb6   : > { %2080 = vmatpush1.bf16.msra.mxu0 %v2074_v10  ;;  %v4063_v10 = vld [vmem:[%s5150_s1 + $0x120] sm:$0xff]  }
  0xb7   : > { %v4477_v12 = vpop.permute.xlu0 %715 }
  0xb8   : > { %1615 = vrot.lane.b32.xlu0 %v4308_v14, %s4149_s29  ;;  %3045 = vrot.lane.b32.xlu1 %v4338_v18, %s4147_s27  ;;  %v722_v55 = vsel %vm721_vm7, %v4477_v12, %v4475_v11 }
  0xb9   : > { %3576 = vmatmul.mubr.msk.bf16.gmra.mrb[12].mxu1 %vm207_vm1, %v4048_v8  ;;  %3730 = vmatmul.mubr.msk.bf16.gmra.mrb[12].mxu0 %vm207_vm1, %v4049_v9  ;;  %v2149_v16 = vpop.permute.xlu1 %2148  ;;  %v731_v59 = vsel %vm214_vm0, %v722_v55, 0  ;;  %v4062_v9 = vld [vmem:[%s5150_s1 + $0x48] sm:$0xff]  }
  0xba   : > { %498 = vmatprep.mubr.bf16.mxu1 %v4142_v0  ;;  %2111 = vmatprep.mubr.bf16.mxu0 %v4142_v0  ;;  %v4075_v55 = vld [vmem:[%s5150_s1 + $0x144] sm:$0xff]  }
  0xbb   : > { %v720_v20 = vpop.permute.xlu0 %719 }
  0xbc   : > { %3043 = vrot.lane.b32.xlu0 %v4342_v19, %s4147_s27  ;;  %1702 = vrot.lane.b32.xlu1 %v4311_v15, %s4150_s30  ;;  %v723_v46 = vsel %vm721_vm7, %v4475_v11, %v720_v20  ;;  %s170_s27 = scalar_lea.vmem %s5152_s3, %s3552_s5 }
  0xbd   : > { %v2153_v24 = vpop.permute.xlu1 %2152 }
  0xbf   : > { %v2151_v26 = vpop.permute.xlu0 %2150 }
  0xc0   : > { %v2154_v28 = vsel %vm541_vm5, %v2149_v16, %v2151_v26  ;;  %1700 = vrot.lane.b32.xlu0 %v4301_v13, %s4150_s30  ;;  %3130 = vrot.lane.b32.xlu1 %v4331_v17, %s4148_s28  ;;  %v2155_v29 = vsel %vm541_vm5, %v2151_v26, %v2153_v24  ;;  %v4064_v24 = vld [vmem:[%s5150_s1 + $0x50] ss:$0 sps:$4 sm:$0xff]  }
  0xc1   : > { %3583 = vmatmul.mubr.msk.bf16.vlgmr.msra.gmra.mrb[0].mxu1 %vm207_vm1, %v4050_v22  ;;  %3737 = vmatmul.mubr.msk.bf16.vlgmr.msra.gmra.mrb[0].mxu0 %vm207_vm1, %v4051_v23  ;;  %v2163_v30 = vsel %vm214_vm0, %v2154_v28, 0  ;;  %v4513_v31 = vpop.permute.xlu1 %807 }
  0xc2   : > { %557 = vmatpush1.bf16.msra.mxu1 %v551_v25  ;;  %508 = vmatprep.mubr.bf16.mxu1 %v4142_v0  ;;  %v4065_v25 = vld [vmem:[%s5150_s1 + $0x128] ss:$0 sps:$4 sm:$0xff]  }
  0xc3   : > { %2121 = vmatprep.mubr.bf16.mxu0 %v4142_v0  ;;  %3598 = vmatprep.subr.msk.bf16.mxu1 %vm214_vm0, %v633_v27  ;;  %v4517_v32 = vpop.permute.xlu0 %805 }
  0xc4   : > { %3744 = vmatprep.subr.msk.bf16.mxu0 %vm214_vm0, %v2155_v29  ;;  %1704 = vrot.lane.b32.xlu0 %v4308_v14, %s4150_s30  ;;  %v812_v8 = vsel %vm811_vm8, %v4517_v32, %v4513_v31 }
  0xc5   : > { %2169 = vmatpush1.bf16.msra.mxu0 %v2163_v30  ;;  %3134 = vrot.lane.b32.xlu1 %v4338_v18, %s4148_s28  ;;  %v2238_v35 = vpop.permute.xlu1 %2237  ;;  %v821_v12 = vsel %vm214_vm0, %v812_v8, 0  ;;  %v4066_v30 = vld [vmem:[%s5150_s1 + $0x54] sm:$0xff]  }
  0xc6   : > { %v4079_v8 = vld [vmem:[%s5150_s1 + $0x150] sm:$0xff]  }
  0xc7   : > { %v810_v36 = vpop.permute.xlu0 %809 }
  0xc8   : > { %3132 = vrot.lane.b32.xlu0 %v4342_v19, %s4148_s28  ;;  %v813_v62 = vsel %vm811_vm8, %v4513_v31, %v810_v36  ;;  %v4067_v31 = vld [vmem:[%s5150_s1 + $0x12c] sm:$0xff]  }
  0xc9   : > { %3584 = vmatmul.mubr.msk.bf16.gmra.mrb[16].mxu1 %vm207_vm1, %v4052_v33  ;;  %3738 = vmatmul.mubr.msk.bf16.gmra.mrb[16].mxu0 %vm207_vm1, %v4053_v34  ;;  %v2242_v14 = vpop.permute.xlu1 %2241 }
  0xca   : > { %588 = vmatprep.mubr.bf16.mxu1 %v4142_v0  ;;  %2200 = vmatprep.mubr.bf16.mxu0 %v4142_v0 }
  0xcb   : > { %v2240_v37 = vpop.permute.xlu0 %2239  ;;  %3221 = vrot.lane.b32.xlu1 %v4342_v19, %s4149_s29 }
  0xcc   : > { %v2244_v39 = vsel %vm631_vm6, %v2240_v37, %v2242_v14  ;;  %3219 = vrot.lane.b32.xlu0 %v4331_v17, %s4149_s29  ;;  %v2243_v42 = vsel %vm631_vm6, %v2238_v35, %v2240_v37  ;;  %v4068_v14 = vld [vmem:[%s5150_s1 + $0x5c] ss:$0 sps:$4 sm:$0xff]   ;;  %v4069_v37 = vld [vmem:[%s5150_s1 + $0x134] ss:$0 sps:$4 sm:$0xff]  }
  0xcd   : > { %3752 = vmatprep.subr.msk.bf16.mxu0 %vm214_vm0, %v2244_v39  ;;  %v4552_v43 = vpop.permute.xlu1 %897  ;;  %v2252_v47 = vsel %vm214_vm0, %v2243_v42, 0 }
  0xcf   : > { %v4555_v45 = vpop.permute.xlu0 %895  ;;  %3308 = vrot.lane.b32.xlu1 %v4331_v17, %s4150_s30 }
  0xd0   : > { %3223 = vrot.lane.b32.xlu0 %v4338_v18, %s4149_s29  ;;  %v902_v28 = vsel %vm901_vm9, %v4555_v45, %v4552_v43 }
  0xd1   : > { %3591 = vmatmul.mubr.msk.bf16.vlgmr.msra.gmra.mrb[0].mxu1 %vm207_vm1, %v4054_v40  ;;  %3745 = vmatmul.mubr.msk.bf16.vlgmr.msra.gmra.mrb[0].mxu0 %vm207_vm1, %v4055_v41  ;;  %v2327_v48 = vpop.permute.xlu1 %2326  ;;  %v911_v33 = vsel %vm214_vm0, %v902_v28, 0 }
  0xd2   : > { %647 = vmatpush1.bf16.msra.mxu1 %v641_v44  ;;  %598 = vmatprep.mubr.bf16.mxu1 %v4142_v0  ;;  %v1000_v44 = vsel %vm214_vm0, %v4301_v13, 0 }
  0xd3   : > { %2210 = vmatprep.mubr.bf16.mxu0 %v4142_v0  ;;  %3606 = vmatprep.subr.msk.bf16.mxu1 %vm214_vm0, %v723_v46  ;;  %v900_v49 = vpop.permute.xlu0 %899 }
  0xd4   : > { %2258 = vmatpush1.bf16.msra.mxu0 %v2252_v47  ;;  %3312 = vrot.lane.b32.xlu1 %v4338_v18, %s4150_s30  ;;  %v903_v21 = vsel %vm901_vm9, %v4552_v43, %v900_v49 }
  0xd5   : > { %3310 = vrot.lane.b32.xlu0 %v4342_v19, %s4150_s30  ;;  %v2331_v52 = vpop.permute.xlu1 %2330 }
  0xd7   : > { %v2329_v53 = vpop.permute.xlu0 %2328 }
  0xd8   : > { %v2333_v54 = vsel %vm721_vm7, %v2329_v53, %v2331_v52  ;;  %v2332_v58 = vsel %vm721_vm7, %v2327_v48, %v2329_v53  ;;  %v2608_v48 = vsel %vm214_vm0, %v4331_v17, 0  ;;  %v4073_v17 = vld [vmem:[%s5150_s1 + $0x140] ss:$0 sps:$4 sm:$0xff]  }
  0xd9   : > { %3592 = vmatmul.mubr.msk.bf16.gmra.mrb[20].mxu1 %vm207_vm1, %v4056_v50  ;;  %3746 = vmatmul.mubr.msk.bf16.gmra.mrb[20].mxu0 %vm207_vm1, %v4057_v51  ;;  %v2418_v60 = vpop.permute.xlu1 %2417  ;;  %v2341_v63 = vsel %vm214_vm0, %v2332_v58, 0  ;;  %v4072_v51 = vld [vmem:[%s5150_s1 + $0x68] ss:$0 sps:$4 sm:$0xff]  }
  0xda   : > { %678 = vmatprep.mubr.bf16.mxu1 %v4142_v0  ;;  %2289 = vmatprep.mubr.bf16.mxu0 %v4142_v0 }
  0xdb   : > { %3760 = vmatprep.subr.msk.bf16.mxu0 %vm214_vm0, %v2333_v54  ;;  %v2416_v18 = vpop.permute.xlu0 %2415 }
  0xdc   : > { %v2421_v11 = vsel %vm811_vm8, %v2416_v18, %v2418_v60  ;;  %v4074_v18 = vld [vmem:[%s5150_s1 + $0x6c] sm:$0xff]  }
  0xdd   : > { %v4605_v2 = vpop.permute.xlu1 %1077  ;;  %v2430_v22 = vsel %vm214_vm0, %v2421_v11, 0 }
  0xdf   : > { %v2420_v61 = vpop.permute.xlu0 %2419 }
  0xe0   : > { %v2422_v1 = vsel %vm811_vm8, %v2418_v60, %v2420_v61 }
  0xe1   : > { %3599 = vmatmul.mubr.msk.bf16.vlgmr.msra.gmra.mrb[0].mxu1 %vm207_vm1, %v4058_v56  ;;  %3753 = vmatmul.mubr.msk.bf16.vlgmr.msra.gmra.mrb[0].mxu0 %vm207_vm1, %v4059_v57  ;;  %v4618_v6 = vpop.permute.xlu1 %1081 }
  0xe2   : > { %737 = vmatpush1.bf16.msra.mxu1 %v731_v59  ;;  %688 = vmatprep.mubr.bf16.mxu1 %v4142_v0 }
  0xe3   : > { %2299 = vmatprep.mubr.bf16.mxu0 %v4142_v0  ;;  %3614 = vmatprep.subr.msk.bf16.mxu1 %vm214_vm0, %v813_v62  ;;  %v4607_v3 = vpop.permute.xlu0 %1079 }
  0xe4   : > { %2347 = vmatpush1.bf16.msra.mxu0 %v2341_v63  ;;  %v1084_v46 = vsel %vm204_vm2, %v4607_v3, %v4618_v6  ;;  %v1083_v54 = vsel %vm204_vm2, %v4605_v2, %v4607_v3  ;;  %v4076_v2 = vld [vmem:[%s5150_s1 + $0x74] ss:$0 sps:$4 sm:$0xff]   ;;  %v4077_v3 = vld [vmem:[%s5150_s1 + $0x14c] ss:$0 sps:$4 sm:$0xff]  }
  0xe5   : > { %3768 = vmatprep.subr.msk.bf16.mxu0 %vm214_vm0, %v2422_v1  ;;  %v2507_v16 = vpop.permute.xlu1 %2506  ;;  %v1092_v59 = vsel %vm214_vm0, %v1083_v54, 0  ;;  %v4089_v54 = vld [vmem:[%s5150_s1 + $0x170] ss:$0 sps:$4 sm:$0xff]  }
  0xe7   : > { %v2505_v7 = vpop.permute.xlu0 %2504 }
  0xe8   : > { %v2510_v32 = vsel %vm901_vm9, %v2505_v7, %v2507_v16  ;;  %v4078_v7 = vld [vmem:[%s5150_s1 + $0x78] sm:$0xff]  }
  0xe9   : > { %3600 = vmatmul.mubr.msk.bf16.gmra.mrb[24].mxu1 %vm207_vm1, %v4060_v4  ;;  %3754 = vmatmul.mubr.msk.bf16.gmra.mrb[24].mxu0 %vm207_vm1, %v4061_v5  ;;  %v4649_v26 = vpop.permute.xlu1 %1166  ;;  %v2519_v34 = vsel %vm214_vm0, %v2510_v32, 0 }
  0xea   : > { %768 = vmatprep.mubr.bf16.mxu1 %v4142_v0  ;;  %2378 = vmatprep.mubr.bf16.mxu0 %v4142_v0 }
  0xeb   : > { %v2509_v20 = vpop.permute.xlu0 %2508 }
  0xec   : > { %v2511_v23 = vsel %vm901_vm9, %v2507_v16, %v2509_v20 }
  0xed   : > { %v4655_v27 = vpop.permute.xlu1 %1170 }
  0xef   : > { %v4660_v29 = vpop.permute.xlu0 %1168 }
  0xf0   : > { %v1173_v61 = vsel %vm361_vm3, %v4660_v29, %v4655_v27  ;;  %v1172_v6 = vsel %vm361_vm3, %v4649_v26, %v4660_v29  ;;  %v4082_v29 = vld [vmem:[%s5150_s1 + $0x84] sm:$0xff]  }
  0xf1   : > { %3607 = vmatmul.mubr.msk.bf16.vlgmr.msra.gmra.mrb[0].mxu1 %vm207_vm1, %v4062_v9  ;;  %3761 = vmatmul.mubr.msk.bf16.vlgmr.msra.gmra.mrb[0].mxu0 %vm207_vm1, %v4063_v10  ;;  %v4673_v35 = vpop.permute.xlu1 %1257  ;;  %v1181_v10 = vsel %vm214_vm0, %v1172_v6, 0 }
  0xf2   : > { %827 = vmatpush1.bf16.msra.mxu1 %v821_v12  ;;  %778 = vmatprep.mubr.bf16.mxu1 %v4142_v0 }
  0xf3   : > { %2388 = vmatprep.mubr.bf16.mxu0 %v4142_v0  ;;  %3622 = vmatprep.subr.msk.bf16.mxu1 %vm214_vm0, %v903_v21  ;;  %v4676_v36 = vpop.permute.xlu0 %1255 }
  0xf4   : > { %2436 = vmatpush1.bf16.msra.mxu0 %v2430_v22  ;;  %v4701_v41 = vpop.f32.mrb[4].mxu0  ;;  %v1261_v28 = vsel %vm451_vm4, %v4676_v36, %v4673_v35 }
  0xf5   : > { %3776 = vmatprep.subr.msk.bf16.mxu0 %vm214_vm0, %v2511_v23  ;;  %v2686_v38 = vpop.permute.xlu1 %2685  ;;  %v4703_v43 = vpop.f32.mrb[5].mxu0  ;;  %v1270_v32 = vsel %vm214_vm0, %v1261_v28, 0  ;;  %v4096_v28 = vld [vmem:[%s5150_s1 + $0xb0] ss:$0 sps:$4 sm:$0xff]  }
  0xf6   : > { %v1857_v45 = vpop.f32.mrb[6].mxu0 }
  0xf7   : > { %v4689_v39 = vpop.permute.xlu0 %1259  ;;  %v1858_v47 = vpop.f32.mrb[7].mxu0  ;;  %v4087_v45 = vld [vmem:[%s5150_s1 + $0x168] sm:$0xff]  }
  0xf8   : > { %v1262_v16 = vsel %vm451_vm4, %v4673_v35, %v4689_v39  ;;  %v4084_v39 = vld [vmem:[%s5150_s1 + $0x8c] ss:$0 sps:$4 sm:$0xff]  }
  0xf9   : > { %3608 = vmatmul.mubr.msk.bf16.gmra.mrb[28].mxu1 %vm207_vm1, %v4064_v24  ;;  %3762 = vmatmul.mubr.msk.bf16.gmra.mrb[28].mxu0 %vm207_vm1, %v4065_v25  ;;  %v2690_v40 = vpop.permute.xlu1 %2689  ;;  %v4080_v24 = vld [vmem:[%s5150_s1 + $0x80] ss:$0 sps:$4 sm:$0xff]   ;;  %v4081_v25 = vld [vmem:[%s5150_s1 + $0x158] ss:$0 sps:$4 sm:$0xff]  }
  0xfa   : > { %858 = vmatprep.mubr.bf16.mxu1 %v4142_v0  ;;  %2467 = vmatprep.mubr.bf16.mxu0 %v4142_v0 }
  0xfb   : > { %v2688_v42 = vpop.permute.xlu0 %2687 }
  0xfc   : > { %v2692_v49 = vsel %vm204_vm2, %v2688_v42, %v2690_v40  ;;  %v2691_v56 = vsel %vm204_vm2, %v2686_v38, %v2688_v42 }
  0xfd   : > { %v4716_v50 = vpop.permute.xlu1 %1346  ;;  %v2700_v60 = vsel %vm214_vm0, %v2691_v56, 0 }
  0xff   : > { %v4718_v13 = vpop.permute.xlu0 %1344 }
 0x100   : > { %v1350_v42 = vsel %vm541_vm5, %v4718_v13, %v4716_v50 }
 0x101   : > { %3615 = vmatmul.mubr.msk.bf16.vlgmr.msra.gmra.mrb[0].mxu1 %vm207_vm1, %v4066_v30  ;;  %3769 = vmatmul.mubr.msk.bf16.vlgmr.msra.gmra.mrb[0].mxu0 %vm207_vm1, %v4067_v31  ;;  %v2775_v52 = vpop.permute.xlu1 %2774  ;;  %v4083_v30 = vld [vmem:[%s5150_s1 + $0x15c] sm:$0xff]   ;;  %v1359_v47 = vsel %vm214_vm0, %v1350_v42, 0 }
 0x102   : > { %917 = vmatpush1.bf16.msra.mxu1 %v911_v33  ;;  %868 = vmatprep.mubr.bf16.mxu1 %v4142_v0 }
 0x103   : > { %2477 = vmatprep.mubr.bf16.mxu0 %v4142_v0  ;;  %2525 = vmatpush1.bf16.msra.mxu0 %v2519_v34  ;;  %v4729_v53 = vpop.permute.xlu0 %1348 }
 0x104   : > { %3634 = vmatprep.subr.msk.bf16.mxu1 %vm214_vm0, %v4311_v15  ;;  %3788 = vmatprep.subr.msk.bf16.mxu0 %vm214_vm0, %v4342_v19  ;;  %v4070_v15 = vld [vmem:[%s5150_s1 + $0x60] sm:$0xff]   ;;  %v4071_v19 = vld [vmem:[%s5150_s1 + $0x138] sm:$0xff]  }
 0x105   : > { %v2779_v57 = vpop.permute.xlu1 %2778 }
 0x107   : > { %v2777_v58 = vpop.permute.xlu0 %2776 }
 0x108   : > { %v2781_v62 = vsel %vm361_vm3, %v2777_v58, %v2779_v57  ;;  %v2780_v9 = vsel %vm361_vm3, %v2775_v52, %v2777_v58  ;;  %v4090_v57 = vld [vmem:[%s5150_s1 + $0x9c] sm:$0xff]   ;;  %v4091_v58 = vld [vmem:[%s5150_s1 + $0x174] sm:$0xff]  }
 0x109   : > { %3616 = vmatmul.mubr.msk.bf16.gmra.mrb[32].mxu1 %vm207_vm1, %v4068_v14  ;;  %3770 = vmatmul.mubr.msk.bf16.gmra.mrb[32].mxu0 %vm207_vm1, %v4069_v37  ;;  %v4755_v63 = vpop.permute.xlu1 %1435  ;;  %v2789_v20 = vsel %vm214_vm0, %v2780_v9, 0  ;;  %v1351_v14 = vsel %vm541_vm5, %v4716_v50, %v4729_v53  ;;  %v4088_v53 = vld [vmem:[%s5150_s1 + $0x98] ss:$0 sps:$4 sm:$0xff]   ;;  %v4094_v9 = vld [vmem:[%s5150_s1 + $0xa8] sm:$0xff]  }
 0x10a   : > { %948 = vmatprep.mubr.bf16.mxu1 %v4142_v0  ;;  %2556 = vmatprep.mubr.bf16.mxu0 %v4142_v0 }
 0x10b   : > { %v4757_v1 = vpop.permute.xlu0 %1433 }
 0x10c   : > { %v1439_v56 = vsel %vm631_vm6, %v4757_v1, %v4755_v63 }
 0x10d   : > { %v2864_v4 = vpop.permute.xlu1 %2863 }
 0x10f   : > { %v4769_v5 = vpop.permute.xlu0 %1437 }
 0x111   : > { %3623 = vmatmul.mubr.msk.bf16.vlgmr.msra.gmra.mrb[0].mxu1 %vm207_vm1, %v4070_v15  ;;  %3777 = vmatmul.mubr.msk.bf16.vlgmr.msra.gmra.mrb[0].mxu0 %vm207_vm1, %v4071_v19  ;;  %v2868_v11 = vpop.permute.xlu1 %2867  ;;  %v4085_v15 = vld [vmem:[%s5150_s1 + $0x164] ss:$0 sps:$4 sm:$0xff]  }
 0x112   : > { %1006 = vmatpush1.bf16.msra.mxu1 %v1000_v44  ;;  %958 = vmatprep.mubr.bf16.mxu1 %v4142_v0  ;;  %v4086_v44 = vld [vmem:[%s5150_s1 + $0x90] sm:$0xff]  }
 0x113   : > { %2566 = vmatprep.mubr.bf16.mxu0 %v4142_v0  ;;  %3643 = vmatprep.subr.msk.bf16.mxu1 %vm214_vm0, %v1084_v46 }
 0x114   : > { %2614 = vmatpush1.bf16.msra.mxu0 %v2608_v48 }
 0x115   : > { %3797 = vmatprep.subr.msk.bf16.mxu0 %vm214_vm0, %v2692_v49 }
 0x116   : > { %v2866_v12 = vpop.permute.xlu0 %2865  ;;  %v4794_v22 = vpop.permute.xlu1 %1524 }
 0x117   : > { %v2870_v21 = vsel %vm451_vm4, %v2866_v12, %v2868_v11  ;;  %v2869_v31 = vsel %vm451_vm4, %v2864_v4, %v2866_v12  ;;  %v4093_v4 = vld [vmem:[%s5150_s1 + $0x17c] ss:$0 sps:$4 sm:$0xff]  }
 0x118   : > { %v2878_v35 = vsel %vm214_vm0, %v2869_v31, 0 }
 0x119   : > { %3624 = vmatmul.mubr.msk.bf16.gmra.mrb[36].mxu1 %vm207_vm1, %v4072_v51  ;;  %3778 = vmatmul.mubr.msk.bf16.gmra.mrb[36].mxu0 %vm207_vm1, %v4073_v17  ;;  %v1440_v51 = vsel %vm631_vm6, %v4755_v63, %v4769_v5 }
 0x11a   : > { %1037 = vmatprep.mubr.bf16.mxu1 %v4142_v0  ;;  %2645 = vmatprep.mubr.bf16.mxu0 %v4142_v0  ;;  %v4796_v23 = vpop.permute.xlu0 %1522  ;;  %v2953_v26 = vpop.permute.xlu1 %2952 }
 0x11b   : > { %v1528_v6 = vsel %vm721_vm7, %v4796_v23, %v4794_v22  ;;  %v3386_v23 = vld [vmem:[%s5151_s2 + $0x8] sm:$0xff] }
 0x11c   : > { %3395 = vperm.xlu1 %4025, %v3386_v23   ;;  %v4109_v23 = vld [vmem:[%s5150_s1 + $0x1ac] ss:$0 sps:$4 sm:$0xff]  }
 0x11e   : > { %v4807_v27 = vpop.permute.xlu0 %1526  ;;  %v2957_v33 = vpop.permute.xlu1 %2956 }
 0x121   : > { %3635 = vmatmul.mubr.msk.bf16.vlgmr.msra.gmra.mrb[0].mxu1 %vm207_vm1, %v4074_v18  ;;  %3789 = vmatmul.mubr.msk.bf16.vlgmr.msra.gmra.mrb[0].mxu0 %vm207_vm1, %v4075_v55 }
 0x122   : > { %1098 = vmatpush1.bf16.msra.mxu1 %v1092_v59  ;;  %1047 = vmatprep.mubr.bf16.mxu1 %v4142_v0  ;;  %v2955_v34 = vpop.permute.xlu0 %2954  ;;  %v4832_v37 = vpop.permute.xlu1 %1613 }
 0x123   : > { %2655 = vmatprep.mubr.bf16.mxu0 %v4142_v0  ;;  %2706 = vmatpush1.bf16.msra.mxu0 %v2700_v60  ;;  %v2959_v36 = vsel %vm541_vm5, %v2955_v34, %v2957_v33  ;;  %v2958_v46 = vsel %vm541_vm5, %v2953_v26, %v2955_v34  ;;  %v1448_v60 = vsel %vm214_vm0, %v1439_v56, 0  ;;  %v4102_v56 = vld [vmem:[%s5150_s1 + $0xc0] sm:$0xff]  }
 0x124   : > { %3651 = vmatprep.subr.msk.bf16.mxu1 %vm214_vm0, %v1173_v61  ;;  %3805 = vmatprep.subr.msk.bf16.mxu0 %vm214_vm0, %v2781_v62  ;;  %v2967_v50 = vsel %vm214_vm0, %v2958_v46, 0 }
 0x126   : > { %v4834_v38 = vpop.permute.xlu0 %1611  ;;  %v3042_v19 = vpop.permute.xlu1 %3041 }
 0x127   : > { %v1617_v33 = vsel %vm811_vm8, %v4834_v38, %v4832_v37 }
 0x128   : > { %v1626_v38 = vsel %vm214_vm0, %v1617_v33, 0 }
 0x129   : > { %3636 = vmatmul.mubr.msk.bf16.gmra.mrb[40].mxu1 %vm207_vm1, %v4076_v2  ;;  %3790 = vmatmul.mubr.msk.bf16.gmra.mrb[40].mxu0 %vm207_vm1, %v4077_v3  ;;  %v1529_v2 = vsel %vm721_vm7, %v4794_v22, %v4807_v27  ;;  %v4092_v3 = vld [vmem:[%s5150_s1 + $0xa4] ss:$0 sps:$4 sm:$0xff]  }
 0x12a   : > { %1129 = vmatprep.mubr.bf16.mxu1 %v4142_v0  ;;  %2737 = vmatprep.mubr.bf16.mxu0 %v4142_v0  ;;  %v4845_v40 = vpop.permute.xlu0 %1615  ;;  %v3046_v48 = vpop.permute.xlu1 %3045  ;;  %v3385_v22 = vld [vmem:[%s5151_s2] sm:$0xff] }
 0x12b   : > { %3390 = vperm.xlu0 %4024, %v3385_v22   ;;  %v4108_v22 = vld [vmem:[%s5150_s1 + $0xd4] ss:$0 sps:$4 sm:$0xff]  }
 0x12e   : > { %v3044_v49 = vpop.permute.xlu0 %3043  ;;  %v4870_v17 = vpop.permute.xlu1 %1702 }
 0x12f   : > { %v3048_v13 = vsel %vm631_vm6, %v3044_v49, %v3046_v48  ;;  %v3047_v59 = vsel %vm631_vm6, %v3042_v19, %v3044_v49 }
 0x130   : > { %v3056_v63 = vsel %vm214_vm0, %v3047_v59, 0 }
 0x131   : > { %3644 = vmatmul.mubr.msk.bf16.vlgmr.msra.gmra.mrb[0].mxu1 %vm207_vm1, %v4078_v7  ;;  %3798 = vmatmul.mubr.msk.bf16.vlgmr.msra.gmra.mrb[0].mxu0 %vm207_vm1, %v4079_v8 }
 0x132   : > { %1187 = vmatpush1.bf16.msra.mxu1 %v1181_v10  ;;  %1139 = vmatprep.mubr.bf16.mxu1 %v4142_v0  ;;  %v4872_v52 = vpop.permute.xlu0 %1700  ;;  %v3131_v18 = vpop.permute.xlu1 %3130  ;;  %v4095_v10 = vld [vmem:[%s5150_s1 + $0x180] sm:$0xff]  }
 0x133   : > { %2747 = vmatprep.mubr.bf16.mxu0 %v4142_v0  ;;  %3659 = vmatprep.subr.msk.bf16.mxu1 %vm214_vm0, %v1262_v16 }
 0x134   : > { %2795 = vmatpush1.bf16.msra.mxu0 %v2789_v20  ;;  %v1537_v20 = vsel %vm214_vm0, %v1528_v6, 0 }
 0x135   : > { %3813 = vmatprep.subr.msk.bf16.mxu0 %vm214_vm0, %v2870_v21 }
 0x136   : > { %v4883_v55 = vpop.permute.xlu0 %1704 }
 0x137   : > { %v3135_v61 = vpop.permute.xlu1 %3134 }
 0x139   : > { %3645 = vmatmul.mubr.msk.bf16.gmra.mrb[44].mxu1 %vm207_vm1, %v4080_v24  ;;  %3799 = vmatmul.mubr.msk.bf16.gmra.mrb[44].mxu0 %vm207_vm1, %v4081_v25  ;;  %v1618_v25 = vsel %vm811_vm8, %v4832_v37, %v4845_v40 }
 0x13a   : > { %1218 = vmatprep.mubr.bf16.mxu1 %v4142_v0  ;;  %2826 = vmatprep.mubr.bf16.mxu0 %v4142_v0  ;;  %v3133_v62 = vpop.permute.xlu0 %3132 }
 0x13b   : > { %v3137_v1 = vsel %vm721_vm7, %v3133_v62, %v3135_v61  ;;  %v3136_v12 = vsel %vm721_vm7, %v3131_v18, %v3133_v62 }
 0x13c   : > { %v3145_v26 = vsel %vm214_vm0, %v3136_v12, 0 }
 0x13d   : > { %v3222_v16 = vpop.permute.xlu1 %3221 }
 0x13e   : > { %v3220_v5 = vpop.permute.xlu0 %3219 }
 0x141   : > { %3652 = vmatmul.mubr.msk.bf16.vlgmr.msra.gmra.mrb[0].mxu1 %vm207_vm1, %v4082_v29  ;;  %3806 = vmatmul.mubr.msk.bf16.vlgmr.msra.gmra.mrb[0].mxu0 %vm207_vm1, %v4083_v30  ;;  %v4097_v29 = vld [vmem:[%s5150_s1 + $0x188] ss:$0 sps:$4 sm:$0xff]   ;;  %v3309_v30 = vpop.permute.xlu1 %3308 }
 0x142   : > { %1276 = vmatpush1.bf16.msra.mxu1 %v1270_v32  ;;  %1228 = vmatprep.mubr.bf16.mxu1 %v4142_v0  ;;  %v3224_v24 = vpop.permute.xlu0 %3223 }
 0x143   : > { %2836 = vmatprep.mubr.bf16.mxu0 %v4142_v0  ;;  %3667 = vmatprep.subr.msk.bf16.mxu1 %vm214_vm0, %v1351_v14  ;;  %v3226_v27 = vsel %vm811_vm8, %v3222_v16, %v3224_v24  ;;  %v3387_v24 = vld [vmem:[%s5151_s2 + $0x10] sm:$0xff] }
 0x144   : > { %2884 = vmatpush1.bf16.msra.mxu0 %v2878_v35  ;;  %3400 = vperm.xlu1 %4025, %v3387_v24  }
 0x145   : > { %3821 = vmatprep.subr.msk.bf16.mxu0 %vm214_vm0, %v2959_v36 }
 0x146   : > { %v3313_v31 = vpop.permute.xlu1 %3312 }
 0x147   : > { %v3311_v32 = vpop.permute.xlu0 %3310 }
 0x148   : > { %v3315_v49 = vsel %vm901_vm9, %v3311_v32, %v3313_v31 }
 0x149   : > { %3653 = vmatmul.mubr.msk.bf16.gmra.mrb[48].mxu1 %vm207_vm1, %v4084_v39  ;;  %3807 = vmatmul.mubr.msk.bf16.gmra.mrb[48].mxu0 %vm207_vm1, %v4085_v15  ;;  %v4098_v39 = vld [vmem:[%s5150_s1 + $0xb4] sm:$0xff]   ;;  %v4099_v15 = vld [vmem:[%s5150_s1 + $0x18c] sm:$0xff]  }
 0x14a   : > { %1307 = vmatprep.mubr.bf16.mxu1 %v4142_v0  ;;  %2915 = vmatprep.mubr.bf16.mxu0 %v4142_v0 }
 0x151   : > { %3660 = vmatmul.mubr.msk.bf16.vlgmr.msra.gmra.mrb[0].mxu1 %vm207_vm1, %v4086_v44  ;;  %3814 = vmatmul.mubr.msk.bf16.vlgmr.msra.gmra.mrb[0].mxu0 %vm207_vm1, %v4087_v45  ;;  %v3225_v44 = vsel %vm811_vm8, %v3220_v5, %v3222_v16 }
 0x152   : > { %1365 = vmatpush1.bf16.msra.mxu1 %v1359_v47  ;;  %1317 = vmatprep.mubr.bf16.mxu1 %v4142_v0  ;;  %v1707_v47 = vsel %vm901_vm9, %v4870_v17, %v4883_v55  ;;  %v3234_v48 = vsel %vm214_vm0, %v3225_v44, 0 }
 0x153   : > { %2925 = vmatprep.mubr.bf16.mxu0 %v4142_v0  ;;  %3675 = vmatprep.subr.msk.bf16.mxu1 %vm214_vm0, %v1440_v51  ;;  %v4100_v51 = vld [vmem:[%s5150_s1 + $0xbc] ss:$0 sps:$4 sm:$0xff]  }
 0x154   : > { %2973 = vmatpush1.bf16.msra.mxu0 %v2967_v50  ;;  %v4101_v50 = vld [vmem:[%s5150_s1 + $0x194] ss:$0 sps:$4 sm:$0xff]  }
 0x155   : > { %3829 = vmatprep.subr.msk.bf16.mxu0 %vm214_vm0, %v3048_v13  ;;  %v1706_v13 = vsel %vm901_vm9, %v4872_v52, %v4870_v17 }
 0x156   : > { %v1715_v52 = vsel %vm214_vm0, %v1706_v13, 0 }
 0x159   : > { %3661 = vmatmul.mubr.msk.bf16.gmra.mrb[52].mxu1 %vm207_vm1, %v4088_v53  ;;  %3815 = vmatmul.mubr.msk.bf16.gmra.mrb[52].mxu0 %vm207_vm1, %v4089_v54 }
 0x15a   : > { %1396 = vmatprep.mubr.bf16.mxu1 %v4142_v0  ;;  %3004 = vmatprep.mubr.bf16.mxu0 %v4142_v0 }
 0x161   : > { %3668 = vmatmul.mubr.msk.bf16.vlgmr.msra.gmra.mrb[0].mxu1 %vm207_vm1, %v4090_v57  ;;  %3822 = vmatmul.mubr.msk.bf16.vlgmr.msra.gmra.mrb[0].mxu0 %vm207_vm1, %v4091_v58  ;;  %v4103_v57 = vld [vmem:[%s5150_s1 + $0x198] sm:$0xff]   ;;  %v3314_v58 = vsel %vm901_vm9, %v3309_v30, %v3311_v32 }
 0x162   : > { %1454 = vmatpush1.bf16.msra.mxu1 %v1448_v60  ;;  %1406 = vmatprep.mubr.bf16.mxu1 %v4142_v0 }
 0x163   : > { %3014 = vmatprep.mubr.bf16.mxu0 %v4142_v0  ;;  %3683 = vmatprep.subr.msk.bf16.mxu1 %vm214_vm0, %v1529_v2 }
 0x164   : > { %3062 = vmatpush1.bf16.msra.mxu0 %v3056_v63  ;;  %v3323_v63 = vsel %vm214_vm0, %v3314_v58, 0 }
 0x165   : > { %3837 = vmatprep.subr.msk.bf16.mxu0 %vm214_vm0, %v3137_v1  ;;  %v4104_v1 = vld [vmem:[%s5150_s1 + $0xc8] ss:$0 sps:$4 sm:$0xff]  }
 0x169   : > { %3669 = vmatmul.mubr.msk.bf16.gmra.mrb[56].mxu1 %vm207_vm1, %v4092_v3  ;;  %3823 = vmatmul.mubr.msk.bf16.gmra.mrb[56].mxu0 %vm207_vm1, %v4093_v4  ;;  %v4105_v3 = vld [vmem:[%s5150_s1 + $0x1a0] ss:$0 sps:$4 sm:$0xff]  }
 0x16a   : > { %1485 = vmatprep.mubr.bf16.mxu1 %v4142_v0  ;;  %3093 = vmatprep.mubr.bf16.mxu0 %v4142_v0 }
 0x16c   : > { %v265_v7 = vpop.f32.mrb[4].mxu1 }
 0x16d   : > { %v267_v8 = vpop.f32.mrb[5].mxu1 }
 0x16e   : > { %v269_v11 = vpop.f32.mrb[6].mxu1 }
 0x16f   : > { %v270_v21 = vpop.f32.mrb[7].mxu1 }
 0x171   : > { %3676 = vmatmul.mubr.msk.bf16.vlgmr.msra.gmra.mrb[0].mxu1 %vm207_vm1, %v4094_v9  ;;  %3830 = vmatmul.mubr.msk.bf16.vlgmr.msra.gmra.mrb[0].mxu0 %vm207_vm1, %v4095_v10  ;;  %v4107_v9 = vld [vmem:[%s5150_s1 + $0x1a4] sm:$0xff]  }
 0x172   : > { %1543 = vmatpush1.bf16.msra.mxu1 %v1537_v20  ;;  %1495 = vmatprep.mubr.bf16.mxu1 %v4142_v0 }
 0x173   : > { %3103 = vmatprep.mubr.bf16.mxu0 %v4142_v0  ;;  %3691 = vmatprep.subr.msk.bf16.mxu1 %vm214_vm0, %v1618_v25 }
 0x174   : > { %3151 = vmatpush1.bf16.msra.mxu0 %v3145_v26 }
 0x175   : > { %3845 = vmatprep.subr.msk.bf16.mxu0 %vm214_vm0, %v3226_v27 }
 0x179   : > { %3677 = vmatmul.mubr.msk.bf16.gmra.mrb[60].mxu1 %vm207_vm1, %v4096_v28  ;;  %3831 = vmatmul.mubr.msk.bf16.gmra.mrb[60].mxu0 %vm207_vm1, %v4097_v29 }
 0x17a   : > { %1574 = vmatprep.mubr.bf16.mxu1 %v4142_v0  ;;  %3182 = vmatprep.mubr.bf16.mxu0 %v4142_v0 }
 0x17c   : > { %v336_v34 = vpop.f32.mrb[8].mxu1  ;;  %v4960_v14 = vpop.f32.mrb[8].mxu0 }
 0x17d   : > { %v337_v35 = vadd.f32 %v336_v34, %v265_v7  ;;  %v338_v36 = vpop.f32.mrb[9].mxu1  ;;  %v4968_v19 = vpop.f32.mrb[9].mxu0 }
 0x17e   : > { %v339_v40 = vadd.f32 %v338_v36, %v267_v8  ;;  %v340_v42 = vpop.f32.mrb[10].mxu1  ;;  %v1949_v37 = vpop.f32.mrb[10].mxu0  ;;  %v4106_v8 = vld [vmem:[%s5150_s1 + $0xcc] sm:$0xff]  }
 0x17f   : > { %v341_v45 = vpop.f32.mrb[11].mxu1  ;;  %v1950_v46 = vpop.f32.mrb[11].mxu0 }
 0x181   : > { %3684 = vmatmul.mubr.msk.bf16.vlgmr.msra.gmra.mrb[0].mxu1 %vm207_vm1, %v4098_v39  ;;  %3838 = vmatmul.mubr.msk.bf16.vlgmr.msra.gmra.mrb[0].mxu0 %vm207_vm1, %v4099_v15 }
 0x182   : > { %1632 = vmatpush1.bf16.msra.mxu1 %v1626_v38  ;;  %1584 = vmatprep.mubr.bf16.mxu1 %v4142_v0 }
 0x183   : > { %3192 = vmatprep.mubr.bf16.mxu0 %v4142_v0  ;;  %3699 = vmatprep.subr.msk.bf16.mxu1 %vm214_vm0, %v1707_v47 }
 0x184   : > { %3240 = vmatpush1.bf16.msra.mxu0 %v3234_v48 }
 0x185   : > { %3853 = vmatprep.subr.msk.bf16.mxu0 %vm214_vm0, %v3315_v49 }
 0x189   : > { %3685 = vmatmul.mubr.msk.bf16.gmra.mrb[64].mxu1 %vm207_vm1, %v4100_v51  ;;  %3839 = vmatmul.mubr.msk.bf16.gmra.mrb[64].mxu0 %vm207_vm1, %v4101_v50 }
 0x18a   : > { %1663 = vmatprep.mubr.bf16.mxu1 %v4142_v0  ;;  %3271 = vmatprep.mubr.bf16.mxu0 %v4142_v0 }
 0x18c   : > { %v420_v53 = vpop.f32.mrb[12].mxu1  ;;  %v4996_v54 = vpop.f32.mrb[12].mxu0 }
 0x18d   : > { %v431_v18 = vadd.f32 %v420_v53, %v337_v35  ;;  %v422_v55 = vpop.f32.mrb[13].mxu1  ;;  %v5005_v59 = vpop.f32.mrb[13].mxu0 }
 0x18e   : > { %v432_v60 = vadd.f32 %v422_v55, %v339_v40  ;;  %v424_v61 = vpop.f32.mrb[14].mxu1  ;;  %v2038_v17 = vpop.f32.mrb[14].mxu0 }
 0x18f   : > { %v425_v62 = vpop.f32.mrb[15].mxu1  ;;  %v2039_v2 = vpop.f32.mrb[15].mxu0 }
 0x191   : > { %3692 = vmatmul.mubr.msk.bf16.vlgmr.msra.gmra.mrb[0].mxu1 %vm207_vm1, %v4102_v56  ;;  %3846 = vmatmul.mubr.msk.bf16.vlgmr.msra.gmra.mrb[0].mxu0 %vm207_vm1, %v4103_v57 }
 0x192   : > { %1721 = vmatpush1.bf16.msra.mxu1 %v1715_v52  ;;  %1673 = vmatprep.mubr.bf16.mxu1 %v4142_v0 }
 0x193   : > { %3281 = vmatprep.mubr.bf16.mxu0 %v4142_v0  ;;  %3329 = vmatpush1.bf16.msra.mxu0 %v3323_v63 }
 0x199   : > { %3693 = vmatmul.mubr.msk.bf16.gmra.mrb[68].mxu1 %vm207_vm1, %v4104_v1  ;;  %3847 = vmatmul.mubr.msk.bf16.gmra.mrb[68].mxu0 %vm207_vm1, %v4105_v3 }
 0x19a   : > { %1752 = vmatprep.mubr.bf16.mxu1 %v4142_v0  ;;  %3360 = vmatprep.mubr.bf16.mxu0 %v4142_v0 }
 0x19c   : > { %v510_v4 = vpop.f32.mrb[16].mxu1  ;;  %v5023_v5 = vpop.f32.mrb[16].mxu0 }
 0x19d   : > { %v521_v6 = vadd.f32 %v510_v4, %v431_v18  ;;  %v512_v7 = vpop.f32.mrb[17].mxu1  ;;  %v5031_v10 = vpop.f32.mrb[17].mxu0 }
 0x19e   : > { %v522_v11 = vadd.f32 %v512_v7, %v432_v60  ;;  %v514_v12 = vpop.f32.mrb[18].mxu1  ;;  %v2127_v16 = vpop.f32.mrb[18].mxu0 }
 0x19f   : > { %v515_v20 = vpop.f32.mrb[19].mxu1  ;;  %v2128_v21 = vpop.f32.mrb[19].mxu0 }
 0x1a1   : > { %3700 = vmatmul.mubr.msk.bf16.vlgmr.msra.gmra.mrb[0].mxu1 %vm207_vm1, %v4106_v8  ;;  %3854 = vmatmul.mubr.msk.bf16.vlgmr.msra.gmra.mrb[0].mxu0 %vm207_vm1, %v4107_v9 }
 0x1a2   : > { %1762 = vmatprep.mubr.bf16.mxu1 %v4142_v0  ;;  %3370 = vmatprep.mubr.bf16.mxu0 %v4142_v0 }
 0x1a9   : > { %3701 = vmatmul.mubr.msk.bf16.gmra.mrb[72].mxu1 %vm207_vm1, %v4108_v22  ;;  %3855 = vmatmul.mubr.msk.bf16.gmra.mrb[72].mxu0 %vm207_vm1, %v4109_v23 }
 0x1ac   : > { %v600_v25 = vpop.f32.mrb[20].mxu1  ;;  %v5048_v26 = vpop.f32.mrb[20].mxu0 }
 0x1ad   : > { %v611_v27 = vadd.f32 %v600_v25, %v521_v6  ;;  %v602_v28 = vpop.f32.mrb[21].mxu1  ;;  %v5050_v29 = vpop.f32.mrb[21].mxu0 }
 0x1ae   : > { %v612_v0 = vadd.f32 %v602_v28, %v522_v11  ;;  %v604_v30 = vpop.f32.mrb[22].mxu1  ;;  %v2216_v31 = vpop.f32.mrb[22].mxu0 }
 0x1af   : > { %v605_v32 = vpop.f32.mrb[23].mxu1  ;;  %v2217_v33 = vpop.f32.mrb[23].mxu0 }
 0x1bc   : > { %v690_v34 = vpop.f32.mrb[24].mxu1  ;;  %v5052_v35 = vpop.f32.mrb[24].mxu0 }
 0x1bd   : > { %v701_v36 = vadd.f32 %v690_v34, %v611_v27  ;;  %v692_v39 = vpop.f32.mrb[25].mxu1  ;;  %v5054_v15 = vpop.f32.mrb[25].mxu0 }
 0x1be   : > { %v702_v40 = vadd.f32 %v692_v39, %v612_v0  ;;  %v694_v42 = vpop.f32.mrb[26].mxu1  ;;  %v2305_v44 = vpop.f32.mrb[26].mxu0 }
 0x1bf   : > { %v695_v37 = vpop.f32.mrb[27].mxu1  ;;  %v2306_v38 = vpop.f32.mrb[27].mxu0 }
 0x1cc   : > { %v780_v45 = vpop.f32.mrb[28].mxu1  ;;  %v5056_v46 = vpop.f32.mrb[28].mxu0 }
 0x1cd   : > { %v791_v47 = vadd.f32 %v780_v45, %v701_v36  ;;  %v782_v48 = vpop.f32.mrb[29].mxu1  ;;  %v5058_v49 = vpop.f32.mrb[29].mxu0 }
 0x1ce   : > { %v792_v51 = vadd.f32 %v782_v48, %v702_v40  ;;  %v784_v50 = vpop.f32.mrb[30].mxu1  ;;  %v2394_v13 = vpop.f32.mrb[30].mxu0 }
 0x1cf   : > { %v785_v53 = vpop.f32.mrb[31].mxu1  ;;  %v2395_v18 = vpop.f32.mrb[31].mxu0 }
 0x1dc   : > { %v870_v55 = vpop.f32.mrb[32].mxu1  ;;  %v5060_v56 = vpop.f32.mrb[32].mxu0 }
 0x1dd   : > { %v881_v57 = vadd.f32 %v870_v55, %v791_v47  ;;  %v872_v58 = vpop.f32.mrb[33].mxu1  ;;  %v5062_v60 = vpop.f32.mrb[33].mxu0 }
 0x1de   : > { %v882_v61 = vadd.f32 %v872_v58, %v792_v51  ;;  %v874_v17 = vpop.f32.mrb[34].mxu1  ;;  %v2483_v52 = vpop.f32.mrb[34].mxu0 }
 0x1df   : > { %v875_v62 = vpop.f32.mrb[35].mxu1  ;;  %v2484_v2 = vpop.f32.mrb[35].mxu0 }
 0x1ec   : > { %v960_v63 = vpop.f32.mrb[36].mxu1  ;;  %v5064_v1 = vpop.f32.mrb[36].mxu0 }
 0x1ed   : > { %v971_v3 = vadd.f32 %v960_v63, %v881_v57  ;;  %v962_v4 = vpop.f32.mrb[37].mxu1  ;;  %v5066_v6 = vpop.f32.mrb[37].mxu0 }
 0x1ee   : > { %v972_v7 = vadd.f32 %v962_v4, %v882_v61  ;;  %v964_v8 = vpop.f32.mrb[38].mxu1  ;;  %v2572_v9 = vpop.f32.mrb[38].mxu0 }
 0x1ef   : > { %v965_v11 = vpop.f32.mrb[39].mxu1  ;;  %v2573_v12 = vpop.f32.mrb[39].mxu0 }
 0x1fc   : > { %v1049_v16 = vpop.f32.mrb[40].mxu1  ;;  %v5068_v20 = vpop.f32.mrb[40].mxu0 }
 0x1fd   : > { %v1060_v21 = vadd.f32 %v1049_v16, %v971_v3  ;;  %v1051_v24 = vpop.f32.mrb[41].mxu1  ;;  %v5070_v22 = vpop.f32.mrb[41].mxu0 }
 0x1fe   : > { %v1061_v23 = vadd.f32 %v1051_v24, %v972_v7  ;;  %v1053_v25 = vpop.f32.mrb[42].mxu1  ;;  %v2661_v27 = vpop.f32.mrb[42].mxu0 }
 0x1ff   : > { %v1054_v28 = vpop.f32.mrb[43].mxu1  ;;  %v2662_v0 = vpop.f32.mrb[43].mxu0 }
 0x20c   : > { %v1141_v30 = vpop.f32.mrb[44].mxu1  ;;  %v5072_v31 = vpop.f32.mrb[44].mxu0 }
 0x20d   : > { %v1152_v32 = vadd.f32 %v1141_v30, %v1060_v21  ;;  %v1143_v33 = vpop.f32.mrb[45].mxu1  ;;  %v5074_v34 = vpop.f32.mrb[45].mxu0 }
 0x20e   : > { %v1153_v36 = vadd.f32 %v1143_v33, %v1061_v23  ;;  %v1145_v39 = vpop.f32.mrb[46].mxu1  ;;  %v2753_v40 = vpop.f32.mrb[46].mxu0 }
 0x20f   : > { %v1146_v42 = vpop.f32.mrb[47].mxu1  ;;  %v2754_v44 = vpop.f32.mrb[47].mxu0 }
 0x21c   : > { %v1230_v37 = vpop.f32.mrb[48].mxu1  ;;  %v5076_v38 = vpop.f32.mrb[48].mxu0 }
 0x21d   : > { %v1241_v45 = vadd.f32 %v1230_v37, %v1152_v32  ;;  %v1232_v47 = vpop.f32.mrb[49].mxu1  ;;  %v5078_v48 = vpop.f32.mrb[49].mxu0 }
 0x21e   : > { %v1242_v51 = vadd.f32 %v1232_v47, %v1153_v36  ;;  %v1234_v50 = vpop.f32.mrb[50].mxu1  ;;  %v2842_v13 = vpop.f32.mrb[50].mxu0 }
 0x21f   : > { %v1235_v53 = vpop.f32.mrb[51].mxu1  ;;  %v2843_v18 = vpop.f32.mrb[51].mxu0 }
 0x22c   : > { %v1319_v55 = vpop.f32.mrb[52].mxu1  ;;  %v5080_v57 = vpop.f32.mrb[52].mxu0 }
 0x22d   : > { %v1330_v58 = vadd.f32 %v1319_v55, %v1241_v45  ;;  %v1321_v61 = vpop.f32.mrb[53].mxu1  ;;  %v5082_v17 = vpop.f32.mrb[53].mxu0 }
 0x22e   : > { %v1331_v52 = vadd.f32 %v1321_v61, %v1242_v51  ;;  %v1323_v62 = vpop.f32.mrb[54].mxu1  ;;  %v2931_v2 = vpop.f32.mrb[54].mxu0 }
 0x22f   : > { %v1324_v63 = vpop.f32.mrb[55].mxu1  ;;  %v2932_v3 = vpop.f32.mrb[55].mxu0 }
 0x23c   : > { %v1408_v4 = vpop.f32.mrb[56].mxu1  ;;  %v5084_v7 = vpop.f32.mrb[56].mxu0 }
 0x23d   : > { %v1419_v8 = vadd.f32 %v1408_v4, %v1330_v58  ;;  %v1410_v9 = vpop.f32.mrb[57].mxu1  ;;  %v5086_v11 = vpop.f32.mrb[57].mxu0 }
 0x23e   : > { %v1420_v12 = vadd.f32 %v1410_v9, %v1331_v52  ;;  %v1412_v16 = vpop.f32.mrb[58].mxu1  ;;  %v3020_v21 = vpop.f32.mrb[58].mxu0 }
 0x23f   : > { %v1413_v24 = vpop.f32.mrb[59].mxu1  ;;  %v3021_v23 = vpop.f32.mrb[59].mxu0 }
 0x240   : > { %v3391_v9 = vpop.permute.xlu0 %3390 }
 0x24c   : > { %v1497_v25 = vpop.f32.mrb[60].mxu1  ;;  %v5088_v27 = vpop.f32.mrb[60].mxu0 }
 0x24d   : > { %v1508_v28 = vadd.f32 %v1497_v25, %v1419_v8  ;;  %v1499_v0 = vpop.f32.mrb[61].mxu1  ;;  %v5090_v30 = vpop.f32.mrb[61].mxu0 }
 0x24e   : > { %v1509_v32 = vadd.f32 %v1499_v0, %v1420_v12  ;;  %v1501_v33 = vpop.f32.mrb[62].mxu1  ;;  %v3109_v36 = vpop.f32.mrb[62].mxu0 }
 0x24f   : > { %v1502_v39 = vpop.f32.mrb[63].mxu1  ;;  %v3110_v40 = vpop.f32.mrb[63].mxu0 }
 0x250   : > { %v3396_v12 = vpop.permute.xlu1 %3395 }
 0x25c   : > { %v1586_v42 = vpop.f32.mrb[64].mxu1  ;;  %v5092_v44 = vpop.f32.mrb[64].mxu0 }
 0x25d   : > { %v1597_v37 = vadd.f32 %v1586_v42, %v1508_v28  ;;  %v1588_v45 = vpop.f32.mrb[65].mxu1  ;;  %v5094_v47 = vpop.f32.mrb[65].mxu0 }
 0x25e   : > { %v1598_v51 = vadd.f32 %v1588_v45, %v1509_v32  ;;  %v1590_v50 = vpop.f32.mrb[66].mxu1  ;;  %v3198_v13 = vpop.f32.mrb[66].mxu0 }
 0x25f   : > { %v1591_v53 = vpop.f32.mrb[67].mxu1  ;;  %v3199_v18 = vpop.f32.mrb[67].mxu0 }
 0x26c   : > { %v1675_v55 = vpop.f32.mrb[68].mxu1  ;;  %v5096_v58 = vpop.f32.mrb[68].mxu0 }
 0x26d   : > { %v1686_v61 = vadd.f32 %v1675_v55, %v1597_v37  ;;  %v1677_v52 = vpop.f32.mrb[69].mxu1  ;;  %v5098_v62 = vpop.f32.mrb[69].mxu0 }
 0x26e   : > { %v1687_v2 = vadd.f32 %v1677_v52, %v1598_v51  ;;  %v1679_v63 = vpop.f32.mrb[70].mxu1  ;;  %v3287_v3 = vpop.f32.mrb[70].mxu0 }
 0x26f   : > { %v1680_v4 = vpop.f32.mrb[71].mxu1  ;;  %v3288_v8 = vpop.f32.mrb[71].mxu0 }
 0x274   : > { %v1754_v16 = vpop.f32.mrb[0].mxu1  ;;  %v3362_v21 = vpop.f32.mrb[0].mxu0 }
 0x275   : > { %v3866_v24 = vadd.f32 %v3362_v21, %v1754_v16  ;;  %v1756_v23 = vpop.f32.mrb[1].mxu1  ;;  %v3364_v25 = vpop.f32.mrb[1].mxu0 }
 0x276   : > { %v3867_v28 = vadd.f32 %v3364_v25, %v1756_v23  ;;  %v3366_v0 = vpop.f32.mrb[2].mxu0  ;;  %v1758_v32 = vpop.f32.mrb[2].mxu1 }
 0x277   : > { %v3403_v33 = vadd.f32 %v3866_v24, %v3391_v9  ;;  %v3868_v36 = vadd.f32 %v3366_v0, %v1758_v32  ;;  %v1760_v39 = vpop.f32.mrb[3].mxu1  ;;  %v3368_v40 = vpop.f32.mrb[3].mxu0 }
 0x278   : > { %v3404_v42 = vadd.f32 %v3867_v28, %v3391_v9  ;;  %v3869_v37 = vadd.f32 %v3368_v40, %v1760_v39 }
 0x279   : > { %v3856_v45 = vmul.f32 -1.442695, %v3403_v33  ;;  %v3405_v51 = vadd.f32 %v3868_v36, %v3396_v12 }
 0x27a   : > { %v3857_v50 = vmul.f32 -1.442695, %v3404_v42  ;;  %v3406_v13 = vadd.f32 %v3869_v37, %v3396_v12 }
 0x27b   : > { %4110 = vpow2.f32 %v3856_v45  ;;  %v3858_v53 = vmul.f32 -1.442695, %v3405_v51 }
 0x27c   : > { %4112 = vpow2.f32 %v3857_v50  ;;  %v3859_v18 = vmul.f32 -1.442695, %v3406_v13  ;;  %v1764_v55 = vpop.f32.mrb[72].mxu1  ;;  %v5100_v52 = vpop.f32.mrb[72].mxu0 }
 0x27d   : > { %4114 = vpow2.f32 %v3858_v53  ;;  %v1775_v63 = vadd.f32 %v1764_v55, %v1686_v61  ;;  %v1766_v3 = vpop.f32.mrb[73].mxu1  ;;  %v5102_v4 = vpop.f32.mrb[73].mxu0 }
 0x27e   : > { %4116 = vpow2.f32 %v3859_v18  ;;  %v1776_v8 = vadd.f32 %v1766_v3, %v1687_v2  ;;  %v1768_v9 = vpop.f32.mrb[74].mxu1  ;;  %v3376_v16 = vpop.f32.mrb[74].mxu0 }
 0x27f   : > { %v1864_v21 = vadd.f32 %v4701_v41, %v1775_v63  ;;  %v1769_v24 = vpop.f32.mrb[75].mxu1  ;;  %v3377_v12 = vpop.f32.mrb[75].mxu0 }
 0x280   : > { %v1865_v23 = vadd.f32 %v4703_v43, %v1776_v8 }
 0x281   : > { %v1956_v25 = vadd.f32 %v4960_v14, %v1864_v21 }
 0x282   : > { %v1957_v28 = vadd.f32 %v4968_v19, %v1865_v23  ;;  %v3401_v23 = vpop.permute.xlu1 %3400 }
 0x283   : > { %v2045_v0 = vadd.f32 %v4996_v54, %v1956_v25 }
 0x284   : > { %v2046_v61 = vadd.f32 %v5005_v59, %v1957_v28 }
 0x285   : > { %v4111_v32 = vpop.eup %4110  ;;  %v2134_v33 = vadd.f32 %v5023_v5, %v2045_v0 }
 0x286   : > { %v4113_v2 = vpop.eup %4112  ;;  %v3427_v36 = vadd.f32 1.0, %v4111_v32  ;;  %v2135_v39 = vadd.f32 %v5031_v10, %v2046_v61 }
 0x287   : > { %v4115_v41 = vpop.eup %4114  ;;  %v3428_v40 = vadd.f32 1.0, %v4113_v2  ;;  %v2223_v42 = vadd.f32 %v5048_v26, %v2134_v33 }
 0x288   : > { %v4117_v43 = vpop.eup %4116  ;;  %4118 = vrcp.f32 %v3427_v36  ;;  %v3429_v14 = vadd.f32 1.0, %v4115_v41  ;;  %v2224_v19 = vadd.f32 %v5050_v29, %v2135_v39 }
 0x289   : > { %4120 = vrcp.f32 %v3428_v40  ;;  %v3430_v54 = vadd.f32 1.0, %v4117_v43  ;;  %v2312_v59 = vadd.f32 %v5052_v35, %v2223_v42 }
 0x28a   : > { %4122 = vrcp.f32 %v3429_v14  ;;  %v2313_v5 = vadd.f32 %v5054_v15, %v2224_v19 }
 0x28b   : > { %4124 = vrcp.f32 %v3430_v54  ;;  %v2401_v37 = vadd.f32 %v5056_v46, %v2312_v59 }
 0x28c   : > { %v2402_v10 = vadd.f32 %v5058_v49, %v2313_v5 }
 0x28d   : > { %v2490_v45 = vadd.f32 %v5060_v56, %v2401_v37 }
 0x28e   : > { %v2491_v26 = vadd.f32 %v5062_v60, %v2402_v10 }
 0x28f   : > { %v2579_v51 = vadd.f32 %v5064_v1, %v2490_v45 }
 0x290   : > { %v2580_v29 = vadd.f32 %v5066_v6, %v2491_v26 }
 0x291   : > { %v2668_v50 = vadd.f32 %v5068_v20, %v2579_v51 }
 0x292   : > { %v4119_v13 = vpop.eup %4118  ;;  %v2669_v35 = vadd.f32 %v5070_v22, %v2580_v29 }
 0x293   : > { %v4121_v53 = vpop.eup %4120  ;;  %v2760_v15 = vadd.f32 %v5072_v31, %v2668_v50  ;;  %v3450_v56 = vrot.slane %v4119_v13, 6 }
 0x294   : > { %v4123_v18 = vpop.eup %4122  ;;  %v2761_v46 = vadd.f32 %v5074_v34, %v2669_v35  ;;  %v3453_v1 = vrot.slane %v4121_v53, 6 }
 0x295   : > { %v4125_v49 = vpop.eup %4124  ;;  %v3451_v55 = vrot.slane %v4123_v18, 6  ;;  %v2849_v60 = vadd.f32 %v5076_v38, %v2760_v15 }
 0x296   : > { %v3454_v63 = vrot.slane %v4125_v49, 6  ;;  %v2850_v6 = vadd.f32 %v5078_v48, %v2761_v46 }
 0x297   : > { %v3452_v20 = vsel %vm3449_vm10, %v3450_v56, %v3451_v55  ;;  %v2938_v3 = vadd.f32 %v5080_v57, %v2849_v60 }
 0x298   : > { %v3455_v22 = vsel %vm3449_vm10, %v3453_v1, %v3454_v63  ;;  %v2939_v8 = vadd.f32 %v5082_v17, %v2850_v6  ;;  %v3458_v31 = vadd.f32 %v4119_v13, %v3452_v20 }
 0x299   : > { %v3027_v9 = vadd.f32 %v5084_v7, %v2938_v3  ;;  %v3459_v16 = vadd.f32 %v4121_v53, %v3455_v22 }
 0x29a   : > { %v3028_v34 = vadd.f32 %v5086_v11, %v2939_v8 }
 0x29b   : > { %v3116_v21 = vadd.f32 %v5088_v27, %v3027_v9 }
 0x29c   : > { %v3117_v38 = vadd.f32 %v5090_v30, %v3028_v34 }
 0x29d   : > { %v3205_v24 = vadd.f32 %v5092_v44, %v3116_v21 }
 0x29e   : > { %v3206_v48 = vadd.f32 %v5094_v47, %v3117_v38 }
 0x29f   : > { %v3294_v12 = vadd.f32 %v5096_v58, %v3205_v24 }
 0x2a0   : > { %v3295_v57 = vadd.f32 %v5098_v62, %v3206_v48 }
 0x2a1   : > { %v3383_v17 = vadd.f32 %v5100_v52, %v3294_v12  ;;  %v3462_v52 = vrot.slane %v4123_v18, 4 }
 0x2a2   : > { %v3384_v7 = vadd.f32 %v5102_v4, %v3295_v57  ;;  %v3465_v4 = vrot.slane %v4125_v49, 4 }
 0x2a3   : > { %v3407_v25 = vadd.f32 %v3401_v23, %v3383_v17 }
 0x2a4   : > { %v3408_v11 = vadd.f32 %v3401_v23, %v3384_v7 }
 0x2a5   : > { %v3860_v28 = vmul.f32 -1.442695, %v3407_v25 }
 0x2a6   : > { %v3861_v27 = vmul.f32 -1.442695, %v3408_v11 }
 0x2a7   : > { %4126 = vpow2.f32 %v3860_v28 }
 0x2a8   : > { %4128 = vpow2.f32 %v3861_v27 }
 0x2b1   : > { %v4127_v30 = vpop.eup %4126 }
 0x2b2   : > { %v4129_v44 = vpop.eup %4128  ;;  %v3431_v0 = vadd.f32 1.0, %v4127_v30 }
 0x2b3   : > { %v3432_v47 = vadd.f32 1.0, %v4129_v44 }
 0x2b4   : > { %4130 = vrcp.f32 %v3431_v0 }
 0x2b5   : > { %4132 = vrcp.f32 %v3432_v47 }
 0x2be   : > { %v4131_v58 = vpop.eup %4130 }
 0x2bf   : > { %v4133_v62 = vpop.eup %4132  ;;  %v3463_v61 = vrot.slane %v4131_v58, 4  ;;  %v3472_v39 = vrot.slane %v4131_v58, 2 }
 0x2c0   : > { %v3466_v32 = vrot.slane %v4133_v62, 4  ;;  %v3473_v40 = vrot.slane %v4133_v62, 2 }
 0x2c1   : > { %v3464_v33 = vsel %vm214_vm0, %v3462_v52, %v3463_v61 }
 0x2c2   : > { %v3467_v2 = vsel %vm214_vm0, %v3465_v4, %v3466_v32  ;;  %v3470_v36 = vadd.f32 %v3464_v33, %v3458_v31 }
 0x2c3   : > { %v3471_v41 = vadd.f32 %v3467_v2, %v3459_v16 }
 0x2c4   : > { %v3476_v42 = vadd.f32 %v3472_v39, %v3470_v36 }
 0x2c5   : > { %v3477_v43 = vadd.f32 %v3473_v40, %v3471_v41 }
 0x2c6   : > { %v3478_v14 = vmul.f32 0.25, %v3476_v42 }
 0x2c7   : > { %v3479_v19 = vmul.f32 0.25, %v3477_v43 }
 0x2c9   : > { %v3865_v54 = vpack.c.bf16 %v3479_v19, %v3478_v14 }
 0x2cb   : > { %3488 = vst [vmem:[%s170_s27] sm:$0x77] %v3865_v54 }
 0x2cc PF: > { %s13_s12 = sadd.s32 1, %s4140_s12  }
 0x2cd   : > { %p10_p5 = scmp.ge.s32.totalorder %s13_s12, 4  }
 0x2cf   :  { %12 = sbr.rel (!%p10_p5) target bundleno = 1 (0x1), region = 100 }

// kernel: lenet5_forward.5
= control target key start
LH: loop header
LB: loop body
LE: loop exit
PB: predicated region body
PF: predicated region fallthrough
CT: control target
= control target key end

     0   :  { %v739_v0 = vmov 0   ;;  %vm249_vm0 = vcmask 130048   ;;  %v740_v32 = vmov 0.0   ;;  %vm741_vm1 = vmmov 0   ;;  %s932_s1 = inlined_call_operand.vmem [shape: bf16[400,128], index: 1, kind: input, shape index: {}]   ;;  %s933_s0 = inlined_call_operand.vmem [shape: bf16[8,400], index: 0, kind: input, shape index: {}]   ;;  %s934_s3 = inlined_call_operand.vmem [shape: bf16[128,128], index: 3, kind: input, shape index: {}]   ;;  %s935_s5 = inlined_call_operand.vmem [shape: bf16[128,128], index: 5, kind: input, shape index: {}]   ;;  %s936_s2 = inlined_call_operand.vmem [shape: f32[1,128], index: 2, kind: input, shape index: {}]   ;;  %s937_s4 = inlined_call_operand.vmem [shape: f32[1,128], index: 4, kind: input, shape index: {}]   ;;  %s938_s6 = inlined_call_operand.vmem [shape: f32[1,128], index: 6, kind: input, shape index: {}]   ;;  %s939_s7 = inlined_call_operand.vmem [shape: f32[8,128], index: 7, kind: output, shape index: {}]  }
   0x1   :  { %293 = vmatprep.subr.bf16.mxu1 %v739_v0  ;;  %v694_v1 = vld [vmem:[%s932_s1 + $0x40] sm:$0xff]   ;;  %v697_v4 = vld [vmem:[%s932_s1 + $0x48] sm:$0xff]   ;;  %v700_v7 = vld [vmem:[%s932_s1 + $0x50] sm:$0xff]  }
   0x2   :  { %v695_v2 = vld [vmem:[%s932_s1 + $0x80] sm:$0xff]   ;;  %611 = vmatprep.subr.bf16.mxu0 %v694_v1  ;;  %v698_v5 = vld [vmem:[%s932_s1 + $0x88] sm:$0xff]   ;;  %v701_v8 = vld [vmem:[%s932_s1 + $0x90] sm:$0xff]  }
   0x3   :  { %v696_v3 = vld [vmem:[%s932_s1] sm:$0xff]   ;;  %294 = vmatpush1.bf16.msra.mxu1 %v695_v2  ;;  %v699_v6 = vld [vmem:[%s932_s1 + $0x8] sm:$0xff]   ;;  %v702_v9 = vld [vmem:[%s932_s1 + $0x10] sm:$0xff]  }
   0x4   :  { %612 = vmatpush3.bf16.msra.mxu0 %v696_v3  ;;  %295 = vmatprep.subr.bf16.mxu1 %v739_v0  ;;  %v703_v10 = vld [vmem:[%s932_s1 + $0x58] sm:$0xff]   ;;  %v706_v13 = vld [vmem:[%s932_s1 + $0x60] sm:$0xff]   ;;  %v709_v16 = vld [vmem:[%s932_s1 + $0x68] sm:$0xff]  }
   0x5   :  { %613 = vmatprep.subr.bf16.mxu0 %v697_v4  ;;  %v704_v11 = vld [vmem:[%s932_s1 + $0x98] sm:$0xff]   ;;  %v707_v14 = vld [vmem:[%s932_s1 + $0xa0] sm:$0xff]   ;;  %v710_v17 = vld [vmem:[%s932_s1 + $0xa8] sm:$0xff]  }
   0x6   :  { %v705_v12 = vld [vmem:[%s932_s1 + $0x18] sm:$0xff]   ;;  %v708_v15 = vld [vmem:[%s932_s1 + $0x20] sm:$0xff]   ;;  %v711_v18 = vld [vmem:[%s932_s1 + $0x28] sm:$0xff]  }
   0x7   :  { %296 = vmatpush1.bf16.msra.mxu1 %v698_v5  ;;  %v712_v19 = vld [vmem:[%s932_s1 + $0x70] sm:$0xff]   ;;  %v27_v22 = vld [vmem:[%s933_s0] sm:$0xff]  ;;  %v715_v23 = vld [vmem:[%s932_s1 + $0x78] sm:$0xff]  }
   0x8   :  { %614 = vmatpush3.bf16.msra.mxu0 %v699_v6  ;;  %297 = vmatprep.subr.bf16.mxu1 %v739_v0  ;;  %v713_v20 = vld [vmem:[%s932_s1 + $0xb0] sm:$0xff]   ;;  %v564_v24 = vcombine.high %v27_v22, %v27_v22  ;;  %v28_v25 = vld [vmem:[%s933_s0 + $0x8] sm:$0xff]  ;;  %v716_v27 = vld [vmem:[%s932_s1 + $0xb8] sm:$0xff]   ;;  %v563_v30 = vcombine.low %v27_v22, %v27_v22 }
   0x9   :  { %615 = vmatprep.subr.bf16.mxu0 %v700_v7  ;;  %v714_v21 = vld [vmem:[%s932_s1 + $0x30] sm:$0xff]   ;;  %v566_v26 = vcombine.high %v28_v25, %v28_v25  ;;  %v717_v28 = vld [vmem:[%s932_s1 + $0x38] sm:$0xff]   ;;  %v720_v29 = vld [vmem:[%s932_s1 + $0xc0] sm:$0xff]   ;;  %v565_v33 = vcombine.low %v28_v25, %v28_v25 }
   0xa   :  { %285 = vmatprep.mubr.bf16.mxu0 %v564_v24  ;;  %v723_v31 = vld [vmem:[%s934_s3] sm:$0xff]   ;;  %v724_v34 = vld [vmem:[%s934_s3 + $0x8] sm:$0xff]   ;;  %v725_v35 = vld [vmem:[%s934_s3 + $0x10] sm:$0xff]  }
   0xb   :  { %298 = vmatpush1.bf16.msra.mxu1 %v701_v8  ;;  %592 = vmatprep.mubr.msk.bf16.mxu1 %vm249_vm0, %v566_v26  ;;  %v726_v36 = vld [vmem:[%s934_s3 + $0x18] sm:$0xff]   ;;  %v727_v37 = vld [vmem:[%s934_s3 + $0x20] sm:$0xff]   ;;  %v728_v38 = vld [vmem:[%s934_s3 + $0x28] sm:$0xff]  }
   0xc   :  { %616 = vmatpush3.bf16.msra.mxu0 %v702_v9  ;;  %299 = vmatprep.subr.bf16.mxu1 %v739_v0  ;;  %v729_v39 = vld [vmem:[%s934_s3 + $0x30] sm:$0xff]   ;;  %v730_v40 = vld [vmem:[%s934_s3 + $0x38] sm:$0xff]   ;;  %v731_v41 = vld [vmem:[%s935_s5] sm:$0xff]  }
   0xd   :  { %617 = vmatprep.subr.bf16.mxu0 %v703_v10  ;;  %v732_v42 = vld [vmem:[%s935_s5 + $0x8] sm:$0xff]   ;;  %v733_v43 = vld [vmem:[%s935_s5 + $0x10] sm:$0xff]   ;;  %v734_v44 = vld [vmem:[%s935_s5 + $0x18] sm:$0xff]  }
   0xe   :  { %v735_v45 = vld [vmem:[%s935_s5 + $0x20] sm:$0xff]   ;;  %v736_v46 = vld [vmem:[%s935_s5 + $0x28] sm:$0xff]   ;;  %v737_v47 = vld [vmem:[%s935_s5 + $0x30] sm:$0xff]  }
   0xf   :  { %300 = vmatpush1.bf16.msra.mxu1 %v704_v11  ;;  %v562_v50 = vld [vmem:[%s936_s2] ss:$0 sm:$0xff]  ;;  %v738_v61 = vld [vmem:[%s935_s5 + $0x38] sm:$0xff]  }
  0x10   :  { %618 = vmatpush3.bf16.msra.mxu0 %v705_v12  ;;  %301 = vmatprep.subr.bf16.mxu1 %v739_v0  ;;  %v593_v62 = vld [vmem:[%s937_s4] ss:$0 sm:$0xff] }
  0x11   :  { %619 = vmatprep.subr.bf16.mxu0 %v706_v13  ;;  %v602_v5 = vld [vmem:[%s938_s6] ss:$0 sm:$0xff] }
  0x13   :  { %302 = vmatpush1.bf16.msra.mxu1 %v707_v14 }
  0x14   :  { %620 = vmatpush3.bf16.msra.mxu0 %v708_v15  ;;  %303 = vmatprep.subr.bf16.mxu1 %v739_v0 }
  0x15   :  { %621 = vmatprep.subr.bf16.mxu0 %v709_v16 }
  0x17   :  { %304 = vmatpush1.bf16.msra.mxu1 %v710_v17 }
  0x18   :  { %622 = vmatpush3.bf16.msra.mxu0 %v711_v18  ;;  %305 = vmatprep.subr.bf16.mxu1 %v739_v0 }
  0x19   :  { %623 = vmatprep.subr.bf16.mxu0 %v712_v19 }
  0x1b   :  { %306 = vmatpush1.bf16.msra.mxu1 %v713_v20 }
  0x1c   :  { %624 = vmatpush3.bf16.msra.mxu0 %v714_v21  ;;  %307 = vmatprep.subr.bf16.mxu1 %v739_v0 }
  0x1d   :  { %625 = vmatprep.subr.bf16.mxu0 %v715_v23 }
  0x1f   :  { %308 = vmatpush1.bf16.msra.mxu1 %v716_v27 }
  0x20   :  { %626 = vmatpush3.bf16.msra.mxu0 %v717_v28  ;;  %309 = vmatprep.subr.bf16.mxu1 %v739_v0 }
  0x21   :  { %651 = vmatprep.subr.bf16.mxu0 %v740_v32 }
  0x23   :  { %286 = vmatmul.mubr.bf16.vlgmr.msra.gmra.mrb[0].mxu0 %v563_v30  ;;  %310 = vmatpush1.bf16.msra.mxu1 %v720_v29 }
  0x24   :  { %652 = vmatpush3.bf16.msra.mxu0 %v723_v31  ;;  %671 = vmatprep.subr.bf16.mxu1 %v740_v32 }
  0x25   :  { %653 = vmatprep.subr.bf16.mxu0 %v740_v32  ;;  %667 = vmatprep.mubr.msk.bf16.mxu0 %vm741_vm1, %v740_v32 }
  0x26   :  { %326 = vmatmul.mubr.bf16.vlgmr.msra.gmra.mrb[0].mxu1 %v565_v33 }
  0x27   :  { %687 = vmatprep.mubr.msk.bf16.mxu1 %vm741_vm1, %v740_v32  ;;  %672 = vmatpush3.bf16.msra.mxu1 %v731_v41 }
  0x28   :  { %654 = vmatpush3.bf16.msra.mxu0 %v724_v34  ;;  %673 = vmatprep.subr.bf16.mxu1 %v740_v32 }
  0x29   :  { %655 = vmatprep.subr.bf16.mxu0 %v740_v32 }
  0x2b   :  { %674 = vmatpush3.bf16.msra.mxu1 %v732_v42 }
  0x2c   :  { %656 = vmatpush3.bf16.msra.mxu0 %v725_v35  ;;  %675 = vmatprep.subr.bf16.mxu1 %v740_v32 }
  0x2d   :  { %657 = vmatprep.subr.bf16.mxu0 %v740_v32 }
  0x2f   :  { %676 = vmatpush3.bf16.msra.mxu1 %v733_v43 }
  0x30   :  { %658 = vmatpush3.bf16.msra.mxu0 %v726_v36  ;;  %677 = vmatprep.subr.bf16.mxu1 %v740_v32 }
  0x31   :  { %659 = vmatprep.subr.bf16.mxu0 %v740_v32 }
  0x33   :  { %678 = vmatpush3.bf16.msra.mxu1 %v734_v44 }
  0x34   :  { %660 = vmatpush3.bf16.msra.mxu0 %v727_v37  ;;  %679 = vmatprep.subr.bf16.mxu1 %v740_v32 }
  0x35   :  { %661 = vmatprep.subr.bf16.mxu0 %v740_v32 }
  0x37   :  { %680 = vmatpush3.bf16.msra.mxu1 %v735_v45 }
  0x38   :  { %662 = vmatpush3.bf16.msra.mxu0 %v728_v38  ;;  %681 = vmatprep.subr.bf16.mxu1 %v740_v32 }
  0x39   :  { %663 = vmatprep.subr.bf16.mxu0 %v740_v32 }
  0x3b   :  { %682 = vmatpush3.bf16.msra.mxu1 %v736_v46 }
  0x3c   :  { %664 = vmatpush3.bf16.msra.mxu0 %v729_v39  ;;  %683 = vmatprep.subr.bf16.mxu1 %v740_v32 }
  0x3d   :  { %665 = vmatprep.subr.bf16.mxu0 %v740_v32 }
  0x3f   :  { %684 = vmatpush3.bf16.msra.mxu1 %v737_v47 }
  0x40   :  { %666 = vmatpush3.bf16.msra.mxu0 %v730_v40  ;;  %685 = vmatprep.subr.bf16.mxu1 %v740_v32 }
  0x43   :  { %686 = vmatpush3.bf16.msra.mxu1 %v738_v61 }
  0xf6   :  { %v627_v48 = vpop.f32.mrb[0].mxu0 }
  0xf7   :  { %v628_v49 = vpop.f32.mrb[1].mxu0 }
  0xf8   :  { %v629_v51 = vadd.f32 %v628_v49, %v627_v48  ;;  %v630_v52 = vpop.f32.mrb[2].mxu0 }
  0xf9   :  { %v631_v53 = vpop.f32.mrb[3].mxu0  ;;  %v327_v54 = vpop.f32.mrb[0].mxu1 }
  0xfa   :  { %v288_v55 = vadd.f32 %v629_v51, %v562_v50  ;;  %v329_v56 = vpop.f32.mrb[1].mxu1 }
  0xfb   :  { %v330_v57 = vpop.f32.mrb[2].mxu1 }
  0xfc   :  { %v328_v58 = vadd.f32 %v327_v54, %v288_v55  ;;  %v331_v59 = vpop.f32.mrb[3].mxu1 }
  0xfe   :  { %v333_v60 = vpack.c.bf16 %v328_v58, %v328_v58 }
 0x100   :  { %668 = vmatmul.mubr.bf16.vlgmr.msra.gmra.mrb[4].mxu0 %v333_v60 }
 0x1d3   :  { %v439_v63 = vpop.f32.mrb[4].mxu0 }
 0x1d4   :  { %v440_v0 = vadd.f32 %v593_v62, %v439_v63  ;;  %v669_v1 = vpop.f32.mrb[5].mxu0 }
 0x1d5   :  { %v442_v2 = vpop.f32.mrb[6].mxu0 }
 0x1d6   :  { %v445_v3 = vpack.c.bf16 %v440_v0, %v440_v0  ;;  %v670_v4 = vpop.f32.mrb[7].mxu0 }
 0x1d8   :  { %688 = vmatmul.mubr.bf16.vlgmr.msra.gmra.mrb[4].mxu1 %v445_v3 }
 0x2ab   :  { %v551_v6 = vpop.f32.mrb[4].mxu1 }
 0x2ac   :  { %v552_v7 = vadd.f32 %v602_v5, %v551_v6  ;;  %v689_v8 = vpop.f32.mrb[5].mxu1 }
 0x2ad   :  { %v554_v9 = vpop.f32.mrb[6].mxu1 }
 0x2ae   :  { %557 = vst [vmem:[%s939_s7] sm:$0xff] %v552_v7  ;;  %v690_v10 = vpop.f32.mrb[7].mxu1 }

// kernel: lenet5_forward.4
= control target key start
LH: loop header
LB: loop body
LE: loop exit
PB: predicated region body
PF: predicated region fallthrough
CT: control target
= control target key end

     0   :  { %s6519_s12 = smov 0   ;;  %s6521_s13 = smov 0   ;;  %s7378_s0 = inlined_call_operand.vmem [shape: bf16[2,4,8,256], index: 0, kind: input, shape index: {}]   ;;  %s7379_s1 = inlined_call_operand.vmem [shape: bf16[36,64,8], index: 1, kind: input, shape index: {}]   ;;  %s7380_s2 = inlined_call_operand.vmem [shape: f32[64,1], index: 2, kind: input, shape index: {}]   ;;  %s7381_s3 = inlined_call_operand.vmem [shape: bf16[16,256], index: 3, kind: output, shape index: {}]  }
   0x1   :  { %s6523_s14 = smov 0  }
   0x2 LB: > { %s6532_s15 = sadd.s32 4294967295, %s6488_s14   ;;  %s6534_s16 = sadd.s32 1, %s6488_s14   ;;  %s6488_s14 = sphi %s6523_s14, %s7385_s14   ;;  %s6484_s13 = sphi %s6521_s13, %s7384_s13   ;;  %s6480_s12 = sphi %s6519_s12, %s7383_s12  }
   0x3   : > { %s85_s17 = ssub.s32 %s6488_s14, %s6534_s16  ;;  %s88_s18 = sadd.s32 1, %s6484_s13 }
   0x4   : > { %p86_p0 = scmp.eq.s32.totalorder %s85_s17, 0  ;;  %p98_p1 = scmp.ne.s32.totalorder %s6484_s13, %s6480_s12 }
   0x5   : > { %p99_p2 = scmp.eq.s32.totalorder %s6532_s15, 1  ;;  %p4786_p3 = scmp.ge.s32.totalorder %s6488_s14, 1 }
   0x6   : > { %s6542_s19 = scalar_select %p86_p0, %s6484_s13, %s88_s18  }
   0x7   : > { %p6544_p4 = por %p99_p2, %p98_p1  ;;  %p137_p5 = scmp.lt.s32.totalorder %s6488_s14, 3 }
   0x9   : > { %p138_p6 = pnand %p4786_p3, %p137_p5 }
   0xa   : > { %p160_p7 = scmp.lt.s32.totalorder (!%p138_p6), %s6532_s15, 1  ;;  %vm215_vm0 = vcmask (!%p138_p6), 64512   ;;  %v6286_v0 = vld [vmem:[%s7379_s1 + $0x240] sm:$0xff] (!%p138_p6)   ;;  %vm228_vm1 = vcmask (!%p138_p6), 1043456   ;;  %s6490_s30 = smov (!%p138_p6), 127   ;;  %v6287_v9 = vld [vmem:[%s7379_s1 + $0x248] sm:$0xff] (!%p138_p6)  }
   0xb   : > { %141 = sbr.rel (%p138_p6) target bundleno = 691 (0x2b3), region = 32  ;;  %5753 = vmatprep.mubr.msk.bf16.mxu0 (!%p138_p6), %vm215_vm0, %v6286_v0  ;;  %v6290_v1 = vld [vmem:[%s7379_s1 + $0x20] sm:$0xff] (!%p138_p6)   ;;  %v6288_v10 = vld [vmem:[%s7379_s1 + $0x250] sm:$0xff] (!%p138_p6)   ;;  %s6491_s8 = smov (!%p138_p6), 126   ;;  %v6289_v11 = vld [vmem:[%s7379_s1 + $0x258] sm:$0xff] (!%p138_p6)   ;;  %vm213_vm2 = vcmask (!%p138_p6), 1039360  }
   0xc   : > { %5573 = vmatprep.mubr.msk.bf16.mxu1 (!%p138_p6), %vm215_vm0, %v6290_v1  ;;  %v6291_v12 = vld [vmem:[%s7379_s1 + $0x260] sm:$0xff] (!%p138_p6)   ;;  %s6492_s17 = smov (!%p138_p6), 121   ;;  %s6493_s18 = smov (!%p138_p6), 120   ;;  %vm430_vm3 = vcmask (!%p138_p6), 1031168   ;;  %v6292_v23 = vld [vmem:[%s7379_s1 + $0x28] sm:$0xff] (!%p138_p6)   ;;  %v6294_v27 = vld [vmem:[%s7379_s1 + $0x30] sm:$0xff] (!%p138_p6)  }
   0xd   : > { %s6494_s21 = smov (!%p138_p6), 119   ;;  %s6495_s22 = smov (!%p138_p6), 114   ;;  %v6293_v24 = vld [vmem:[%s7379_s1 + $0x268] sm:$0xff] (!%p138_p6)   ;;  %v6295_v33 = vld [vmem:[%s7379_s1 + $0x270] sm:$0xff] (!%p138_p6)   ;;  %v6296_v38 = vld [vmem:[%s7379_s1 + $0x38] sm:$0xff] (!%p138_p6)   ;;  %vm553_vm4 = vcmask (!%p138_p6), 990208  }
   0xe   : > { %v6297_v39 = vld [vmem:[%s7379_s1 + $0x278] sm:$0xff] (!%p138_p6)   ;;  %v6298_v41 = vld [vmem:[%s7379_s1] sm:$0xff] (!%p138_p6)   ;;  %v6300_v48 = vld [vmem:[%s7379_s1 + $0x8] sm:$0xff] (!%p138_p6)   ;;  %vm676_vm5 = vcmask (!%p138_p6), 982016   ;;  %vm799_vm6 = vcmask (!%p138_p6), 973824   ;;  %vm922_vm7 = vcmask (!%p138_p6), 932864  }
   0xf   : > { %v6299_v42 = vld [vmem:[%s7379_s1 + $0x280] sm:$0xff] (!%p138_p6)   ;;  %v6301_v49 = vld [vmem:[%s7379_s1 + $0x288] sm:$0xff] (!%p138_p6)   ;;  %v6304_v50 = vld [vmem:[%s7379_s1 + $0x10] sm:$0xff] (!%p138_p6)   ;;  %vm1045_vm8 = vcmask (!%p138_p6), 924672   ;;  %vm1168_vm9 = vcmask (!%p138_p6), 916480  }
  0x10   : > { %v6305_v52 = vld [vmem:[%s7379_s1 + $0x290] sm:$0xff] (!%p138_p6)   ;;  %v6308_v60 = vld [vmem:[%s7379_s1 + $0x18] sm:$0xff] (!%p138_p6)   ;;  %v6310_v62 = vld [vmem:[%s7379_s1 + $0x40] sm:$0xff] (!%p138_p6)  }
  0x11   : > { %v6309_v61 = vld [vmem:[%s7379_s1 + $0x298] sm:$0xff] (!%p138_p6)   ;;  %v6311_v63 = vld [vmem:[%s7379_s1 + $0x2a0] sm:$0xff] (!%p138_p6)  }
  0x12   : > { %s161_s23 = scalar_select %p160_p7, %s6532_s15, 1 }
  0x13   : > { %s5380_s26 = sshll.u32 (%p6544_p4), %s6532_s15, 2 }
  0x14   : > { %s5383_s24 = sshll.u32 %s161_s23, 5  ;;  %s6496_s23 = smov 113  }
  0x15   : > { %s6557_s27 = scalar_lea.vmem %s7378_s0, %s5383_s24  ;;  %s6497_s24 = smov 112  }
  0x16   : > { %v5075_v2 = vld [vmem:[%s6557_s27 + $0x10] sm:$0xff]  ;;  %v6564_v3 = vld [vmem:[%s6557_s27] sm:$0xff]  ;;  %v6618_v13 = vld [vmem:[%s6557_s27 + $0x8] sm:$0xff] }
  0x17   : > { %v5104_v4 = vcombine.low %v5075_v2, %v5075_v2  ;;  %v4802_v5 = vcombine.low %v6564_v3, %v6564_v3  ;;  %6229 = vmatprep.subr.msk.bf16.mxu0 %vm228_vm1, %v5075_v2  ;;  %v2402_v6 = vsel %vm228_vm1, %v5075_v2, 0  ;;  %v5105_v7 = vcombine.high %v5075_v2, %v5075_v2  ;;  %v6629_v16 = vld [vmem:[%s6557_s27 + $0x18] sm:$0xff]  ;;  %v6312_v2 = vld [vmem:[%s7379_s1 + $0x48] sm:$0xff]  }
  0x18   : > { %v4803_v8 = vcombine.high %v6564_v3, %v6564_v3  ;;  %5752 = vmatpush3.bf16.msra.mxu0 %v2402_v6  ;;  %v4958_v14 = vcombine.high %v6618_v13, %v6618_v13  ;;  %v4957_v15 = vcombine.low %v6618_v13, %v6618_v13  ;;  %v6635_v17 = vcombine.high %v6629_v16, %v6629_v16  ;;  %v6315_v6 = vld [vmem:[%s7379_s1 + $0x2b0] sm:$0xff]  }
  0x19   : > { %2511 = vrot.lane.b32.xlu1 %v5104_v4, %s6490_s30  ;;  %209 = vrot.lane.b32.xlu0 %v4802_v5, %s6490_s30  ;;  %v5251_v18 = vcombine.low %v6629_v16, %v6629_v16  ;;  %v330_v30 = vsel %vm228_vm1, %v6564_v3, 0 }
  0x1b   : > { %5754 = vmatmul.mubr.msk.bf16.vlgmr.msra.gmra.mrb[0].mxu0 %vm215_vm0, %v6287_v9 }
  0x1c   : > { %5757 = vmatprep.mubr.msk.bf16.mxu0 %vm215_vm0, %v6288_v10 }
  0x1d   : > { %2513 = vrot.lane.b32.xlu1 %v5105_v7, %s6490_s30  ;;  %211 = vrot.lane.b32.xlu0 %v4803_v8, %s6490_s30 }
  0x21   : > { %428 = vrot.lane.b32.xlu1 %v4803_v8, %s6491_s8  ;;  %426 = vrot.lane.b32.xlu0 %v4802_v5, %s6491_s8 }
  0x23   : > { %5758 = vmatmul.mubr.msk.bf16.gmra.mrb[4].mxu0 %vm215_vm0, %v6289_v11 }
  0x24   : > { %5763 = vmatprep.mubr.msk.bf16.mxu0 %vm215_vm0, %v6291_v12  ;;  %v6316_v12 = vld [vmem:[%s7379_s1 + $0x58] sm:$0xff]  }
  0x25   : > { %2635 = vrot.lane.b32.xlu1 %v5105_v7, %s6491_s8  ;;  %2633 = vrot.lane.b32.xlu0 %v5104_v4, %s6491_s8 }
  0x29   : > { %551 = vrot.lane.b32.xlu1 %v4803_v8, %s6492_s17  ;;  %549 = vrot.lane.b32.xlu0 %v4802_v5, %s6492_s17 }
  0x2d   : > { %2757 = vrot.lane.b32.xlu1 %v5105_v7, %s6492_s17  ;;  %2755 = vrot.lane.b32.xlu0 %v5104_v4, %s6492_s17 }
  0x31   : > { %674 = vrot.lane.b32.xlu1 %v4803_v8, %s6493_s18  ;;  %672 = vrot.lane.b32.xlu0 %v4802_v5, %s6493_s18 }
  0x35   : > { %2879 = vrot.lane.b32.xlu1 %v5105_v7, %s6493_s18  ;;  %2877 = vrot.lane.b32.xlu0 %v5104_v4, %s6493_s18 }
  0x39   : > { %797 = vrot.lane.b32.xlu1 %v4803_v8, %s6494_s21  ;;  %795 = vrot.lane.b32.xlu0 %v4802_v5, %s6494_s21 }
  0x3d   : > { %3001 = vrot.lane.b32.xlu1 %v5105_v7, %s6494_s21  ;;  %2999 = vrot.lane.b32.xlu0 %v5104_v4, %s6494_s21 }
  0x41   : > { %920 = vrot.lane.b32.xlu1 %v4803_v8, %s6495_s22  ;;  %918 = vrot.lane.b32.xlu0 %v4802_v5, %s6495_s22 }
  0x45   : > { %3123 = vrot.lane.b32.xlu1 %v5105_v7, %s6495_s22  ;;  %3121 = vrot.lane.b32.xlu0 %v5104_v4, %s6495_s22 }
  0x49   : > { %1043 = vrot.lane.b32.xlu1 %v4803_v8, %s6496_s23  ;;  %1041 = vrot.lane.b32.xlu0 %v4802_v5, %s6496_s23 }
  0x4d   : > { %3245 = vrot.lane.b32.xlu1 %v5105_v7, %s6496_s23  ;;  %3243 = vrot.lane.b32.xlu0 %v5104_v4, %s6496_s23 }
  0x51   : > { %1166 = vrot.lane.b32.xlu1 %v4803_v8, %s6497_s24  ;;  %1164 = vrot.lane.b32.xlu0 %v4802_v5, %s6497_s24 }
  0x55   : > { %3367 = vrot.lane.b32.xlu1 %v5105_v7, %s6497_s24  ;;  %3365 = vrot.lane.b32.xlu0 %v5104_v4, %s6497_s24  ;;  %v6314_v4 = vld [vmem:[%s7379_s1 + $0x50] sm:$0xff]  }
  0x59   : > { %1413 = vrot.lane.b32.xlu1 %v4958_v14, %s6490_s30  ;;  %1411 = vrot.lane.b32.xlu0 %v4957_v15, %s6490_s30 }
  0x5d   : > { %3613 = vrot.lane.b32.xlu1 %v6635_v17, %s6490_s30  ;;  %3611 = vrot.lane.b32.xlu0 %v5251_v18, %s6490_s30 }
  0x61   : > { %1535 = vrot.lane.b32.xlu1 %v4958_v14, %s6491_s8  ;;  %1533 = vrot.lane.b32.xlu0 %v4957_v15, %s6491_s8 }
  0x65   : > { %3735 = vrot.lane.b32.xlu1 %v6635_v17, %s6491_s8  ;;  %3733 = vrot.lane.b32.xlu0 %v5251_v18, %s6491_s8 }
  0x69   : > { %1657 = vrot.lane.b32.xlu1 %v4958_v14, %s6492_s17  ;;  %1655 = vrot.lane.b32.xlu0 %v4957_v15, %s6492_s17 }
  0x6d   : > { %3857 = vrot.lane.b32.xlu1 %v6635_v17, %s6492_s17  ;;  %3855 = vrot.lane.b32.xlu0 %v5251_v18, %s6492_s17 }
  0x71   : > { %1779 = vrot.lane.b32.xlu1 %v4958_v14, %s6493_s18  ;;  %1777 = vrot.lane.b32.xlu0 %v4957_v15, %s6493_s18 }
  0x75   : > { %3979 = vrot.lane.b32.xlu1 %v6635_v17, %s6493_s18  ;;  %3977 = vrot.lane.b32.xlu0 %v5251_v18, %s6493_s18 }
  0x79   : > { %1901 = vrot.lane.b32.xlu1 %v4958_v14, %s6494_s21  ;;  %1899 = vrot.lane.b32.xlu0 %v4957_v15, %s6494_s21 }
  0x7d   : > { %4101 = vrot.lane.b32.xlu1 %v6635_v17, %s6494_s21  ;;  %4099 = vrot.lane.b32.xlu0 %v5251_v18, %s6494_s21 }
  0x81   : > { %2023 = vrot.lane.b32.xlu1 %v4958_v14, %s6495_s22  ;;  %2021 = vrot.lane.b32.xlu0 %v4957_v15, %s6495_s22 }
  0x85   : > { %4223 = vrot.lane.b32.xlu1 %v6635_v17, %s6495_s22  ;;  %4221 = vrot.lane.b32.xlu0 %v5251_v18, %s6495_s22 }
  0x89   : > { %2145 = vrot.lane.b32.xlu1 %v4958_v14, %s6496_s23  ;;  %2143 = vrot.lane.b32.xlu0 %v4957_v15, %s6496_s23 }
  0x8b   : > { %v2512_v19 = vpop.permute.xlu1 %2511  ;;  %v210_v20 = vpop.permute.xlu0 %209 }
  0x8d   : > { %4345 = vrot.lane.b32.xlu1 %v6635_v17, %s6496_s23  ;;  %4343 = vrot.lane.b32.xlu0 %v5251_v18, %s6496_s23  ;;  %s157_s23 = sand.u32 1, %s6480_s12   ;;  %s4688_s12 = scalar_lea.vmem (%p6544_p4), %s7381_s3, %s5380_s26 }
  0x8f   : > { %v2514_v21 = vpop.permute.xlu1 %2513  ;;  %v212_v22 = vpop.permute.xlu0 %211 }
  0x90   : > { %v2515_v25 = vsel %vm213_vm2, %v2512_v19, %v2514_v21  ;;  %v214_v26 = vsel %vm213_vm2, %v210_v20, %v212_v22  ;;  %v6320_v20 = vld [vmem:[%s7379_s1 + $0x68] sm:$0xff]   ;;  %v6322_v22 = vld [vmem:[%s7379_s1 + $0x70] sm:$0xff]  }
  0x91   : > { %v2529_v28 = vsel %vm228_vm1, %v2515_v25, 0  ;;  %6211 = vmatprep.subr.msk.bf16.mxu1 %vm228_vm1, %v214_v26  ;;  %6230 = vmatprep.subr.msk.bf16.mxu0 %vm228_vm1, %v2515_v25  ;;  %v230_v29 = vsel %vm228_vm1, %v214_v26, 0  ;;  %v6321_v21 = vld [vmem:[%s7379_s1 + $0x2c8] sm:$0xff]  }
  0x92   : > { %5572 = vmatpush3.bf16.msra.mxu1 %v230_v29  ;;  %5762 = vmatpush3.bf16.msra.mxu0 %v2529_v28 }
  0x93   : > { %6212 = vmatprep.subr.msk.bf16.mxu1 %vm228_vm1, %v6564_v3  ;;  %v429_v31 = vpop.permute.xlu1 %428  ;;  %v427_v32 = vpop.permute.xlu0 %426  ;;  %2267 = vrot.lane.b32.xlu1 %v4958_v14, %s6497_s24  ;;  %v6313_v3 = vld [vmem:[%s7379_s1 + $0x2a8] sm:$0xff]   ;;  %v6317_v14 = vld [vmem:[%s7379_s1 + $0x2b8] sm:$0xff]  }
  0x94   : > { %v431_v34 = vsel %vm430_vm3, %v427_v32, %v429_v31  ;;  %2265 = vrot.lane.b32.xlu0 %v4957_v15, %s6497_s24  ;;  %v6318_v15 = vld [vmem:[%s7379_s1 + $0x60] sm:$0xff]   ;;  %v6325_v31 = vld [vmem:[%s7379_s1 + $0x2d8] sm:$0xff]  }
  0x95   : > { %5574 = vmatmul.mubr.msk.bf16.vlgmr.msra.gmra.mrb[0].mxu1 %vm215_vm0, %v6292_v23  ;;  %5764 = vmatmul.mubr.msk.bf16.vlgmr.msra.gmra.mrb[0].mxu0 %vm215_vm0, %v6293_v24  ;;  %v445_v51 = vsel %vm228_vm1, %v431_v34, 0  ;;  %v6323_v24 = vld [vmem:[%s7379_s1 + $0x2d0] sm:$0xff]   ;;  %v6326_v32 = vld [vmem:[%s7379_s1 + $0x80] sm:$0xff]  }
  0x96   : > { %5582 = vmatpush3.bf16.msra.mxu1 %v330_v30  ;;  %5577 = vmatprep.mubr.msk.bf16.mxu1 %vm215_vm0, %v6294_v27  ;;  %v6324_v30 = vld [vmem:[%s7379_s1 + $0x78] sm:$0xff]  }
  0x97   : > { %5767 = vmatprep.mubr.msk.bf16.mxu0 %vm215_vm0, %v6295_v33  ;;  %v2636_v35 = vpop.permute.xlu1 %2635  ;;  %v2634_v36 = vpop.permute.xlu0 %2633  ;;  %6213 = vmatprep.subr.msk.bf16.mxu1 %vm228_vm1, %v431_v34  ;;  %v6327_v33 = vld [vmem:[%s7379_s1 + $0x2e0] sm:$0xff]  }
  0x98   : > { %v2637_v37 = vsel %vm430_vm3, %v2634_v36, %v2636_v35  ;;  %4467 = vrot.lane.b32.xlu1 %v6635_v17, %s6497_s24  ;;  %4465 = vrot.lane.b32.xlu0 %v5251_v18, %s6497_s24  ;;  %v6319_v17 = vld [vmem:[%s7379_s1 + $0x2c0] sm:$0xff]   ;;  %v6328_v36 = vld [vmem:[%s7379_s1 + $0x88] sm:$0xff]   ;;  %s4787_s24 = sshll.u32 %s157_s23, 3 }
  0x99   : > { %v2651_v40 = vsel %vm228_vm1, %v2637_v37, 0  ;;  %6231 = vmatprep.subr.msk.bf16.mxu0 %vm228_vm1, %v2637_v37  ;;  %v6329_v37 = vld [vmem:[%s7379_s1 + $0x2e8] sm:$0xff]   ;;  %s159_s25 = scalar_lea.vmem [#allocation2], %s4787_s24 }
  0x9a   : > { %5772 = vmatpush3.bf16.msra.mxu0 %v2651_v40  ;;  %v6331_v40 = vld [vmem:[%s7379_s1 + $0x2f0] sm:$0xff]  }
  0x9b   : > { %v552_v43 = vpop.permute.xlu1 %551  ;;  %v550_v44 = vpop.permute.xlu0 %549 }
  0x9c   : > { %v554_v55 = vsel %vm553_vm4, %v550_v44, %v552_v43 }
  0x9d   : > { %5578 = vmatmul.mubr.msk.bf16.gmra.mrb[4].mxu1 %vm215_vm0, %v6296_v38  ;;  %5768 = vmatmul.mubr.msk.bf16.gmra.mrb[4].mxu0 %vm215_vm0, %v6297_v39  ;;  %v568_v5 = vsel %vm228_vm1, %v554_v55, 0  ;;  %v6330_v38 = vld [vmem:[%s7379_s1 + $0x90] sm:$0xff]  }
  0x9e   : > { %5583 = vmatprep.mubr.msk.bf16.mxu1 %vm215_vm0, %v6298_v41  ;;  %5773 = vmatprep.mubr.msk.bf16.mxu0 %vm215_vm0, %v6299_v42 }
  0x9f   : > { %v2758_v45 = vpop.permute.xlu1 %2757  ;;  %v2756_v46 = vpop.permute.xlu0 %2755 }
  0xa0   : > { %v2759_v47 = vsel %vm553_vm4, %v2756_v46, %v2758_v45  ;;  %v6332_v46 = vld [vmem:[%s7379_s1 + $0x98] sm:$0xff]  }
  0xa1   : > { %6232 = vmatprep.subr.msk.bf16.mxu0 %vm228_vm1, %v2759_v47  ;;  %v2773_v56 = vsel %vm228_vm1, %v2759_v47, 0  ;;  %v6333_v47 = vld [vmem:[%s7379_s1 + $0x2f8] sm:$0xff]  }
  0xa3   : > { %v675_v53 = vpop.permute.xlu1 %674  ;;  %v673_v54 = vpop.permute.xlu0 %672 }
  0xa4   : > { %v677_v9 = vsel %vm676_vm5, %v673_v54, %v675_v53  ;;  %v6337_v53 = vld [vmem:[%s7379_s1 + $0x308] sm:$0xff]   ;;  %v6338_v54 = vld [vmem:[%s7379_s1 + $0xb0] sm:$0xff]  }
  0xa5   : > { %5584 = vmatmul.mubr.msk.bf16.vlgmr.msra.gmra.mrb[0].mxu1 %vm215_vm0, %v6300_v48  ;;  %5774 = vmatmul.mubr.msk.bf16.vlgmr.msra.gmra.mrb[0].mxu0 %vm215_vm0, %v6301_v49  ;;  %v691_v23 = vsel %vm228_vm1, %v677_v9, 0  ;;  %v6334_v48 = vld [vmem:[%s7379_s1 + $0xa0] sm:$0xff]  }
  0xa6   : > { %5592 = vmatpush3.bf16.msra.mxu1 %v445_v51  ;;  %5587 = vmatprep.mubr.msk.bf16.mxu1 %vm215_vm0, %v6304_v50  ;;  %v6335_v49 = vld [vmem:[%s7379_s1 + $0x300] sm:$0xff]  }
  0xa7   : > { %5777 = vmatprep.mubr.msk.bf16.mxu0 %vm215_vm0, %v6305_v52  ;;  %6214 = vmatprep.subr.msk.bf16.mxu1 %vm228_vm1, %v554_v55  ;;  %v2880_v57 = vpop.permute.xlu1 %2879  ;;  %v2878_v58 = vpop.permute.xlu0 %2877  ;;  %v6336_v52 = vld [vmem:[%s7379_s1 + $0xa8] sm:$0xff]  }
  0xa8   : > { %5782 = vmatpush3.bf16.msra.mxu0 %v2773_v56  ;;  %v2881_v59 = vsel %vm676_vm5, %v2878_v58, %v2880_v57  ;;  %v6339_v56 = vld [vmem:[%s7379_s1 + $0x310] sm:$0xff]  }
  0xa9   : > { %6233 = vmatprep.subr.msk.bf16.mxu0 %vm228_vm1, %v2881_v59  ;;  %v2895_v10 = vsel %vm228_vm1, %v2881_v59, 0 }
  0xab   : > { %v798_v0 = vpop.permute.xlu1 %797  ;;  %v796_v1 = vpop.permute.xlu0 %795 }
  0xac   : > { %v800_v27 = vsel %vm799_vm6, %v796_v1, %v798_v0  ;;  %v6342_v0 = vld [vmem:[%s7379_s1 + $0xc0] sm:$0xff]  }
  0xad   : > { %5588 = vmatmul.mubr.msk.bf16.gmra.mrb[4].mxu1 %vm215_vm0, %v6308_v60  ;;  %5778 = vmatmul.mubr.msk.bf16.gmra.mrb[4].mxu0 %vm215_vm0, %v6309_v61  ;;  %v814_v39 = vsel %vm228_vm1, %v800_v27, 0  ;;  %v6343_v1 = vld [vmem:[%s7379_s1 + $0x320] sm:$0xff]  }
  0xae   : > { %5593 = vmatprep.mubr.msk.bf16.mxu1 %vm215_vm0, %v6310_v62  ;;  %5783 = vmatprep.mubr.msk.bf16.mxu0 %vm215_vm0, %v6311_v63  ;;  %v6340_v62 = vld [vmem:[%s7379_s1 + $0xb8] sm:$0xff]  }
  0xaf   : > { %v3002_v7 = vpop.permute.xlu1 %3001  ;;  %v3000_v8 = vpop.permute.xlu0 %2999  ;;  %v6341_v63 = vld [vmem:[%s7379_s1 + $0x318] sm:$0xff]  }
  0xb0   : > { %v3003_v11 = vsel %vm799_vm6, %v3000_v8, %v3002_v7 }
  0xb1   : > { %v3017_v28 = vsel %vm228_vm1, %v3003_v11, 0 }
  0xb3   : > { %v921_v18 = vpop.permute.xlu1 %920  ;;  %v919_v19 = vpop.permute.xlu0 %918 }
  0xb4   : > { %v923_v43 = vsel %vm922_vm7, %v919_v19, %v921_v18  ;;  %v6353_v18 = vld [vmem:[%s7379_s1 + $0x348] sm:$0xff]   ;;  %v6354_v19 = vld [vmem:[%s7379_s1 + $0xf0] sm:$0xff]  }
  0xb5   : > { %5594 = vmatmul.mubr.msk.bf16.vlgmr.msra.gmra.mrb[0].mxu1 %vm215_vm0, %v6312_v2  ;;  %5784 = vmatmul.mubr.msk.bf16.vlgmr.msra.gmra.mrb[0].mxu0 %vm215_vm0, %v6313_v3  ;;  %v937_v55 = vsel %vm228_vm1, %v923_v43, 0  ;;  %v6344_v2 = vld [vmem:[%s7379_s1 + $0xc8] sm:$0xff]  }
  0xb6   : > { %5602 = vmatpush3.bf16.msra.mxu1 %v568_v5  ;;  %5597 = vmatprep.mubr.msk.bf16.mxu1 %vm215_vm0, %v6314_v4  ;;  %v6345_v3 = vld [vmem:[%s7379_s1 + $0x328] sm:$0xff]   ;;  %v6346_v4 = vld [vmem:[%s7379_s1 + $0xd0] sm:$0xff]  }
  0xb7   : > { %5787 = vmatprep.mubr.msk.bf16.mxu0 %vm215_vm0, %v6315_v6  ;;  %6215 = vmatprep.subr.msk.bf16.mxu1 %vm228_vm1, %v677_v9  ;;  %v3124_v25 = vpop.permute.xlu1 %3123  ;;  %v3122_v26 = vpop.permute.xlu0 %3121  ;;  %v6347_v6 = vld [vmem:[%s7379_s1 + $0x330] sm:$0xff]   ;;  %v6348_v9 = vld [vmem:[%s7379_s1 + $0xd8] sm:$0xff]  }
  0xb8   : > { %5792 = vmatpush3.bf16.msra.mxu0 %v2895_v10  ;;  %v3125_v29 = vsel %vm922_vm7, %v3122_v26, %v3124_v25  ;;  %v6349_v10 = vld [vmem:[%s7379_s1 + $0x338] sm:$0xff]  }
  0xb9   : > { %6234 = vmatprep.subr.msk.bf16.mxu0 %vm228_vm1, %v3003_v11  ;;  %v3139_v44 = vsel %vm228_vm1, %v3125_v29, 0  ;;  %v6350_v11 = vld [vmem:[%s7379_s1 + $0xe0] sm:$0xff]   ;;  %v6357_v26 = vld [vmem:[%s7379_s1 + $0x358] sm:$0xff]  }
  0xbb   : > { %v1044_v34 = vpop.permute.xlu1 %1043  ;;  %v1042_v35 = vpop.permute.xlu0 %1041 }
  0xbc   : > { %v1046_v59 = vsel %vm1045_vm8, %v1042_v35, %v1044_v34  ;;  %v1302_v34 = vsel %vm228_vm1, %v6618_v13, 0  ;;  %v6363_v35 = vld [vmem:[%s7379_s1 + $0x370] sm:$0xff]  }
  0xbd   : > { %5598 = vmatmul.mubr.msk.bf16.gmra.mrb[4].mxu1 %vm215_vm0, %v6316_v12  ;;  %5788 = vmatmul.mubr.msk.bf16.gmra.mrb[4].mxu0 %vm215_vm0, %v6317_v14  ;;  %v1060_v5 = vsel %vm228_vm1, %v1046_v59, 0  ;;  %v6351_v12 = vld [vmem:[%s7379_s1 + $0x340] sm:$0xff]  }
  0xbe   : > { %5603 = vmatprep.mubr.msk.bf16.mxu1 %vm215_vm0, %v6318_v15  ;;  %5793 = vmatprep.mubr.msk.bf16.mxu0 %vm215_vm0, %v6319_v17  ;;  %v6352_v17 = vld [vmem:[%s7379_s1 + $0xe8] sm:$0xff]  }
  0xbf   : > { %v3246_v41 = vpop.permute.xlu1 %3245  ;;  %v3244_v42 = vpop.permute.xlu0 %3243 }
  0xc0   : > { %v3247_v45 = vsel %vm1045_vm8, %v3244_v42, %v3246_v41  ;;  %v6365_v41 = vld [vmem:[%s7379_s1 + $0x378] sm:$0xff]   ;;  %v6366_v42 = vld [vmem:[%s7379_s1 + $0x120] sm:$0xff]  }
  0xc1   : > { %v3261_v60 = vsel %vm228_vm1, %v3247_v45, 0 }
  0xc3   : > { %v1167_v50 = vpop.permute.xlu1 %1166  ;;  %v1165_v51 = vpop.permute.xlu0 %1164 }
  0xc4   : > { %v1169_v7 = vsel %vm1168_vm9, %v1165_v51, %v1167_v50  ;;  %v6371_v50 = vld [vmem:[%s7379_s1 + $0x390] sm:$0xff]  }
  0xc5   : > { %5604 = vmatmul.mubr.msk.bf16.vlgmr.msra.gmra.mrb[0].mxu1 %vm215_vm0, %v6320_v20  ;;  %5794 = vmatmul.mubr.msk.bf16.vlgmr.msra.gmra.mrb[0].mxu0 %vm215_vm0, %v6321_v21 }
  0xc6   : > { %5612 = vmatpush3.bf16.msra.mxu1 %v691_v23  ;;  %5607 = vmatprep.mubr.msk.bf16.mxu1 %vm215_vm0, %v6322_v22  ;;  %v1183_v22 = vsel %vm228_vm1, %v1169_v7, 0  ;;  %v6355_v23 = vld [vmem:[%s7379_s1 + $0x350] sm:$0xff]  }
  0xc7   : > { %5797 = vmatprep.mubr.msk.bf16.mxu0 %vm215_vm0, %v6323_v24  ;;  %6216 = vmatprep.subr.msk.bf16.mxu1 %vm228_vm1, %v800_v27  ;;  %v3368_v57 = vpop.permute.xlu1 %3367  ;;  %v3366_v58 = vpop.permute.xlu0 %3365  ;;  %v3502_v24 = vsel %vm228_vm1, %v6629_v16, 0  ;;  %v6358_v27 = vld [vmem:[%s7379_s1 + $0x100] sm:$0xff]  }
  0xc8   : > { %5802 = vmatpush3.bf16.msra.mxu0 %v3017_v28  ;;  %v3369_v61 = vsel %vm1168_vm9, %v3366_v58, %v3368_v57  ;;  %v6359_v28 = vld [vmem:[%s7379_s1 + $0x360] sm:$0xff]   ;;  %v6373_v57 = vld [vmem:[%s7379_s1 + $0x398] sm:$0xff]  }
  0xc9   : > { %6235 = vmatprep.subr.msk.bf16.mxu0 %vm228_vm1, %v3125_v29  ;;  %v3383_v8 = vsel %vm228_vm1, %v3369_v61, 0  ;;  %v6374_v58 = vld [vmem:[%s7379_s1 + $0x140] sm:$0xff]  }
  0xcb   : > { %v1414_v14 = vpop.permute.xlu1 %1413  ;;  %v1412_v15 = vpop.permute.xlu0 %1411 }
  0xcd   : > { %5608 = vmatmul.mubr.msk.bf16.gmra.mrb[4].mxu1 %vm215_vm0, %v6324_v30  ;;  %5798 = vmatmul.mubr.msk.bf16.gmra.mrb[4].mxu0 %vm215_vm0, %v6325_v31  ;;  %v6360_v31 = vld [vmem:[%s7379_s1 + $0x108] sm:$0xff]  }
  0xce   : > { %5613 = vmatprep.mubr.msk.bf16.mxu1 %vm215_vm0, %v6326_v32  ;;  %5803 = vmatprep.mubr.msk.bf16.mxu0 %vm215_vm0, %v6327_v33  ;;  %v6361_v32 = vld [vmem:[%s7379_s1 + $0x368] sm:$0xff]   ;;  %v6362_v33 = vld [vmem:[%s7379_s1 + $0x110] sm:$0xff]  }
  0xcf   : > { %v3614_v20 = vpop.permute.xlu1 %3613  ;;  %v3612_v21 = vpop.permute.xlu0 %3611 }
  0xd0   : > { %v3615_v25 = vsel %vm213_vm2, %v3612_v21, %v3614_v20  ;;  %v6382_v20 = vld [vmem:[%s7379_s1 + $0x160] sm:$0xff]  }
  0xd1   : > { %v6383_v21 = vld [vmem:[%s7379_s1 + $0x3c0] sm:$0xff]  }
  0xd3   : > { %v1536_v29 = vpop.permute.xlu1 %1535  ;;  %v1534_v30 = vpop.permute.xlu0 %1533 }
  0xd5   : > { %5614 = vmatmul.mubr.msk.bf16.vlgmr.msra.gmra.mrb[0].mxu1 %vm215_vm0, %v6328_v36  ;;  %5804 = vmatmul.mubr.msk.bf16.vlgmr.msra.gmra.mrb[0].mxu0 %vm215_vm0, %v6329_v37 }
  0xd6   : > { %5622 = vmatpush3.bf16.msra.mxu1 %v814_v39  ;;  %5617 = vmatprep.mubr.msk.bf16.mxu1 %vm215_vm0, %v6330_v38  ;;  %v1415_v38 = vsel %vm213_vm2, %v1412_v15, %v1414_v14  ;;  %v3629_v39 = vsel %vm228_vm1, %v3615_v25, 0  ;;  %v4563_v15 = vld [vmem:[%s7380_s2 + $0x28] sm:$0xff] }
  0xd7   : > { %5807 = vmatprep.mubr.msk.bf16.mxu0 %vm215_vm0, %v6331_v40  ;;  %6217 = vmatprep.subr.msk.bf16.mxu1 %vm228_vm1, %v923_v43  ;;  %v3736_v36 = vpop.permute.xlu1 %3735  ;;  %v3734_v37 = vpop.permute.xlu0 %3733  ;;  %v6367_v43 = vld [vmem:[%s7379_s1 + $0x380] sm:$0xff]  }
  0xd8   : > { %5812 = vmatpush3.bf16.msra.mxu0 %v3139_v44  ;;  %v3737_v40 = vsel %vm430_vm3, %v3734_v37, %v3736_v36  ;;  %v6390_v36 = vld [vmem:[%s7379_s1 + $0x180] sm:$0xff]  }
  0xd9   : > { %6236 = vmatprep.subr.msk.bf16.mxu0 %vm228_vm1, %v3247_v45  ;;  %v6391_v37 = vld [vmem:[%s7379_s1 + $0x3e0] sm:$0xff]  }
  0xdb   : > { %v1658_v44 = vpop.permute.xlu1 %1657  ;;  %v1656_v45 = vpop.permute.xlu0 %1655 }
  0xdd   : > { %5618 = vmatmul.mubr.msk.bf16.gmra.mrb[4].mxu1 %vm215_vm0, %v6332_v46  ;;  %5808 = vmatmul.mubr.msk.bf16.gmra.mrb[4].mxu0 %vm215_vm0, %v6333_v47  ;;  %v6368_v46 = vld [vmem:[%s7379_s1 + $0x128] sm:$0xff]  }
  0xde   : > { %5623 = vmatprep.mubr.msk.bf16.mxu1 %vm215_vm0, %v6334_v48  ;;  %5813 = vmatprep.mubr.msk.bf16.mxu0 %vm215_vm0, %v6335_v49  ;;  %v6369_v47 = vld [vmem:[%s7379_s1 + $0x388] sm:$0xff]   ;;  %v6370_v48 = vld [vmem:[%s7379_s1 + $0x130] sm:$0xff]   ;;  %v1429_v49 = vsel %vm228_vm1, %v1415_v38, 0 }
  0xdf   : > { %v3858_v51 = vpop.permute.xlu1 %3857 }
  0xe5   : > { %5624 = vmatmul.mubr.msk.bf16.vlgmr.msra.gmra.mrb[0].mxu1 %vm215_vm0, %v6336_v52  ;;  %5814 = vmatmul.mubr.msk.bf16.vlgmr.msra.gmra.mrb[0].mxu0 %vm215_vm0, %v6337_v53  ;;  %v3856_v52 = vpop.permute.xlu0 %3855  ;;  %v1537_v53 = vsel %vm430_vm3, %v1534_v30, %v1536_v29 }
  0xe6   : > { %5632 = vmatpush3.bf16.msra.mxu1 %v937_v55  ;;  %5627 = vmatprep.mubr.msk.bf16.mxu1 %vm215_vm0, %v6338_v54  ;;  %v3751_v54 = vsel %vm228_vm1, %v3737_v40, 0  ;;  %v3859_v55 = vsel %vm553_vm4, %v3856_v52, %v3858_v51  ;;  %v6398_v51 = vld [vmem:[%s7379_s1 + $0x1a0] sm:$0xff]  }
  0xe7   : > { %5817 = vmatprep.mubr.msk.bf16.mxu0 %vm215_vm0, %v6339_v56  ;;  %6218 = vmatprep.subr.msk.bf16.mxu1 %vm228_vm1, %v1046_v59  ;;  %v6372_v56 = vld [vmem:[%s7379_s1 + $0x138] sm:$0xff]   ;;  %v6375_v59 = vld [vmem:[%s7379_s1 + $0x3a0] sm:$0xff]  }
  0xe8   : > { %5822 = vmatpush3.bf16.msra.mxu0 %v3261_v60  ;;  %v1780_v60 = vpop.permute.xlu1 %1779  ;;  %v6399_v52 = vld [vmem:[%s7379_s1 + $0x400] sm:$0xff]  }
  0xe9   : > { %6237 = vmatprep.subr.msk.bf16.mxu0 %vm228_vm1, %v3369_v61  ;;  %v1778_v61 = vpop.permute.xlu0 %1777 }
  0xed   : > { %5628 = vmatmul.mubr.msk.bf16.gmra.mrb[4].mxu1 %vm215_vm0, %v6340_v62  ;;  %5818 = vmatmul.mubr.msk.bf16.gmra.mrb[4].mxu0 %vm215_vm0, %v6341_v63  ;;  %v4559_v62 = vld [vmem:[%s7380_s2 + $0x8] sm:$0xff]  ;;  %v4558_v63 = vld [vmem:[%s7380_s2] sm:$0xff] }
  0xee   : > { %5633 = vmatprep.mubr.msk.bf16.mxu1 %vm215_vm0, %v6342_v0  ;;  %5823 = vmatprep.mubr.msk.bf16.mxu0 %vm215_vm0, %v6343_v1  ;;  %v6498_v0 = vmov 0   ;;  %v6376_v1 = vld [vmem:[%s7379_s1 + $0x148] sm:$0xff]  }
  0xef   : > { %6281 = vset.pattern.permute.xlu1 %v6498_v0  ;;  %6280 = vset.pattern.permute.xlu0 %v6498_v0 }
  0xf0   : > { %4573 = vperm.xlu1 %6281, %v4559_v62   ;;  %4568 = vperm.xlu0 %6280, %v4558_v63  }
  0xf5   : > { %5634 = vmatmul.mubr.msk.bf16.vlgmr.msra.gmra.mrb[0].mxu1 %vm215_vm0, %v6344_v2  ;;  %5824 = vmatmul.mubr.msk.bf16.vlgmr.msra.gmra.mrb[0].mxu0 %vm215_vm0, %v6345_v3  ;;  %v6377_v2 = vld [vmem:[%s7379_s1 + $0x3a8] sm:$0xff]   ;;  %v4560_v3 = vld [vmem:[%s7380_s2 + $0x10] sm:$0xff] }
  0xf6   : > { %5642 = vmatpush3.bf16.msra.mxu1 %v1060_v5  ;;  %5637 = vmatprep.mubr.msk.bf16.mxu1 %vm215_vm0, %v6346_v4  ;;  %v4561_v4 = vld [vmem:[%s7380_s2 + $0x18] sm:$0xff]  ;;  %v6378_v5 = vld [vmem:[%s7379_s1 + $0x150] sm:$0xff]  }
  0xf7   : > { %5827 = vmatprep.mubr.msk.bf16.mxu0 %vm215_vm0, %v6347_v6  ;;  %6219 = vmatprep.subr.msk.bf16.mxu1 %vm228_vm1, %v1169_v7  ;;  %v1551_v6 = vsel %vm228_vm1, %v1537_v53, 0  ;;  %v6379_v7 = vld [vmem:[%s7379_s1 + $0x3b0] sm:$0xff]  }
  0xf8   : > { %5832 = vmatpush3.bf16.msra.mxu0 %v3383_v8  ;;  %v3980_v8 = vpop.permute.xlu1 %3979  ;;  %4578 = vperm.xlu1 %6281, %v4560_v3   ;;  %v6406_v3 = vld [vmem:[%s7379_s1 + $0x1c0] sm:$0xff]  }
  0xf9   : > { %6238 = vmatprep.subr.msk.bf16.mxu0 %vm228_vm1, %v6629_v16  ;;  %v6356_v16 = vld [vmem:[%s7379_s1 + $0xf8] sm:$0xff]   ;;  %4583 = vperm.xlu0 %6280, %v4561_v4   ;;  %v6407_v4 = vld [vmem:[%s7379_s1 + $0x420] sm:$0xff]  }
  0xfd   : > { %5638 = vmatmul.mubr.msk.bf16.gmra.mrb[4].mxu1 %vm215_vm0, %v6348_v9  ;;  %5828 = vmatmul.mubr.msk.bf16.gmra.mrb[4].mxu0 %vm215_vm0, %v6349_v10  ;;  %v3978_v9 = vpop.permute.xlu0 %3977  ;;  %v1659_v10 = vsel %vm553_vm4, %v1656_v45, %v1658_v44 }
  0xfe   : > { %5643 = vmatprep.mubr.msk.bf16.mxu1 %vm215_vm0, %v6350_v11  ;;  %5833 = vmatprep.mubr.msk.bf16.mxu0 %vm215_vm0, %v6351_v12  ;;  %v3873_v11 = vsel %vm228_vm1, %v3859_v55, 0  ;;  %v4562_v12 = vld [vmem:[%s7380_s2 + $0x20] sm:$0xff]  ;;  %v3981_v14 = vsel %vm676_vm5, %v3978_v9, %v3980_v8  ;;  %v6409_v8 = vld [vmem:[%s7379_s1 + $0x428] sm:$0xff]   ;;  %v6410_v9 = vld [vmem:[%s7379_s1 + $0x1d0] sm:$0xff]  }
  0xff   : > { %4588 = vperm.xlu1 %6281, %v4562_v12   ;;  %4593 = vperm.xlu0 %6280, %v4563_v15  }
 0x105   : > { %5644 = vmatmul.mubr.msk.bf16.vlgmr.msra.gmra.mrb[0].mxu1 %vm215_vm0, %v6352_v17  ;;  %5834 = vmatmul.mubr.msk.bf16.vlgmr.msra.gmra.mrb[0].mxu0 %vm215_vm0, %v6353_v18  ;;  %v6380_v17 = vld [vmem:[%s7379_s1 + $0x158] sm:$0xff]  }
 0x106   : > { %5652 = vmatpush3.bf16.msra.mxu1 %v1183_v22  ;;  %5647 = vmatprep.mubr.msk.bf16.mxu1 %vm215_vm0, %v6354_v19  ;;  %v6381_v18 = vld [vmem:[%s7379_s1 + $0x3b8] sm:$0xff]   ;;  %v4564_v19 = vld [vmem:[%s7380_s2 + $0x30] sm:$0xff] }
 0x107   : > { %5837 = vmatprep.mubr.msk.bf16.mxu0 %vm215_vm0, %v6355_v23  ;;  %5842 = vmatpush3.bf16.msra.mxu0 %v3502_v24  ;;  %v4565_v22 = vld [vmem:[%s7380_s2 + $0x38] sm:$0xff]  ;;  %v1902_v23 = vpop.permute.xlu1 %1901  ;;  %v1900_v24 = vpop.permute.xlu0 %1899 }
 0x108   : > { %6220 = vmatprep.subr.msk.bf16.mxu1 %vm228_vm1, %v6618_v13  ;;  %6239 = vmatprep.subr.msk.bf16.mxu0 %vm228_vm1, %v3615_v25  ;;  %v6364_v13 = vld [vmem:[%s7379_s1 + $0x118] sm:$0xff]   ;;  %v6384_v25 = vld [vmem:[%s7379_s1 + $0x168] sm:$0xff]  }
 0x109   : > { %4598 = vperm.xlu1 %6281, %v4564_v19   ;;  %4603 = vperm.xlu0 %6280, %v4565_v22   ;;  %v6412_v19 = vld [vmem:[%s7379_s1 + $0x1d8] sm:$0xff]   ;;  %v6415_v22 = vld [vmem:[%s7379_s1 + $0x440] sm:$0xff]  }
 0x10b   : > { %v4102_v29 = vpop.permute.xlu1 %4101  ;;  %v4100_v30 = vpop.permute.xlu0 %4099 }
 0x10d   : > { %5648 = vmatmul.mubr.msk.bf16.gmra.mrb[4].mxu1 %vm215_vm0, %v6356_v16  ;;  %5838 = vmatmul.mubr.msk.bf16.gmra.mrb[4].mxu0 %vm215_vm0, %v6357_v26  ;;  %v6385_v16 = vld [vmem:[%s7379_s1 + $0x3c8] sm:$0xff]   ;;  %v6386_v26 = vld [vmem:[%s7379_s1 + $0x170] sm:$0xff]  }
 0x10e   : > { %5653 = vmatprep.mubr.msk.bf16.mxu1 %vm215_vm0, %v6358_v27  ;;  %5843 = vmatprep.mubr.msk.bf16.mxu0 %vm215_vm0, %v6359_v28  ;;  %v1673_v27 = vsel %vm228_vm1, %v1659_v10, 0  ;;  %v6387_v28 = vld [vmem:[%s7379_s1 + $0x3d0] sm:$0xff]  }
 0x115   : > { %5654 = vmatmul.mubr.msk.bf16.vlgmr.msra.gmra.mrb[0].mxu1 %vm215_vm0, %v6360_v31  ;;  %5844 = vmatmul.mubr.msk.bf16.vlgmr.msra.gmra.mrb[0].mxu0 %vm215_vm0, %v6361_v32  ;;  %v1781_v31 = vsel %vm676_vm5, %v1778_v61, %v1780_v60  ;;  %v3995_v32 = vsel %vm228_vm1, %v3981_v14, 0 }
 0x116   : > { %5662 = vmatpush3.bf16.msra.mxu1 %v1302_v34  ;;  %5657 = vmatprep.mubr.msk.bf16.mxu1 %vm215_vm0, %v6362_v33  ;;  %v4103_v33 = vsel %vm799_vm6, %v4100_v30, %v4102_v29  ;;  %v6388_v34 = vld [vmem:[%s7379_s1 + $0x178] sm:$0xff]  }
 0x117   : > { %5847 = vmatprep.mubr.msk.bf16.mxu0 %vm215_vm0, %v6363_v35  ;;  %6221 = vmatprep.subr.msk.bf16.mxu1 %vm228_vm1, %v1415_v38  ;;  %v6389_v35 = vld [vmem:[%s7379_s1 + $0x3d8] sm:$0xff]   ;;  %v2024_v38 = vpop.permute.xlu1 %2023 }
 0x118   : > { %5852 = vmatpush3.bf16.msra.mxu0 %v3629_v39  ;;  %v2022_v39 = vpop.permute.xlu0 %2021  ;;  %v6420_v29 = vld [vmem:[%s7379_s1 + $0x1f8] sm:$0xff]  }
 0x119   : > { %6240 = vmatprep.subr.msk.bf16.mxu0 %vm228_vm1, %v3737_v40  ;;  %v6392_v40 = vld [vmem:[%s7379_s1 + $0x188] sm:$0xff]   ;;  %v2025_v62 = vsel %vm922_vm7, %v2022_v39, %v2024_v38  ;;  %v6421_v30 = vld [vmem:[%s7379_s1 + $0x458] sm:$0xff]  }
 0x11a   : > { %v6428_v38 = vld [vmem:[%s7379_s1 + $0x218] sm:$0xff]  }
 0x11b   : > { %v4224_v44 = vpop.permute.xlu1 %4223  ;;  %v6429_v39 = vld [vmem:[%s7379_s1 + $0x478] sm:$0xff]  }
 0x11c   : > { %v4222_v45 = vpop.permute.xlu0 %4221 }
 0x11d   : > { %5658 = vmatmul.mubr.msk.bf16.gmra.mrb[4].mxu1 %vm215_vm0, %v6364_v13  ;;  %5848 = vmatmul.mubr.msk.bf16.gmra.mrb[4].mxu0 %vm215_vm0, %v6365_v41  ;;  %v6393_v13 = vld [vmem:[%s7379_s1 + $0x3e8] sm:$0xff]   ;;  %v6394_v41 = vld [vmem:[%s7379_s1 + $0x190] sm:$0xff]  }
 0x11e   : > { %5663 = vmatprep.mubr.msk.bf16.mxu1 %vm215_vm0, %v6366_v42  ;;  %5853 = vmatprep.mubr.msk.bf16.mxu0 %vm215_vm0, %v6367_v43  ;;  %v1795_v42 = vsel %vm228_vm1, %v1781_v31, 0  ;;  %v6395_v43 = vld [vmem:[%s7379_s1 + $0x3f0] sm:$0xff]  }
 0x125   : > { %5664 = vmatmul.mubr.msk.bf16.vlgmr.msra.gmra.mrb[0].mxu1 %vm215_vm0, %v6368_v46  ;;  %5854 = vmatmul.mubr.msk.bf16.vlgmr.msra.gmra.mrb[0].mxu0 %vm215_vm0, %v6369_v47  ;;  %v1903_v46 = vsel %vm799_vm6, %v1900_v24, %v1902_v23  ;;  %v4117_v47 = vsel %vm228_vm1, %v4103_v33, 0  ;;  %v6416_v23 = vld [vmem:[%s7379_s1 + $0x1e8] sm:$0xff]  }
 0x126   : > { %5672 = vmatpush3.bf16.msra.mxu1 %v1429_v49  ;;  %5667 = vmatprep.mubr.msk.bf16.mxu1 %vm215_vm0, %v6370_v48  ;;  %v4225_v48 = vsel %vm922_vm7, %v4222_v45, %v4224_v44  ;;  %v6396_v49 = vld [vmem:[%s7379_s1 + $0x198] sm:$0xff]   ;;  %v6417_v24 = vld [vmem:[%s7379_s1 + $0x448] sm:$0xff]  }
 0x127   : > { %5857 = vmatprep.mubr.msk.bf16.mxu0 %vm215_vm0, %v6371_v50  ;;  %6222 = vmatprep.subr.msk.bf16.mxu1 %vm228_vm1, %v1537_v53  ;;  %v6397_v50 = vld [vmem:[%s7379_s1 + $0x3f8] sm:$0xff]   ;;  %v2146_v53 = vpop.permute.xlu1 %2145  ;;  %v4239_v63 = vsel %vm228_vm1, %v4225_v48, 0 }
 0x128   : > { %5862 = vmatpush3.bf16.msra.mxu0 %v3751_v54  ;;  %v2144_v54 = vpop.permute.xlu0 %2143 }
 0x129   : > { %6241 = vmatprep.subr.msk.bf16.mxu0 %vm228_vm1, %v3859_v55  ;;  %v6400_v55 = vld [vmem:[%s7379_s1 + $0x1a8] sm:$0xff]   ;;  %v2147_v15 = vsel %vm1045_vm8, %v2144_v54, %v2146_v53 }
 0x12b   : > { %v4346_v60 = vpop.permute.xlu1 %4345 }
 0x12c   : > { %v4344_v61 = vpop.permute.xlu0 %4343 }
 0x12d   : > { %5668 = vmatmul.mubr.msk.bf16.gmra.mrb[4].mxu1 %vm215_vm0, %v6372_v56  ;;  %5858 = vmatmul.mubr.msk.bf16.gmra.mrb[4].mxu0 %vm215_vm0, %v6373_v57  ;;  %v6401_v56 = vld [vmem:[%s7379_s1 + $0x408] sm:$0xff]   ;;  %v6402_v57 = vld [vmem:[%s7379_s1 + $0x1b0] sm:$0xff]   ;;  %v4347_v0 = vsel %vm1045_vm8, %v4344_v61, %v4346_v60 }
 0x12e   : > { %5673 = vmatprep.mubr.msk.bf16.mxu1 %vm215_vm0, %v6374_v58  ;;  %5863 = vmatprep.mubr.msk.bf16.mxu0 %vm215_vm0, %v6375_v59  ;;  %v1917_v58 = vsel %vm228_vm1, %v1903_v46, 0  ;;  %v6403_v59 = vld [vmem:[%s7379_s1 + $0x410] sm:$0xff]  }
 0x135   : > { %5674 = vmatmul.mubr.msk.bf16.vlgmr.msra.gmra.mrb[0].mxu1 %vm215_vm0, %v6376_v1  ;;  %5864 = vmatmul.mubr.msk.bf16.vlgmr.msra.gmra.mrb[0].mxu0 %vm215_vm0, %v6377_v2  ;;  %v6404_v1 = vld [vmem:[%s7379_s1 + $0x1b8] sm:$0xff]  }
 0x136   : > { %5682 = vmatpush3.bf16.msra.mxu1 %v1551_v6  ;;  %5677 = vmatprep.mubr.msk.bf16.mxu1 %vm215_vm0, %v6378_v5  ;;  %v6405_v2 = vld [vmem:[%s7379_s1 + $0x418] sm:$0xff]   ;;  %v2268_v5 = vpop.permute.xlu1 %2267  ;;  %v2266_v6 = vpop.permute.xlu0 %2265 }
 0x137   : > { %5867 = vmatprep.mubr.msk.bf16.mxu0 %vm215_vm0, %v6379_v7  ;;  %6223 = vmatprep.subr.msk.bf16.mxu1 %vm228_vm1, %v1659_v10  ;;  %v6408_v7 = vld [vmem:[%s7379_s1 + $0x1c8] sm:$0xff]   ;;  %v2039_v10 = vsel %vm228_vm1, %v2025_v62, 0 }
 0x138   : > { %5872 = vmatpush3.bf16.msra.mxu0 %v3873_v11  ;;  %v6411_v11 = vld [vmem:[%s7379_s1 + $0x430] sm:$0xff]  }
 0x139   : > { %6242 = vmatprep.subr.msk.bf16.mxu0 %vm228_vm1, %v3981_v14 }
 0x13a   : > { %v4468_v12 = vpop.permute.xlu1 %4467  ;;  %v4466_v14 = vpop.permute.xlu0 %4465 }
 0x13d   : > { %5678 = vmatmul.mubr.msk.bf16.gmra.mrb[4].mxu1 %vm215_vm0, %v6380_v17  ;;  %5868 = vmatmul.mubr.msk.bf16.gmra.mrb[4].mxu0 %vm215_vm0, %v6381_v18  ;;  %v4361_v17 = vsel %vm228_vm1, %v4347_v0, 0  ;;  %v4469_v18 = vsel %vm1168_vm9, %v4466_v14, %v4468_v12 }
 0x13e   : > { %5683 = vmatprep.mubr.msk.bf16.mxu1 %vm215_vm0, %v6382_v20  ;;  %5873 = vmatprep.mubr.msk.bf16.mxu0 %vm215_vm0, %v6383_v21  ;;  %v6413_v20 = vld [vmem:[%s7379_s1 + $0x438] sm:$0xff]   ;;  %v6414_v21 = vld [vmem:[%s7379_s1 + $0x1e0] sm:$0xff]  }
 0x145   : > { %5684 = vmatmul.mubr.msk.bf16.vlgmr.msra.gmra.mrb[0].mxu1 %vm215_vm0, %v6384_v25  ;;  %5874 = vmatmul.mubr.msk.bf16.vlgmr.msra.gmra.mrb[0].mxu0 %vm215_vm0, %v6385_v16  ;;  %v6418_v25 = vld [vmem:[%s7379_s1 + $0x1f0] sm:$0xff]   ;;  %v2161_v16 = vsel %vm228_vm1, %v2147_v15, 0 }
 0x146   : > { %5692 = vmatpush3.bf16.msra.mxu1 %v1673_v27  ;;  %5687 = vmatprep.mubr.msk.bf16.mxu1 %vm215_vm0, %v6386_v26  ;;  %v6419_v26 = vld [vmem:[%s7379_s1 + $0x450] sm:$0xff]   ;;  %v2269_v27 = vsel %vm1168_vm9, %v2266_v6, %v2268_v5 }
 0x147   : > { %5877 = vmatprep.mubr.msk.bf16.mxu0 %vm215_vm0, %v6387_v28  ;;  %6224 = vmatprep.subr.msk.bf16.mxu1 %vm228_vm1, %v1781_v31  ;;  %v4483_v28 = vsel %vm228_vm1, %v4469_v18, 0  ;;  %v6422_v31 = vld [vmem:[%s7379_s1 + $0x200] sm:$0xff]  }
 0x148   : > { %5882 = vmatpush3.bf16.msra.mxu0 %v3995_v32  ;;  %v6423_v32 = vld [vmem:[%s7379_s1 + $0x460] sm:$0xff]  }
 0x149   : > { %6243 = vmatprep.subr.msk.bf16.mxu0 %vm228_vm1, %v4103_v33  ;;  %v6424_v33 = vld [vmem:[%s7379_s1 + $0x208] sm:$0xff]  }
 0x14d   : > { %5688 = vmatmul.mubr.msk.bf16.gmra.mrb[4].mxu1 %vm215_vm0, %v6388_v34  ;;  %5878 = vmatmul.mubr.msk.bf16.gmra.mrb[4].mxu0 %vm215_vm0, %v6389_v35  ;;  %v6425_v34 = vld [vmem:[%s7379_s1 + $0x468] sm:$0xff]   ;;  %v6426_v35 = vld [vmem:[%s7379_s1 + $0x210] sm:$0xff]  }
 0x14e   : > { %5693 = vmatprep.mubr.msk.bf16.mxu1 %vm215_vm0, %v6390_v36  ;;  %5883 = vmatprep.mubr.msk.bf16.mxu0 %vm215_vm0, %v6391_v37  ;;  %v2283_v36 = vsel %vm228_vm1, %v2269_v27, 0  ;;  %v6427_v37 = vld [vmem:[%s7379_s1 + $0x470] sm:$0xff]  }
 0x155   : > { %5694 = vmatmul.mubr.msk.bf16.vlgmr.msra.gmra.mrb[0].mxu1 %vm215_vm0, %v6392_v40  ;;  %5884 = vmatmul.mubr.msk.bf16.vlgmr.msra.gmra.mrb[0].mxu0 %vm215_vm0, %v6393_v13  ;;  %v6430_v40 = vld [vmem:[%s7379_s1 + $0x220] sm:$0xff]   ;;  %v6431_v13 = vld [vmem:[%s7379_s1 + $0x228] sm:$0xff]  }
 0x156   : > { %5702 = vmatpush3.bf16.msra.mxu1 %v1795_v42  ;;  %5697 = vmatprep.mubr.msk.bf16.mxu1 %vm215_vm0, %v6394_v41  ;;  %v6432_v41 = vld [vmem:[%s7379_s1 + $0x230] sm:$0xff]   ;;  %v6433_v42 = vld [vmem:[%s7379_s1 + $0x238] sm:$0xff]  }
 0x157   : > { %5887 = vmatprep.mubr.msk.bf16.mxu0 %vm215_vm0, %v6395_v43  ;;  %6225 = vmatprep.subr.msk.bf16.mxu1 %vm228_vm1, %v1903_v46 }
 0x158   : > { %5892 = vmatpush3.bf16.msra.mxu0 %v4117_v47 }
 0x159   : > { %6244 = vmatprep.subr.msk.bf16.mxu0 %vm228_vm1, %v4225_v48 }
 0x15d   : > { %5698 = vmatmul.mubr.msk.bf16.gmra.mrb[4].mxu1 %vm215_vm0, %v6396_v49  ;;  %5888 = vmatmul.mubr.msk.bf16.gmra.mrb[4].mxu0 %vm215_vm0, %v6397_v50 }
 0x15e   : > { %5703 = vmatprep.mubr.msk.bf16.mxu1 %vm215_vm0, %v6398_v51  ;;  %5893 = vmatprep.mubr.msk.bf16.mxu0 %vm215_vm0, %v6399_v52 }
 0x165   : > { %5704 = vmatmul.mubr.msk.bf16.vlgmr.msra.gmra.mrb[0].mxu1 %vm215_vm0, %v6400_v55  ;;  %5894 = vmatmul.mubr.msk.bf16.vlgmr.msra.gmra.mrb[0].mxu0 %vm215_vm0, %v6401_v56 }
 0x166   : > { %5712 = vmatpush3.bf16.msra.mxu1 %v1917_v58  ;;  %5707 = vmatprep.mubr.msk.bf16.mxu1 %vm215_vm0, %v6402_v57 }
 0x167   : > { %5897 = vmatprep.mubr.msk.bf16.mxu0 %vm215_vm0, %v6403_v59  ;;  %6226 = vmatprep.subr.msk.bf16.mxu1 %vm228_vm1, %v2025_v62 }
 0x168   : > { %5902 = vmatpush3.bf16.msra.mxu0 %v4239_v63 }
 0x169   : > { %6245 = vmatprep.subr.msk.bf16.mxu0 %vm228_vm1, %v4347_v0 }
 0x16d   : > { %5708 = vmatmul.mubr.msk.bf16.gmra.mrb[4].mxu1 %vm215_vm0, %v6404_v1  ;;  %5898 = vmatmul.mubr.msk.bf16.gmra.mrb[4].mxu0 %vm215_vm0, %v6405_v2 }
 0x16e   : > { %5713 = vmatprep.mubr.msk.bf16.mxu1 %vm215_vm0, %v6406_v3  ;;  %5903 = vmatprep.mubr.msk.bf16.mxu0 %vm215_vm0, %v6407_v4 }
 0x16f   : > { %v4574_v47 = vpop.permute.xlu1 %4573  ;;  %v4569_v50 = vpop.permute.xlu0 %4568 }
 0x175   : > { %5714 = vmatmul.mubr.msk.bf16.vlgmr.msra.gmra.mrb[0].mxu1 %vm215_vm0, %v6408_v7  ;;  %5904 = vmatmul.mubr.msk.bf16.vlgmr.msra.gmra.mrb[0].mxu0 %vm215_vm0, %v6409_v8 }
 0x176   : > { %5722 = vmatpush3.bf16.msra.mxu1 %v2039_v10  ;;  %5717 = vmatprep.mubr.msk.bf16.mxu1 %vm215_vm0, %v6410_v9 }
 0x177   : > { %5907 = vmatprep.mubr.msk.bf16.mxu0 %vm215_vm0, %v6411_v11  ;;  %6227 = vmatprep.subr.msk.bf16.mxu1 %vm228_vm1, %v2147_v15  ;;  %v4579_v53 = vpop.permute.xlu1 %4578 }
 0x178   : > { %5912 = vmatpush3.bf16.msra.mxu0 %v4361_v17  ;;  %v4584_v54 = vpop.permute.xlu0 %4583 }
 0x179   : > { %6246 = vmatprep.subr.msk.bf16.mxu0 %vm228_vm1, %v4469_v18 }
 0x17d   : > { %5718 = vmatmul.mubr.msk.bf16.gmra.mrb[4].mxu1 %vm215_vm0, %v6412_v19  ;;  %5908 = vmatmul.mubr.msk.bf16.gmra.mrb[4].mxu0 %vm215_vm0, %v6413_v20 }
 0x17e   : > { %5723 = vmatprep.mubr.msk.bf16.mxu1 %vm215_vm0, %v6414_v21  ;;  %5913 = vmatprep.mubr.msk.bf16.mxu0 %vm215_vm0, %v6415_v22  ;;  %v4589_v63 = vpop.permute.xlu1 %4588  ;;  %v4594_v4 = vpop.permute.xlu0 %4593 }
 0x185   : > { %5724 = vmatmul.mubr.msk.bf16.vlgmr.msra.gmra.mrb[0].mxu1 %vm215_vm0, %v6416_v23  ;;  %5914 = vmatmul.mubr.msk.bf16.vlgmr.msra.gmra.mrb[0].mxu0 %vm215_vm0, %v6417_v24 }
 0x186   : > { %5732 = vmatpush3.bf16.msra.mxu1 %v2161_v16  ;;  %5727 = vmatprep.mubr.msk.bf16.mxu1 %vm215_vm0, %v6418_v25 }
 0x187   : > { %5917 = vmatprep.mubr.msk.bf16.mxu0 %vm215_vm0, %v6419_v26  ;;  %6228 = vmatprep.subr.msk.bf16.mxu1 %vm228_vm1, %v2269_v27 }
 0x188   : > { %5922 = vmatpush3.bf16.msra.mxu0 %v4483_v28  ;;  %v4599_v12 = vpop.permute.xlu1 %4598  ;;  %v4604_v20 = vpop.permute.xlu0 %4603 }
 0x18d   : > { %5728 = vmatmul.mubr.msk.bf16.gmra.mrb[4].mxu1 %vm215_vm0, %v6420_v29  ;;  %5918 = vmatmul.mubr.msk.bf16.gmra.mrb[4].mxu0 %vm215_vm0, %v6421_v30 }
 0x18e   : > { %5733 = vmatprep.mubr.msk.bf16.mxu1 %vm215_vm0, %v6422_v31  ;;  %5923 = vmatprep.mubr.msk.bf16.mxu0 %vm215_vm0, %v6423_v32 }
 0x195   : > { %5734 = vmatmul.mubr.msk.bf16.vlgmr.msra.gmra.mrb[0].mxu1 %vm215_vm0, %v6424_v33  ;;  %5924 = vmatmul.mubr.msk.bf16.vlgmr.msra.gmra.mrb[0].mxu0 %vm215_vm0, %v6425_v34 }
 0x196   : > { %5742 = vmatpush3.bf16.msra.mxu1 %v2283_v36  ;;  %5737 = vmatprep.mubr.msk.bf16.mxu1 %vm215_vm0, %v6426_v35 }
 0x197   : > { %5927 = vmatprep.mubr.msk.bf16.mxu0 %vm215_vm0, %v6427_v37 }
 0x19d   : > { %5738 = vmatmul.mubr.msk.bf16.gmra.mrb[4].mxu1 %vm215_vm0, %v6428_v38  ;;  %5928 = vmatmul.mubr.msk.bf16.gmra.mrb[4].mxu0 %vm215_vm0, %v6429_v39 }
 0x19e   : > { %5743 = vmatprep.mubr.msk.bf16.mxu1 %vm215_vm0, %v6430_v40 }
 0x1a5   : > { %5744 = vmatmul.mubr.msk.bf16.vlgmr.msra.gmra.mrb[0].mxu1 %vm215_vm0, %v6431_v13 }
 0x1a6   : > { %5747 = vmatprep.mubr.msk.bf16.mxu1 %vm215_vm0, %v6432_v41 }
 0x1ad   : > { %5748 = vmatmul.mubr.msk.bf16.gmra.mrb[4].mxu1 %vm215_vm0, %v6433_v42 }
 0x268   : > { %v5925_v43 = vpop.f32.mrb[0].mxu0 }
 0x269   : > { %v4519_v44 = vpop.f32.mrb[1].mxu0 }
 0x26a   : > { %v5926_v45 = vpop.f32.mrb[2].mxu0 }
 0x26b   : > { %v4522_v46 = vpop.f32.mrb[3].mxu0 }
 0x270   : > { %v5929_v48 = vpop.f32.mrb[4].mxu0 }
 0x271   : > { %v4535_v49 = vpop.f32.mrb[5].mxu0 }
 0x272   : > { %v5930_v51 = vpop.f32.mrb[6].mxu0 }
 0x273   : > { %v4538_v52 = vpop.f32.mrb[7].mxu0 }
 0x278   : > { %v5745_v55 = vpop.f32.mrb[0].mxu1 }
 0x279   : > { %v5931_v56 = vadd.f32 %v5925_v43, %v5745_v55  ;;  %v2319_v57 = vpop.f32.mrb[1].mxu1 }
 0x27a   : > { %v5932_v58 = vadd.f32 %v4519_v44, %v2319_v57  ;;  %v5746_v59 = vpop.f32.mrb[2].mxu1 }
 0x27b   : > { %v4608_v60 = vadd.f32 %v5931_v56, %v4579_v53  ;;  %v5933_v61 = vadd.f32 %v5926_v45, %v5746_v59  ;;  %v2322_v62 = vpop.f32.mrb[3].mxu1 }
 0x27c   : > { %v4606_v0 = vadd.f32 %v5932_v58, %v4569_v50  ;;  %v5934_v1 = vadd.f32 %v4522_v46, %v2322_v62 }
 0x27d   : > { %v5371_v2 = vmul.f32 -1.442695, %v4608_v60  ;;  %v4609_v3 = vadd.f32 %v5933_v61, %v4584_v54 }
 0x27e   : > { %v5369_v5 = vmul.f32 -1.442695, %v4606_v0  ;;  %v4607_v6 = vadd.f32 %v5934_v1, %v4574_v47 }
 0x27f   : > { %6434 = vpow2.f32 %v5371_v2  ;;  %v5372_v7 = vmul.f32 -1.442695, %v4609_v3 }
 0x280   : > { %6436 = vpow2.f32 %v5369_v5  ;;  %v5370_v8 = vmul.f32 -1.442695, %v4607_v6  ;;  %v5749_v9 = vpop.f32.mrb[4].mxu1 }
 0x281   : > { %6438 = vpow2.f32 %v5372_v7  ;;  %v5935_v10 = vadd.f32 %v5929_v48, %v5749_v9  ;;  %v2335_v11 = vpop.f32.mrb[5].mxu1 }
 0x282   : > { %6440 = vpow2.f32 %v5370_v8  ;;  %v5936_v14 = vadd.f32 %v4535_v49, %v2335_v11  ;;  %v5750_v15 = vpop.f32.mrb[6].mxu1 }
 0x283   : > { %v4612_v17 = vadd.f32 %v5935_v10, %v4599_v12  ;;  %v5937_v18 = vadd.f32 %v5930_v51, %v5750_v15  ;;  %v2338_v19 = vpop.f32.mrb[7].mxu1 }
 0x284   : > { %v4610_v21 = vadd.f32 %v5936_v14, %v4589_v63  ;;  %v5938_v22 = vadd.f32 %v4538_v52, %v2338_v19 }
 0x285   : > { %v5375_v23 = vmul.f32 -1.442695, %v4612_v17  ;;  %v4613_v24 = vadd.f32 %v5937_v18, %v4604_v20 }
 0x286   : > { %v5373_v25 = vmul.f32 -1.442695, %v4610_v21  ;;  %v4611_v16 = vadd.f32 %v5938_v22, %v4594_v4 }
 0x287   : > { %6442 = vpow2.f32 %v5375_v23  ;;  %v5376_v26 = vmul.f32 -1.442695, %v4613_v24 }
 0x288   : > { %6444 = vpow2.f32 %v5373_v25  ;;  %v5374_v27 = vmul.f32 -1.442695, %v4611_v16 }
 0x289   : > { %v6435_v28 = vpop.eup %6434  ;;  %6446 = vpow2.f32 %v5376_v26 }
 0x28a   : > { %v6437_v29 = vpop.eup %6436  ;;  %v4640_v30 = vadd.f32 1.0, %v6435_v28  ;;  %6448 = vpow2.f32 %v5374_v27 }
 0x28b   : > { %v6439_v31 = vpop.eup %6438  ;;  %v4638_v32 = vadd.f32 1.0, %v6437_v29 }
 0x28c   : > { %v6441_v33 = vpop.eup %6440  ;;  %6450 = vrcp.f32 %v4640_v30  ;;  %v4641_v34 = vadd.f32 1.0, %v6439_v31 }
 0x28d   : > { %6452 = vrcp.f32 %v4638_v32  ;;  %v4639_v35 = vadd.f32 1.0, %v6441_v33 }
 0x28e   : > { %6454 = vrcp.f32 %v4641_v34 }
 0x28f   : > { %6456 = vrcp.f32 %v4639_v35 }
 0x291   : > { %v6443_v36 = vpop.eup %6442 }
 0x292   : > { %v6445_v37 = vpop.eup %6444  ;;  %v4644_v38 = vadd.f32 1.0, %v6443_v36 }
 0x293   : > { %v6447_v39 = vpop.eup %6446  ;;  %v4642_v40 = vadd.f32 1.0, %v6445_v37 }
 0x294   : > { %v6449_v13 = vpop.eup %6448  ;;  %v4645_v41 = vadd.f32 1.0, %v6447_v39 }
 0x295   : > { %6458 = vrcp.f32 %v4642_v40  ;;  %v4643_v42 = vadd.f32 1.0, %v6449_v13 }
 0x296   : > { %v6451_v43 = vpop.eup %6450  ;;  %6460 = vrcp.f32 %v4644_v38 }
 0x297   : > { %v6453_v44 = vpop.eup %6452  ;;  %6462 = vrcp.f32 %v4643_v42 }
 0x298   : > { %v6455_v45 = vpop.eup %6454  ;;  %v4662_v46 = vadd.f32 %v6453_v44, %v6451_v43  ;;  %6464 = vrcp.f32 %v4645_v41 }
 0x299   : > { %v6457_v47 = vpop.eup %6456 }
 0x29a   : > { %v4663_v48 = vadd.f32 %v6457_v47, %v6455_v45 }
 0x29f   : > { %v6459_v49 = vpop.eup %6458 }
 0x2a0   : > { %v6461_v50 = vpop.eup %6460  ;;  %v4664_v51 = vadd.f32 %v6459_v49, %v4662_v46 }
 0x2a1   : > { %v6463_v52 = vpop.eup %6462 }
 0x2a2   : > { %v4666_v53 = vadd.f32 %v6461_v50, %v4664_v51  ;;  %v4665_v54 = vadd.f32 %v6463_v52, %v4663_v48  ;;  %v6465_v55 = vpop.eup %6464 }
 0x2a4   : > { %v4667_v56 = vadd.f32 %v6465_v55, %v4665_v54  ;;  %v4668_v57 = vmul.f32 0.25, %v4666_v53  ;;  %4686 = sbr.rel (!%p6544_p4) target bundleno = 691 (0x2b3), region = 36 }
 0x2a6   : > { %v4669_v58 = vmul.f32 0.25, %v4667_v56 }
 0x2a8   : > { %v5389_v59 = vpack.c.bf16 %v4669_v58, %v4668_v57 }
 0x2aa   : > { %5390 = vst [vmem:[%s159_s25] sm:$0xff] %v5389_v59  }
 0x2b1   : > { %v4704_v60 = vld [vmem:[%s159_s25] sm:$0xf]  ;;  %v4706_v61 = vld [vmem:[%s159_s25 + $0x4] sm:$0xf] }
 0x2b2   : > { %4705 = vst [vmem:[%s4688_s12] sm:$0xf] %v4704_v60  ;;  %4707 = vst [vmem:[%s4688_s12 + $0x8] sm:$0xf] %v4706_v61 }
 0x2b3 PF: > { %p10_p8 = scmp.ge.s32.totalorder %s6534_s16, 4   ;;  %s7383_s12 = smov %s6484_s13 }
 0x2b4   : > { %s7384_s13 = smov %s6542_s19  ;;  %s7385_s14 = smov %s6534_s16 }
 0x2b5   :  { %12 = sbr.rel (!%p10_p8) target bundleno = 2 (0x2), region = 141 }

</bundles_post_ra>
